<compile_context>
chip_gen: v5e
topology: v5e:2x2
jax: 0.10.0
libtpu: 0.0.40
codegen_flags: <defaults>
</compile_context>

<pallas_src>
import functools

import jax
import jax.numpy as jnp
from jax import lax
from jax.experimental import pallas as pl
from jax.experimental.pallas import tpu as pltpu


# ----------------------------------------------------------------------------
# Fused kernel: 2-layer LSTM recurrence + LayerNorm + Linear + sigmoid head.
# ----------------------------------------------------------------------------
def _lstm_fused_kernel(x_ref, wih1_ref, whh1_ref, b1_ref,
                       w2cat_ref, b2_ref,
                       gamma_ref, beta_ref, wfc_ref, bfc_ref,
                       probs_ref, normed_ref,
                       h1_ref, c1_ref, h2_ref, c2_ref, g1_ref, hhist_ref,
                       *, hidden_dim, t_chunk):
    H = hidden_dim
    Tc = t_chunk
    Bb = x_ref.shape[0]          # batch tile
    E = x_ref.shape[2]
    C = wfc_ref.shape[1]

    # Zero the recurrent state at the first time-chunk of each batch tile.
    # (Time stays the innermost, in-order "arbitrary" grid axis.)
    @pl.when(pl.program_id(1) == 0)
    def _():
        h1_ref[...] = jnp.zeros_like(h1_ref)
        c1_ref[...] = jnp.zeros_like(c1_ref)
        h2_ref[...] = jnp.zeros_like(h2_ref)
        c2_ref[...] = jnp.zeros_like(c2_ref)

    # ---- Prologue: layer-1 input matmul for the WHOLE chunk (bf16 MXU feed,
    # f32 accumulate), spilled to a VMEM scratch so it is not live across the
    # unrolled recurrence.  Weight loads / bias broadcast hoisted. ------------
    x_chunk = x_ref[...].reshape(Bb * Tc, E)                       # bf16
    g1 = (jnp.dot(x_chunk, wih1_ref[...],
                  preferred_element_type=jnp.float32)
          + b1_ref[...])                                           # f32
    g1_ref[...] = g1.reshape(Bb, Tc, 4 * H)

    whh1 = whh1_ref[...]                                           # bf16 (H, 4H)
    w2cat = w2cat_ref[...]                                         # bf16 (2H, 4H)
    b2b = jnp.broadcast_to(b2_ref[...], (Bb, 4 * H))               # hoisted f32

    h1 = h1_ref[...]
    c1 = c1_ref[...]
    h2 = h2_ref[...]
    c2 = c2_ref[...]

    full_width_act = (H % 128) != 0

    def gates_to_hc(gates, c_prev):
        # PyTorch gate order: i, f, g, o.  Elementwise math stays f32
        # (v5e has no bf16 VPU/EUP).
        if full_width_act:
            # H < 128: do full 4H-lane activations, then slice (avoids four
            # masked quarter-width EUP ops per step).
            sig = jax.nn.sigmoid(gates)
            tnh = jnp.tanh(gates)
            i_g = sig[:, 0 * H:1 * H]
            f_g = sig[:, 1 * H:2 * H]
            g_g = tnh[:, 2 * H:3 * H]
            o_g = sig[:, 3 * H:4 * H]
        else:
            i_g = jax.nn.sigmoid(gates[:, 0 * H:1 * H])
            f_g = jax.nn.sigmoid(gates[:, 1 * H:2 * H])
            g_g = jnp.tanh(gates[:, 2 * H:3 * H])
            o_g = jax.nn.sigmoid(gates[:, 3 * H:4 * H])
        c_new = f_g * c_prev + i_g * g_g
        h_new = o_g * jnp.tanh(c_new)
        return h_new, c_new

    # ---- Serial recurrence over the chunk (statically unrolled -> one basic
    # block; the LLO scheduler can overlap layer-2 step i with layer-1 step
    # i+1 since both only depend on h1[i]). -----------------------------------
    # TODO(synk): nn.LSTM dropout=0.5 between layers is train-mode only;
    # eval-mode (no dropout) semantics are implemented here.
    for i in range(Tc):
        gates1 = g1_ref[:, i, :] + jnp.dot(h1.astype(jnp.bfloat16), whh1,
                                           preferred_element_type=jnp.float32)
        h1, c1 = gates_to_hc(gates1, c1)
        # Layer 2: single fused dot over the pre-concatenated (2H, 4H) weight.
        h12 = jnp.concatenate([h1, h2], axis=-1).astype(jnp.bfloat16)
        gates2 = jnp.dot(h12, w2cat,
                         preferred_element_type=jnp.float32) + b2b
        h2, c2 = gates_to_hc(gates2, c2)
        hhist_ref[:, i, :] = h2              # dedicated scratch, not the output

    # Carry state to the next time chunk.
    h1_ref[...] = h1
    c1_ref[...] = c1
    h2_ref[...] = h2
    c2_ref[...] = c2

    # ---- Epilogue: fused LayerNorm -> Linear -> sigmoid for the chunk. ------
    y = hhist_ref[...].reshape(Bb * Tc, H)
    mean = jnp.mean(y, axis=-1, keepdims=True)
    var = jnp.mean(jnp.square(y - mean), axis=-1, keepdims=True)
    normed = (y - mean) * lax.rsqrt(var + 1e-5) * gamma_ref[...] + beta_ref[...]
    normed_ref[...] = normed.reshape(Bb, Tc, H)

    # fc is tiny and off the recurrence critical path: keep it f32 for accuracy.
    logits = jnp.dot(normed, wfc_ref[...],
                     preferred_element_type=jnp.float32) + bfc_ref[...]
    probs_ref[...] = jax.nn.sigmoid(logits).reshape(Bb, Tc, C)


def _pick_t_chunk(T):
    # Chunk must be a multiple of 8 (sublane tiling) or the full T.
    # Larger Tc amortizes per-grid-step overhead and fattens the prologue MXU
    # matmul (sweep upward for long sequences, VMEM permitting).
    if T >= 128 and T % 32 == 0:
        return 32
    if T % 16 == 0:
        return 16
    if T % 8 == 0:
        return 8
    return T


def _pick_batch_tile(B):
    # Fill the MXU M dimension when possible, but keep >= 2 blocks along the
    # parallel batch axis so the v7x megacore has something to split.
    if B >= 512:
        tb = 256
    elif B >= 2:
        tb = B // 2
    else:
        tb = B
    while B % tb:
        tb -= 1
    return max(tb, 1)


# ----------------------------------------------------------------------------
# Full forward — single pallas_call, batch-major in/out, no HBM transposes.
# ----------------------------------------------------------------------------
def lab8_lstm_forward(text, params, *, hidden_dim, num_class,
                      t_chunk=None, batch_tile=None,
                      vmem_limit_bytes=48 * 1024 * 1024,
                      single_buffer_weights=True):
    B, T, E = text.shape
    H, C = hidden_dim, num_class
    Tc = t_chunk if t_chunk is not None else _pick_t_chunk(T)
    TB = batch_tile if batch_tile is not None else _pick_batch_tile(B)
    assert T % Tc == 0 and B % TB == 0

    bf16 = jnp.bfloat16
    # bf16 MXU operands: halves input/weight DMA bytes and VMEM footprint.
    x = text.astype(bf16)
    wih1 = params["wih1"].astype(bf16)
    whh1 = params["whh1"].astype(bf16)
    # Fuse layer-2's two per-step matmuls: concat([h1, h2]) @ [[wih2],[whh2]].
    w2cat = jnp.concatenate([params["wih2"], params["whh2"]], axis=0).astype(bf16)

    kernel = functools.partial(_lstm_fused_kernel, hidden_dim=H, t_chunk=Tc)

    def const_spec(shape):
        # Constant-index weight/bias tiles: single-buffer them (they never
        # change across the grid) to save VMEM, especially on v7x (64 MiB/TC).
        idx = lambda b, t: (0,) * len(shape)
        if single_buffer_weights:
            try:
                return pl.BlockSpec(shape, idx, pipeline_mode=pl.Buffered(1))
            except Exception:   # pragma: no cover - older jax without Buffered
                pass
        return pl.BlockSpec(shape, idx)

    probs, normed = pl.pallas_call(
        kernel,
        out_shape=(jax.ShapeDtypeStruct((B, T, C), jnp.float32),
                   jax.ShapeDtypeStruct((B, T, H), jnp.float32)),
        grid_spec=pltpu.PrefetchScalarGridSpec(
            num_scalar_prefetch=0,
            grid=(B // TB, T // Tc),          # (parallel batch, sequential time)
            in_specs=[
                pl.BlockSpec((TB, Tc, E), lambda b, t: (b, t, 0)),   # x (bf16)
                const_spec((E, 4 * H)),                              # W_ih l0^T
                const_spec((H, 4 * H)),                              # W_hh l0^T
                const_spec((1, 4 * H)),                              # b_ih+b_hh l0
                const_spec((2 * H, 4 * H)),                          # [W_ih;W_hh] l1^T
                const_spec((1, 4 * H)),                              # b_ih+b_hh l1
                const_spec((1, H)),                                  # LN gamma
                const_spec((1, H)),                                  # LN beta
                const_spec((H, C)),                                  # fc W^T
                const_spec((1, C)),                                  # fc b
            ],
            out_specs=(
                pl.BlockSpec((TB, Tc, C), lambda b, t: (b, t, 0)),   # probs
                pl.BlockSpec((TB, Tc, H), lambda b, t: (b, t, 0)),   # normed
            ),
            scratch_shapes=[
                pltpu.VMEM((TB, H), jnp.float32),        # h1
                pltpu.VMEM((TB, H), jnp.float32),        # c1
                pltpu.VMEM((TB, H), jnp.float32),        # h2
                pltpu.VMEM((TB, H), jnp.float32),        # c2
                pltpu.VMEM((TB, Tc, 4 * H), jnp.float32),  # pre-computed l0 input gates
                pltpu.VMEM((TB, Tc, H), jnp.float32),      # h2 history for the chunk
            ],
        ),
        compiler_params=pltpu.CompilerParams(
            dimension_semantics=("parallel", "arbitrary"),
            vmem_limit_bytes=vmem_limit_bytes),
    )(x, wih1, whh1, params["b1"], w2cat, params["b2"],
      params["gamma"], params["beta"], params["wfc"], params["bfc"])
    return probs, normed


# ----------------------------------------------------------------------------
# Pure-JAX reference (f32) for the correctness sanity check in __main__.
# ----------------------------------------------------------------------------
def _reference_forward(text, params, *, hidden_dim):
    B, T, E = text.shape
    H = hidden_dim
    hp = lax.Precision.HIGHEST

    def run_layer(x_seq, wih, whh, b):
        def step(carry, x_t):
            h, c = carry
            gates = (jnp.dot(x_t, wih, precision=hp)
                     + jnp.dot(h, whh, precision=hp) + b)
            i = jax.nn.sigmoid(gates[:, :H])
            f = jax.nn.sigmoid(gates[:, H:2 * H])
            g = jnp.tanh(gates[:, 2 * H:3 * H])
            o = jax.nn.sigmoid(gates[:, 3 * H:])
            c = f * c + i * g
            h = o * jnp.tanh(c)
            return (h, c), h
        h0 = jnp.zeros((B, H), jnp.float32)
        _, hs = lax.scan(step, (h0, h0), x_seq)
        return hs

    x_tm = jnp.transpose(text, (1, 0, 2))
    h1 = run_layer(x_tm, params["wih1"], params["whh1"], params["b1"])
    h2 = run_layer(h1, params["wih2"], params["whh2"], params["b2"])
    y = jnp.transpose(h2, (1, 0, 2))                       # (B, T, H)
    mean = y.mean(-1, keepdims=True)
    var = ((y - mean) ** 2).mean(-1, keepdims=True)
    normed = (y - mean) / jnp.sqrt(var + 1e-5) * params["gamma"] + params["beta"]
    probs = jax.nn.sigmoid(jnp.dot(normed, params["wfc"], precision=hp)
                           + params["bfc"])
    return probs, normed


if __name__ == "__main__":
    # T=32 with the default Tc=16 -> 2 time chunks (exercises the state carry
    # + pl.when reset); B=2 with TB=1 -> 2 blocks on the parallel axis.
    B, T, E, H, C = 2, 32, 16, 32, 4

    key = jax.random.PRNGKey(0)
    keys = jax.random.split(key, 12)
    bound = 1.0 / jnp.sqrt(jnp.float32(H))

    def u(k, shape):
        return jax.random.uniform(k, shape, jnp.float32, -bound, bound)

    params = dict(
        # LSTM layer 0: weight_ih (4H,E) stored transposed as (E,4H), etc.
        wih1=u(keys[0], (E, 4 * H)),
        whh1=u(keys[1], (H, 4 * H)),
        b1=u(keys[2], (1, 4 * H)) + u(keys[3], (1, 4 * H)),   # bias_ih + bias_hh
        # LSTM layer 1: input dim = H
        wih2=u(keys[4], (H, 4 * H)),
        whh2=u(keys[5], (H, 4 * H)),
        b2=u(keys[6], (1, 4 * H)) + u(keys[7], (1, 4 * H)),
        # LayerNorm
        gamma=jnp.ones((1, H), jnp.float32),
        beta=jnp.zeros((1, H), jnp.float32),
        # fc: (num_class, H) stored transposed as (H, C)
        wfc=u(keys[8], (H, C)),
        bfc=u(keys[9], (1, C)),
    )

    text = jax.random.normal(keys[10], (B, T, E), jnp.float32)

    fwd = jax.jit(functools.partial(lab8_lstm_forward, hidden_dim=H, num_class=C))
    probs, normed_out = fwd(text, params)
    jax.block_until_ready((probs, normed_out))

    assert probs.shape == (B, T, C)
    assert normed_out.shape == (B, T, H)

    ref_probs, ref_normed = _reference_forward(text, params, hidden_dim=H)
    # bf16 MXU operands in the recurrence -> slightly looser tolerance than f32.
    assert jnp.allclose(probs, ref_probs, atol=5e-2, rtol=5e-2), (
        float(jnp.max(jnp.abs(probs - ref_probs))))
    assert jnp.allclose(normed_out, ref_normed, atol=5e-2, rtol=5e-2), (
        float(jnp.max(jnp.abs(normed_out - ref_normed))))

    print("KERNEL_OK")
</pallas_src>

<mosaic_0001>
module attributes {stable_mosaic.version = 11 : i64} {
  func.func @_lstm_fused_kernel(%arg0: i32, %arg1: i32, %arg2: memref<1x16x16xbf16, #tpu.memory_space<vmem>>, %arg3: memref<16x128xbf16, #tpu.memory_space<vmem>>, %arg4: memref<32x128xbf16, #tpu.memory_space<vmem>>, %arg5: memref<1x128xf32, #tpu.memory_space<vmem>>, %arg6: memref<64x128xbf16, #tpu.memory_space<vmem>>, %arg7: memref<1x128xf32, #tpu.memory_space<vmem>>, %arg8: memref<1x32xf32, #tpu.memory_space<vmem>>, %arg9: memref<1x32xf32, #tpu.memory_space<vmem>>, %arg10: memref<32x4xf32, #tpu.memory_space<vmem>>, %arg11: memref<1x4xf32, #tpu.memory_space<vmem>>, %arg12: memref<1x16x4xf32, #tpu.memory_space<vmem>>, %arg13: memref<1x16x32xf32, #tpu.memory_space<vmem>>, %arg14: memref<1x32xf32, #tpu.memory_space<vmem>>, %arg15: memref<1x32xf32, #tpu.memory_space<vmem>>, %arg16: memref<1x32xf32, #tpu.memory_space<vmem>>, %arg17: memref<1x32xf32, #tpu.memory_space<vmem>>, %arg18: memref<1x16x128xf32, #tpu.memory_space<vmem>>, %arg19: memref<1x16x32xf32, #tpu.memory_space<vmem>>) attributes {dimension_semantics = [#tpu.dimension_semantics<parallel>, #tpu.dimension_semantics<arbitrary>], iteration_bounds = array<i64: 2, 2>, scalar_prefetch = 0 : i64, scratch_operands = 6 : i64, tpu.core_type = #tpu.core_type<tc>, window_params = [{transform_indices = @transform_0, window_bounds = array<i64: 1, 16, 16>}, {pipeline_mode = #tpu.pipeline_mode<synchronous>, transform_indices = @transform_1, window_bounds = array<i64: 16, 128>}, {pipeline_mode = #tpu.pipeline_mode<synchronous>, transform_indices = @transform_2, window_bounds = array<i64: 32, 128>}, {pipeline_mode = #tpu.pipeline_mode<synchronous>, transform_indices = @transform_3, window_bounds = array<i64: 1, 128>}, {pipeline_mode = #tpu.pipeline_mode<synchronous>, transform_indices = @transform_4, window_bounds = array<i64: 64, 128>}, {pipeline_mode = #tpu.pipeline_mode<synchronous>, transform_indices = @transform_5, window_bounds = array<i64: 1, 128>}, {pipeline_mode = #tpu.pipeline_mode<synchronous>, transform_indices = @transform_6, window_bounds = array<i64: 1, 32>}, {pipeline_mode = #tpu.pipeline_mode<synchronous>, transform_indices = @transform_7, window_bounds = array<i64: 1, 32>}, {pipeline_mode = #tpu.pipeline_mode<synchronous>, transform_indices = @transform_8, window_bounds = array<i64: 32, 4>}, {pipeline_mode = #tpu.pipeline_mode<synchronous>, transform_indices = @transform_9, window_bounds = array<i64: 1, 4>}, {transform_indices = @transform_10, window_bounds = array<i64: 1, 16, 4>}, {transform_indices = @transform_11, window_bounds = array<i64: 1, 16, 32>}]} {
    %c0_i32 = arith.constant 0 : i32
    %0 = arith.cmpi eq, %arg1, %c0_i32 : i32
    %1 = arith.extui %0 : i1 to i32
    %c0_i32_0 = arith.constant 0 : i32
    %2 = arith.cmpi ne, %1, %c0_i32_0 : i32
    scf.if %2 {
      %cst_201 = arith.constant 0.000000e+00 : f32
      %735 = vector.broadcast %cst_201 : f32 to vector<1x32xf32>
      %c0_202 = arith.constant 0 : index
      %c0_203 = arith.constant 0 : index
      %736 = vector.load %arg14[%c0_202, %c0_203] : memref<1x32xf32, #tpu.memory_space<vmem>>, vector<1x32xf32>
      tpu.vector_store %arg14[%c0_202, %c0_203], %735 {strides = array<i32>} : memref<1x32xf32, #tpu.memory_space<vmem>>, vector<1x32xf32>,
      %cst_204 = arith.constant 0.000000e+00 : f32
      %737 = vector.broadcast %cst_204 : f32 to vector<1x32xf32>
      %c0_205 = arith.constant 0 : index
      %c0_206 = arith.constant 0 : index
      %738 = vector.load %arg15[%c0_205, %c0_206] : memref<1x32xf32, #tpu.memory_space<vmem>>, vector<1x32xf32>
      tpu.vector_store %arg15[%c0_205, %c0_206], %737 {strides = array<i32>} : memref<1x32xf32, #tpu.memory_space<vmem>>, vector<1x32xf32>,
      %cst_207 = arith.constant 0.000000e+00 : f32
      %739 = vector.broadcast %cst_207 : f32 to vector<1x32xf32>
      %c0_208 = arith.constant 0 : index
      %c0_209 = arith.constant 0 : index
      %740 = vector.load %arg16[%c0_208, %c0_209] : memref<1x32xf32, #tpu.memory_space<vmem>>, vector<1x32xf32>
      tpu.vector_store %arg16[%c0_208, %c0_209], %739 {strides = array<i32>} : memref<1x32xf32, #tpu.memory_space<vmem>>, vector<1x32xf32>,
      %cst_210 = arith.constant 0.000000e+00 : f32
      %741 = vector.broadcast %cst_210 : f32 to vector<1x32xf32>
      %c0_211 = arith.constant 0 : index
      %c0_212 = arith.constant 0 : index
      %742 = vector.load %arg17[%c0_211, %c0_212] : memref<1x32xf32, #tpu.memory_space<vmem>>, vector<1x32xf32>
      tpu.vector_store %arg17[%c0_211, %c0_212], %741 {strides = array<i32>} : memref<1x32xf32, #tpu.memory_space<vmem>>, vector<1x32xf32>,
    } else {
    }
    %c0 = arith.constant 0 : index
    %c0_1 = arith.constant 0 : index
    %c0_2 = arith.constant 0 : index
    %3 = vector.load %arg2[%c0, %c0_1, %c0_2] : memref<1x16x16xbf16, #tpu.memory_space<vmem>>, vector<1x16x16xbf16>
    %4 = vector.shape_cast %3 : vector<1x16x16xbf16> to vector<16x16xbf16>
    %c0_3 = arith.constant 0 : index
    %c0_4 = arith.constant 0 : index
    %5 = vector.load %arg3[%c0_3, %c0_4] : memref<16x128xbf16, #tpu.memory_space<vmem>>, vector<16x128xbf16>
    %cst = arith.constant dense<0.000000e+00> : vector<16x128xf32>
    %6 = tpu.matmul %4, %5, %cst {dimension_numbers = #tpu.dot_dimension_numbers<[1], [0], [0], [1], [0, 0, 1, 1], [], []>} : vector<16x16xbf16>, vector<16x128xbf16>, vector<16x128xf32> -> vector<16x128xf32>
    %c0_5 = arith.constant 0 : index
    %c0_6 = arith.constant 0 : index
    %7 = vector.load %arg5[%c0_5, %c0_6] : memref<1x128xf32, #tpu.memory_space<vmem>>, vector<1x128xf32>
    %8 = vector.broadcast %7 : vector<1x128xf32> to vector<16x128xf32>
    %9 = arith.addf %6, %8 : vector<16x128xf32>
    %10 = vector.shape_cast %9 : vector<16x128xf32> to vector<1x16x128xf32>
    %c0_7 = arith.constant 0 : index
    %c0_8 = arith.constant 0 : index
    %c0_9 = arith.constant 0 : index
    %11 = vector.load %arg18[%c0_7, %c0_8, %c0_9] : memref<1x16x128xf32, #tpu.memory_space<vmem>>, vector<1x16x128xf32>
    tpu.vector_store %arg18[%c0_7, %c0_8, %c0_9], %10 {strides = array<i32>} : memref<1x16x128xf32, #tpu.memory_space<vmem>>, vector<1x16x128xf32>,
    %c0_10 = arith.constant 0 : index
    %c0_11 = arith.constant 0 : index
    %12 = vector.load %arg4[%c0_10, %c0_11] : memref<32x128xbf16, #tpu.memory_space<vmem>>, vector<32x128xbf16>
    %c0_12 = arith.constant 0 : index
    %c0_13 = arith.constant 0 : index
    %13 = vector.load %arg6[%c0_12, %c0_13] : memref<64x128xbf16, #tpu.memory_space<vmem>>, vector<64x128xbf16>
    %c0_14 = arith.constant 0 : index
    %c0_15 = arith.constant 0 : index
    %14 = vector.load %arg7[%c0_14, %c0_15] : memref<1x128xf32, #tpu.memory_space<vmem>>, vector<1x128xf32>
    %c0_16 = arith.constant 0 : index
    %c0_17 = arith.constant 0 : index
    %15 = vector.load %arg14[%c0_16, %c0_17] : memref<1x32xf32, #tpu.memory_space<vmem>>, vector<1x32xf32>
    %c0_18 = arith.constant 0 : index
    %c0_19 = arith.constant 0 : index
    %16 = vector.load %arg15[%c0_18, %c0_19] : memref<1x32xf32, #tpu.memory_space<vmem>>, vector<1x32xf32>
    %c0_20 = arith.constant 0 : index
    %c0_21 = arith.constant 0 : index
    %17 = vector.load %arg16[%c0_20, %c0_21] : memref<1x32xf32, #tpu.memory_space<vmem>>, vector<1x32xf32>
    %c0_22 = arith.constant 0 : index
    %c0_23 = arith.constant 0 : index
    %18 = vector.load %arg17[%c0_22, %c0_23] : memref<1x32xf32, #tpu.memory_space<vmem>>, vector<1x32xf32>
    %c0_24 = arith.constant 0 : index
    %c0_25 = arith.constant 0 : index
    %c0_26 = arith.constant 0 : index
    %19 = vector.load %arg18[%c0_24, %c0_25, %c0_26] : memref<1x16x128xf32, #tpu.memory_space<vmem>>, vector<1x1x128xf32>
    %20 = vector.shape_cast %19 : vector<1x1x128xf32> to vector<1x128xf32>
    %21 = arith.truncf %15 : vector<1x32xf32> to vector<1x32xbf16>
    %cst_27 = arith.constant dense<0.000000e+00> : vector<1x128xf32>
    %22 = tpu.matmul %21, %12, %cst_27 {dimension_numbers = #tpu.dot_dimension_numbers<[1], [0], [0], [1], [0, 0, 1, 1], [], []>} : vector<1x32xbf16>, vector<32x128xbf16>, vector<1x128xf32> -> vector<1x128xf32>
    %23 = arith.addf %20, %22 : vector<1x128xf32>
    %24 = arith.negf %23 : vector<1x128xf32>
    %25 = math.exp %24 : vector<1x128xf32>
    %cst_28 = arith.constant 1.000000e+00 : f32
    %26 = vector.broadcast %cst_28 : f32 to vector<1x128xf32>
    %27 = arith.addf %26, %25 : vector<1x128xf32>
    %28 = arith.divf %26, %27 : vector<1x128xf32>
    %29 = math.tanh %23 : vector<1x128xf32>
    %30 = vector.extract_strided_slice %28 {offsets = [0, 0], sizes = [1, 32], strides = [1, 1]} : vector<1x128xf32> to vector<1x32xf32>
    %31 = vector.extract_strided_slice %28 {offsets = [0, 32], sizes = [1, 32], strides = [1, 1]} : vector<1x128xf32> to vector<1x32xf32>
    %32 = vector.extract_strided_slice %29 {offsets = [0, 64], sizes = [1, 32], strides = [1, 1]} : vector<1x128xf32> to vector<1x32xf32>
    %33 = vector.extract_strided_slice %28 {offsets = [0, 96], sizes = [1, 32], strides = [1, 1]} : vector<1x128xf32> to vector<1x32xf32>
    %34 = arith.mulf %31, %16 : vector<1x32xf32>
    %35 = arith.mulf %30, %32 : vector<1x32xf32>
    %36 = arith.addf %34, %35 : vector<1x32xf32>
    %37 = math.tanh %36 : vector<1x32xf32>
    %38 = arith.mulf %33, %37 : vector<1x32xf32>
    %39 = tpu.concatenate %38, %17 in 1 : vector<1x32xf32>, vector<1x32xf32> -> vector<1x64xf32>
    %40 = arith.truncf %39 : vector<1x64xf32> to vector<1x64xbf16>
    %cst_29 = arith.constant dense<0.000000e+00> : vector<1x128xf32>
    %41 = tpu.matmul %40, %13, %cst_29 {dimension_numbers = #tpu.dot_dimension_numbers<[1], [0], [0], [1], [0, 0, 1, 1], [], []>} : vector<1x64xbf16>, vector<64x128xbf16>, vector<1x128xf32> -> vector<1x128xf32>
    %42 = arith.addf %41, %14 : vector<1x128xf32>
    %43 = arith.negf %42 : vector<1x128xf32>
    %44 = math.exp %43 : vector<1x128xf32>
    %cst_30 = arith.constant 1.000000e+00 : f32
    %45 = vector.broadcast %cst_30 : f32 to vector<1x128xf32>
    %46 = arith.addf %45, %44 : vector<1x128xf32>
    %47 = arith.divf %45, %46 : vector<1x128xf32>
    %48 = math.tanh %42 : vector<1x128xf32>
    %49 = vector.extract_strided_slice %47 {offsets = [0, 0], sizes = [1, 32], strides = [1, 1]} : vector<1x128xf32> to vector<1x32xf32>
    %50 = vector.extract_strided_slice %47 {offsets = [0, 32], sizes = [1, 32], strides = [1, 1]} : vector<1x128xf32> to vector<1x32xf32>
    %51 = vector.extract_strided_slice %48 {offsets = [0, 64], sizes = [1, 32], strides = [1, 1]} : vector<1x128xf32> to vector<1x32xf32>
    %52 = vector.extract_strided_slice %47 {offsets = [0, 96], sizes = [1, 32], strides = [1, 1]} : vector<1x128xf32> to vector<1x32xf32>
    %53 = arith.mulf %50, %18 : vector<1x32xf32>
    %54 = arith.mulf %49, %51 : vector<1x32xf32>
    %55 = arith.addf %53, %54 : vector<1x32xf32>
    %56 = math.tanh %55 : vector<1x32xf32>
    %57 = arith.mulf %52, %56 : vector<1x32xf32>
    %c0_31 = arith.constant 0 : index
    %c0_32 = arith.constant 0 : index
    %c0_33 = arith.constant 0 : index
    %58 = vector.load %arg19[%c0_31, %c0_32, %c0_33] : memref<1x16x32xf32, #tpu.memory_space<vmem>>, vector<1x1x32xf32>
    %59 = vector.shape_cast %58 : vector<1x1x32xf32> to vector<1x32xf32>
    %60 = vector.shape_cast %57 : vector<1x32xf32> to vector<1x1x32xf32>
    tpu.vector_store %arg19[%c0_31, %c0_32, %c0_33], %60 {strides = array<i32>} : memref<1x16x32xf32, #tpu.memory_space<vmem>>, vector<1x1x32xf32>,
    %c0_34 = arith.constant 0 : index
    %c1 = arith.constant 1 : index
    %c0_35 = arith.constant 0 : index
    %61 = vector.load %arg18[%c0_34, %c1, %c0_35] : memref<1x16x128xf32, #tpu.memory_space<vmem>>, vector<1x1x128xf32>
    %62 = vector.shape_cast %61 : vector<1x1x128xf32> to vector<1x128xf32>
    %63 = arith.truncf %38 : vector<1x32xf32> to vector<1x32xbf16>
    %cst_36 = arith.constant dense<0.000000e+00> : vector<1x128xf32>
    %64 = tpu.matmul %63, %12, %cst_36 {dimension_numbers = #tpu.dot_dimension_numbers<[1], [0], [0], [1], [0, 0, 1, 1], [], []>} : vector<1x32xbf16>, vector<32x128xbf16>, vector<1x128xf32> -> vector<1x128xf32>
    %65 = arith.addf %62, %64 : vector<1x128xf32>
    %66 = arith.negf %65 : vector<1x128xf32>
    %67 = math.exp %66 : vector<1x128xf32>
    %cst_37 = arith.constant 1.000000e+00 : f32
    %68 = vector.broadcast %cst_37 : f32 to vector<1x128xf32>
    %69 = arith.addf %68, %67 : vector<1x128xf32>
    %70 = arith.divf %68, %69 : vector<1x128xf32>
    %71 = math.tanh %65 : vector<1x128xf32>
    %72 = vector.extract_strided_slice %70 {offsets = [0, 0], sizes = [1, 32], strides = [1, 1]} : vector<1x128xf32> to vector<1x32xf32>
    %73 = vector.extract_strided_slice %70 {offsets = [0, 32], sizes = [1, 32], strides = [1, 1]} : vector<1x128xf32> to vector<1x32xf32>
    %74 = vector.extract_strided_slice %71 {offsets = [0, 64], sizes = [1, 32], strides = [1, 1]} : vector<1x128xf32> to vector<1x32xf32>
    %75 = vector.extract_strided_slice %70 {offsets = [0, 96], sizes = [1, 32], strides = [1, 1]} : vector<1x128xf32> to vector<1x32xf32>
    %76 = arith.mulf %73, %36 : vector<1x32xf32>
    %77 = arith.mulf %72, %74 : vector<1x32xf32>
    %78 = arith.addf %76, %77 : vector<1x32xf32>
    %79 = math.tanh %78 : vector<1x32xf32>
    %80 = arith.mulf %75, %79 : vector<1x32xf32>
    %81 = tpu.concatenate %80, %57 in 1 : vector<1x32xf32>, vector<1x32xf32> -> vector<1x64xf32>
    %82 = arith.truncf %81 : vector<1x64xf32> to vector<1x64xbf16>
    %cst_38 = arith.constant dense<0.000000e+00> : vector<1x128xf32>
    %83 = tpu.matmul %82, %13, %cst_38 {dimension_numbers = #tpu.dot_dimension_numbers<[1], [0], [0], [1], [0, 0, 1, 1], [], []>} : vector<1x64xbf16>, vector<64x128xbf16>, vector<1x128xf32> -> vector<1x128xf32>
    %84 = arith.addf %83, %14 : vector<1x128xf32>
    %85 = arith.negf %84 : vector<1x128xf32>
    %86 = math.exp %85 : vector<1x128xf32>
    %cst_39 = arith.constant 1.000000e+00 : f32
    %87 = vector.broadcast %cst_39 : f32 to vector<1x128xf32>
    %88 = arith.addf %87, %86 : vector<1x128xf32>
    %89 = arith.divf %87, %88 : vector<1x128xf32>
    %90 = math.tanh %84 : vector<1x128xf32>
    %91 = vector.extract_strided_slice %89 {offsets = [0, 0], sizes = [1, 32], strides = [1, 1]} : vector<1x128xf32> to vector<1x32xf32>
    %92 = vector.extract_strided_slice %89 {offsets = [0, 32], sizes = [1, 32], strides = [1, 1]} : vector<1x128xf32> to vector<1x32xf32>
    %93 = vector.extract_strided_slice %90 {offsets = [0, 64], sizes = [1, 32], strides = [1, 1]} : vector<1x128xf32> to vector<1x32xf32>
    %94 = vector.extract_strided_slice %89 {offsets = [0, 96], sizes = [1, 32], strides = [1, 1]} : vector<1x128xf32> to vector<1x32xf32>
    %95 = arith.mulf %92, %55 : vector<1x32xf32>
    %96 = arith.mulf %91, %93 : vector<1x32xf32>
    %97 = arith.addf %95, %96 : vector<1x32xf32>
    %98 = math.tanh %97 : vector<1x32xf32>
    %99 = arith.mulf %94, %98 : vector<1x32xf32>
    %c0_40 = arith.constant 0 : index
    %c1_41 = arith.constant 1 : index
    %c0_42 = arith.constant 0 : index
    %100 = vector.load %arg19[%c0_40, %c1_41, %c0_42] : memref<1x16x32xf32, #tpu.memory_space<vmem>>, vector<1x1x32xf32>
    %101 = vector.shape_cast %100 : vector<1x1x32xf32> to vector<1x32xf32>
    %102 = vector.shape_cast %99 : vector<1x32xf32> to vector<1x1x32xf32>
    tpu.vector_store %arg19[%c0_40, %c1_41, %c0_42], %102 {strides = array<i32>} : memref<1x16x32xf32, #tpu.memory_space<vmem>>, vector<1x1x32xf32>,
    %c0_43 = arith.constant 0 : index
    %c2 = arith.constant 2 : index
    %c0_44 = arith.constant 0 : index
    %103 = vector.load %arg18[%c0_43, %c2, %c0_44] : memref<1x16x128xf32, #tpu.memory_space<vmem>>, vector<1x1x128xf32>
    %104 = vector.shape_cast %103 : vector<1x1x128xf32> to vector<1x128xf32>
    %105 = arith.truncf %80 : vector<1x32xf32> to vector<1x32xbf16>
    %cst_45 = arith.constant dense<0.000000e+00> : vector<1x128xf32>
    %106 = tpu.matmul %105, %12, %cst_45 {dimension_numbers = #tpu.dot_dimension_numbers<[1], [0], [0], [1], [0, 0, 1, 1], [], []>} : vector<1x32xbf16>, vector<32x128xbf16>, vector<1x128xf32> -> vector<1x128xf32>
    %107 = arith.addf %104, %106 : vector<1x128xf32>
    %108 = arith.negf %107 : vector<1x128xf32>
    %109 = math.exp %108 : vector<1x128xf32>
    %cst_46 = arith.constant 1.000000e+00 : f32
    %110 = vector.broadcast %cst_46 : f32 to vector<1x128xf32>
    %111 = arith.addf %110, %109 : vector<1x128xf32>
    %112 = arith.divf %110, %111 : vector<1x128xf32>
    %113 = math.tanh %107 : vector<1x128xf32>
    %114 = vector.extract_strided_slice %112 {offsets = [0, 0], sizes = [1, 32], strides = [1, 1]} : vector<1x128xf32> to vector<1x32xf32>
    %115 = vector.extract_strided_slice %112 {offsets = [0, 32], sizes = [1, 32], strides = [1, 1]} : vector<1x128xf32> to vector<1x32xf32>
    %116 = vector.extract_strided_slice %113 {offsets = [0, 64], sizes = [1, 32], strides = [1, 1]} : vector<1x128xf32> to vector<1x32xf32>
    %117 = vector.extract_strided_slice %112 {offsets = [0, 96], sizes = [1, 32], strides = [1, 1]} : vector<1x128xf32> to vector<1x32xf32>
    %118 = arith.mulf %115, %78 : vector<1x32xf32>
    %119 = arith.mulf %114, %116 : vector<1x32xf32>
    %120 = arith.addf %118, %119 : vector<1x32xf32>
    %121 = math.tanh %120 : vector<1x32xf32>
    %122 = arith.mulf %117, %121 : vector<1x32xf32>
    %123 = tpu.concatenate %122, %99 in 1 : vector<1x32xf32>, vector<1x32xf32> -> vector<1x64xf32>
    %124 = arith.truncf %123 : vector<1x64xf32> to vector<1x64xbf16>
    %cst_47 = arith.constant dense<0.000000e+00> : vector<1x128xf32>
    %125 = tpu.matmul %124, %13, %cst_47 {dimension_numbers = #tpu.dot_dimension_numbers<[1], [0], [0], [1], [0, 0, 1, 1], [], []>} : vector<1x64xbf16>, vector<64x128xbf16>, vector<1x128xf32> -> vector<1x128xf32>
    %126 = arith.addf %125, %14 : vector<1x128xf32>
    %127 = arith.negf %126 : vector<1x128xf32>
    %128 = math.exp %127 : vector<1x128xf32>
    %cst_48 = arith.constant 1.000000e+00 : f32
    %129 = vector.broadcast %cst_48 : f32 to vector<1x128xf32>
    %130 = arith.addf %129, %128 : vector<1x128xf32>
    %131 = arith.divf %129, %130 : vector<1x128xf32>
    %132 = math.tanh %126 : vector<1x128xf32>
    %133 = vector.extract_strided_slice %131 {offsets = [0, 0], sizes = [1, 32], strides = [1, 1]} : vector<1x128xf32> to vector<1x32xf32>
    %134 = vector.extract_strided_slice %131 {offsets = [0, 32], sizes = [1, 32], strides = [1, 1]} : vector<1x128xf32> to vector<1x32xf32>
    %135 = vector.extract_strided_slice %132 {offsets = [0, 64], sizes = [1, 32], strides = [1, 1]} : vector<1x128xf32> to vector<1x32xf32>
    %136 = vector.extract_strided_slice %131 {offsets = [0, 96], sizes = [1, 32], strides = [1, 1]} : vector<1x128xf32> to vector<1x32xf32>
    %137 = arith.mulf %134, %97 : vector<1x32xf32>
    %138 = arith.mulf %133, %135 : vector<1x32xf32>
    %139 = arith.addf %137, %138 : vector<1x32xf32>
    %140 = math.tanh %139 : vector<1x32xf32>
    %141 = arith.mulf %136, %140 : vector<1x32xf32>
    %c0_49 = arith.constant 0 : index
    %c2_50 = arith.constant 2 : index
    %c0_51 = arith.constant 0 : index
    %142 = vector.load %arg19[%c0_49, %c2_50, %c0_51] : memref<1x16x32xf32, #tpu.memory_space<vmem>>, vector<1x1x32xf32>
    %143 = vector.shape_cast %142 : vector<1x1x32xf32> to vector<1x32xf32>
    %144 = vector.shape_cast %141 : vector<1x32xf32> to vector<1x1x32xf32>
    tpu.vector_store %arg19[%c0_49, %c2_50, %c0_51], %144 {strides = array<i32>} : memref<1x16x32xf32, #tpu.memory_space<vmem>>, vector<1x1x32xf32>,
    %c0_52 = arith.constant 0 : index
    %c3 = arith.constant 3 : index
    %c0_53 = arith.constant 0 : index
    %145 = vector.load %arg18[%c0_52, %c3, %c0_53] : memref<1x16x128xf32, #tpu.memory_space<vmem>>, vector<1x1x128xf32>
    %146 = vector.shape_cast %145 : vector<1x1x128xf32> to vector<1x128xf32>
    %147 = arith.truncf %122 : vector<1x32xf32> to vector<1x32xbf16>
    %cst_54 = arith.constant dense<0.000000e+00> : vector<1x128xf32>
    %148 = tpu.matmul %147, %12, %cst_54 {dimension_numbers = #tpu.dot_dimension_numbers<[1], [0], [0], [1], [0, 0, 1, 1], [], []>} : vector<1x32xbf16>, vector<32x128xbf16>, vector<1x128xf32> -> vector<1x128xf32>
    %149 = arith.addf %146, %148 : vector<1x128xf32>
    %150 = arith.negf %149 : vector<1x128xf32>
    %151 = math.exp %150 : vector<1x128xf32>
    %cst_55 = arith.constant 1.000000e+00 : f32
    %152 = vector.broadcast %cst_55 : f32 to vector<1x128xf32>
    %153 = arith.addf %152, %151 : vector<1x128xf32>
    %154 = arith.divf %152, %153 : vector<1x128xf32>
    %155 = math.tanh %149 : vector<1x128xf32>
    %156 = vector.extract_strided_slice %154 {offsets = [0, 0], sizes = [1, 32], strides = [1, 1]} : vector<1x128xf32> to vector<1x32xf32>
    %157 = vector.extract_strided_slice %154 {offsets = [0, 32], sizes = [1, 32], strides = [1, 1]} : vector<1x128xf32> to vector<1x32xf32>
    %158 = vector.extract_strided_slice %155 {offsets = [0, 64], sizes = [1, 32], strides = [1, 1]} : vector<1x128xf32> to vector<1x32xf32>
    %159 = vector.extract_strided_slice %154 {offsets = [0, 96], sizes = [1, 32], strides = [1, 1]} : vector<1x128xf32> to vector<1x32xf32>
    %160 = arith.mulf %157, %120 : vector<1x32xf32>
    %161 = arith.mulf %156, %158 : vector<1x32xf32>
    %162 = arith.addf %160, %161 : vector<1x32xf32>
    %163 = math.tanh %162 : vector<1x32xf32>
    %164 = arith.mulf %159, %163 : vector<1x32xf32>
    %165 = tpu.concatenate %164, %141 in 1 : vector<1x32xf32>, vector<1x32xf32> -> vector<1x64xf32>
    %166 = arith.truncf %165 : vector<1x64xf32> to vector<1x64xbf16>
    %cst_56 = arith.constant dense<0.000000e+00> : vector<1x128xf32>
    %167 = tpu.matmul %166, %13, %cst_56 {dimension_numbers = #tpu.dot_dimension_numbers<[1], [0], [0], [1], [0, 0, 1, 1], [], []>} : vector<1x64xbf16>, vector<64x128xbf16>, vector<1x128xf32> -> vector<1x128xf32>
    %168 = arith.addf %167, %14 : vector<1x128xf32>
    %169 = arith.negf %168 : vector<1x128xf32>
    %170 = math.exp %169 : vector<1x128xf32>
    %cst_57 = arith.constant 1.000000e+00 : f32
    %171 = vector.broadcast %cst_57 : f32 to vector<1x128xf32>
    %172 = arith.addf %171, %170 : vector<1x128xf32>
    %173 = arith.divf %171, %172 : vector<1x128xf32>
    %174 = math.tanh %168 : vector<1x128xf32>
    %175 = vector.extract_strided_slice %173 {offsets = [0, 0], sizes = [1, 32], strides = [1, 1]} : vector<1x128xf32> to vector<1x32xf32>
    %176 = vector.extract_strided_slice %173 {offsets = [0, 32], sizes = [1, 32], strides = [1, 1]} : vector<1x128xf32> to vector<1x32xf32>
    %177 = vector.extract_strided_slice %174 {offsets = [0, 64], sizes = [1, 32], strides = [1, 1]} : vector<1x128xf32> to vector<1x32xf32>
    %178 = vector.extract_strided_slice %173 {offsets = [0, 96], sizes = [1, 32], strides = [1, 1]} : vector<1x128xf32> to vector<1x32xf32>
    %179 = arith.mulf %176, %139 : vector<1x32xf32>
    %180 = arith.mulf %175, %177 : vector<1x32xf32>
    %181 = arith.addf %179, %180 : vector<1x32xf32>
    %182 = math.tanh %181 : vector<1x32xf32>
    %183 = arith.mulf %178, %182 : vector<1x32xf32>
    %c0_58 = arith.constant 0 : index
    %c3_59 = arith.constant 3 : index
    %c0_60 = arith.constant 0 : index
    %184 = vector.load %arg19[%c0_58, %c3_59, %c0_60] : memref<1x16x32xf32, #tpu.memory_space<vmem>>, vector<1x1x32xf32>
    %185 = vector.shape_cast %184 : vector<1x1x32xf32> to vector<1x32xf32>
    %186 = vector.shape_cast %183 : vector<1x32xf32> to vector<1x1x32xf32>
    tpu.vector_store %arg19[%c0_58, %c3_59, %c0_60], %186 {strides = array<i32>} : memref<1x16x32xf32, #tpu.memory_space<vmem>>, vector<1x1x32xf32>,
    %c0_61 = arith.constant 0 : index
    %c4 = arith.constant 4 : index
    %c0_62 = arith.constant 0 : index
    %187 = vector.load %arg18[%c0_61, %c4, %c0_62] : memref<1x16x128xf32, #tpu.memory_space<vmem>>, vector<1x1x128xf32>
    %188 = vector.shape_cast %187 : vector<1x1x128xf32> to vector<1x128xf32>
    %189 = arith.truncf %164 : vector<1x32xf32> to vector<1x32xbf16>
    %cst_63 = arith.constant dense<0.000000e+00> : vector<1x128xf32>
    %190 = tpu.matmul %189, %12, %cst_63 {dimension_numbers = #tpu.dot_dimension_numbers<[1], [0], [0], [1], [0, 0, 1, 1], [], []>} : vector<1x32xbf16>, vector<32x128xbf16>, vector<1x128xf32> -> vector<1x128xf32>
    %191 = arith.addf %188, %190 : vector<1x128xf32>
    %192 = arith.negf %191 : vector<1x128xf32>
    %193 = math.exp %192 : vector<1x128xf32>
    %cst_64 = arith.constant 1.000000e+00 : f32
    %194 = vector.broadcast %cst_64 : f32 to vector<1x128xf32>
    %195 = arith.addf %194, %193 : vector<1x128xf32>
    %196 = arith.divf %194, %195 : vector<1x128xf32>
    %197 = math.tanh %191 : vector<1x128xf32>
    %198 = vector.extract_strided_slice %196 {offsets = [0, 0], sizes = [1, 32], strides = [1, 1]} : vector<1x128xf32> to vector<1x32xf32>
    %199 = vector.extract_strided_slice %196 {offsets = [0, 32], sizes = [1, 32], strides = [1, 1]} : vector<1x128xf32> to vector<1x32xf32>
    %200 = vector.extract_strided_slice %197 {offsets = [0, 64], sizes = [1, 32], strides = [1, 1]} : vector<1x128xf32> to vector<1x32xf32>
    %201 = vector.extract_strided_slice %196 {offsets = [0, 96], sizes = [1, 32], strides = [1, 1]} : vector<1x128xf32> to vector<1x32xf32>
    %202 = arith.mulf %199, %162 : vector<1x32xf32>
    %203 = arith.mulf %198, %200 : vector<1x32xf32>
    %204 = arith.addf %202, %203 : vector<1x32xf32>
    %205 = math.tanh %204 : vector<1x32xf32>
    %206 = arith.mulf %201, %205 : vector<1x32xf32>
    %207 = tpu.concatenate %206, %183 in 1 : vector<1x32xf32>, vector<1x32xf32> -> vector<1x64xf32>
    %208 = arith.truncf %207 : vector<1x64xf32> to vector<1x64xbf16>
    %cst_65 = arith.constant dense<0.000000e+00> : vector<1x128xf32>
    %209 = tpu.matmul %208, %13, %cst_65 {dimension_numbers = #tpu.dot_dimension_numbers<[1], [0], [0], [1], [0, 0, 1, 1], [], []>} : vector<1x64xbf16>, vector<64x128xbf16>, vector<1x128xf32> -> vector<1x128xf32>
    %210 = arith.addf %209, %14 : vector<1x128xf32>
    %211 = arith.negf %210 : vector<1x128xf32>
    %212 = math.exp %211 : vector<1x128xf32>
    %cst_66 = arith.constant 1.000000e+00 : f32
    %213 = vector.broadcast %cst_66 : f32 to vector<1x128xf32>
    %214 = arith.addf %213, %212 : vector<1x128xf32>
    %215 = arith.divf %213, %214 : vector<1x128xf32>
    %216 = math.tanh %210 : vector<1x128xf32>
    %217 = vector.extract_strided_slice %215 {offsets = [0, 0], sizes = [1, 32], strides = [1, 1]} : vector<1x128xf32> to vector<1x32xf32>
    %218 = vector.extract_strided_slice %215 {offsets = [0, 32], sizes = [1, 32], strides = [1, 1]} : vector<1x128xf32> to vector<1x32xf32>
    %219 = vector.extract_strided_slice %216 {offsets = [0, 64], sizes = [1, 32], strides = [1, 1]} : vector<1x128xf32> to vector<1x32xf32>
    %220 = vector.extract_strided_slice %215 {offsets = [0, 96], sizes = [1, 32], strides = [1, 1]} : vector<1x128xf32> to vector<1x32xf32>
    %221 = arith.mulf %218, %181 : vector<1x32xf32>
    %222 = arith.mulf %217, %219 : vector<1x32xf32>
    %223 = arith.addf %221, %222 : vector<1x32xf32>
    %224 = math.tanh %223 : vector<1x32xf32>
    %225 = arith.mulf %220, %224 : vector<1x32xf32>
    %c0_67 = arith.constant 0 : index
    %c4_68 = arith.constant 4 : index
    %c0_69 = arith.constant 0 : index
    %226 = vector.load %arg19[%c0_67, %c4_68, %c0_69] : memref<1x16x32xf32, #tpu.memory_space<vmem>>, vector<1x1x32xf32>
    %227 = vector.shape_cast %226 : vector<1x1x32xf32> to vector<1x32xf32>
    %228 = vector.shape_cast %225 : vector<1x32xf32> to vector<1x1x32xf32>
    tpu.vector_store %arg19[%c0_67, %c4_68, %c0_69], %228 {strides = array<i32>} : memref<1x16x32xf32, #tpu.memory_space<vmem>>, vector<1x1x32xf32>,
    %c0_70 = arith.constant 0 : index
    %c5 = arith.constant 5 : index
    %c0_71 = arith.constant 0 : index
    %229 = vector.load %arg18[%c0_70, %c5, %c0_71] : memref<1x16x128xf32, #tpu.memory_space<vmem>>, vector<1x1x128xf32>
    %230 = vector.shape_cast %229 : vector<1x1x128xf32> to vector<1x128xf32>
    %231 = arith.truncf %206 : vector<1x32xf32> to vector<1x32xbf16>
    %cst_72 = arith.constant dense<0.000000e+00> : vector<1x128xf32>
    %232 = tpu.matmul %231, %12, %cst_72 {dimension_numbers = #tpu.dot_dimension_numbers<[1], [0], [0], [1], [0, 0, 1, 1], [], []>} : vector<1x32xbf16>, vector<32x128xbf16>, vector<1x128xf32> -> vector<1x128xf32>
    %233 = arith.addf %230, %232 : vector<1x128xf32>
    %234 = arith.negf %233 : vector<1x128xf32>
    %235 = math.exp %234 : vector<1x128xf32>
    %cst_73 = arith.constant 1.000000e+00 : f32
    %236 = vector.broadcast %cst_73 : f32 to vector<1x128xf32>
    %237 = arith.addf %236, %235 : vector<1x128xf32>
    %238 = arith.divf %236, %237 : vector<1x128xf32>
    %239 = math.tanh %233 : vector<1x128xf32>
    %240 = vector.extract_strided_slice %238 {offsets = [0, 0], sizes = [1, 32], strides = [1, 1]} : vector<1x128xf32> to vector<1x32xf32>
    %241 = vector.extract_strided_slice %238 {offsets = [0, 32], sizes = [1, 32], strides = [1, 1]} : vector<1x128xf32> to vector<1x32xf32>
    %242 = vector.extract_strided_slice %239 {offsets = [0, 64], sizes = [1, 32], strides = [1, 1]} : vector<1x128xf32> to vector<1x32xf32>
    %243 = vector.extract_strided_slice %238 {offsets = [0, 96], sizes = [1, 32], strides = [1, 1]} : vector<1x128xf32> to vector<1x32xf32>
    %244 = arith.mulf %241, %204 : vector<1x32xf32>
    %245 = arith.mulf %240, %242 : vector<1x32xf32>
    %246 = arith.addf %244, %245 : vector<1x32xf32>
    %247 = math.tanh %246 : vector<1x32xf32>
    %248 = arith.mulf %243, %247 : vector<1x32xf32>
    %249 = tpu.concatenate %248, %225 in 1 : vector<1x32xf32>, vector<1x32xf32> -> vector<1x64xf32>
    %250 = arith.truncf %249 : vector<1x64xf32> to vector<1x64xbf16>
    %cst_74 = arith.constant dense<0.000000e+00> : vector<1x128xf32>
    %251 = tpu.matmul %250, %13, %cst_74 {dimension_numbers = #tpu.dot_dimension_numbers<[1], [0], [0], [1], [0, 0, 1, 1], [], []>} : vector<1x64xbf16>, vector<64x128xbf16>, vector<1x128xf32> -> vector<1x128xf32>
    %252 = arith.addf %251, %14 : vector<1x128xf32>
    %253 = arith.negf %252 : vector<1x128xf32>
    %254 = math.exp %253 : vector<1x128xf32>
    %cst_75 = arith.constant 1.000000e+00 : f32
    %255 = vector.broadcast %cst_75 : f32 to vector<1x128xf32>
    %256 = arith.addf %255, %254 : vector<1x128xf32>
    %257 = arith.divf %255, %256 : vector<1x128xf32>
    %258 = math.tanh %252 : vector<1x128xf32>
    %259 = vector.extract_strided_slice %257 {offsets = [0, 0], sizes = [1, 32], strides = [1, 1]} : vector<1x128xf32> to vector<1x32xf32>
    %260 = vector.extract_strided_slice %257 {offsets = [0, 32], sizes = [1, 32], strides = [1, 1]} : vector<1x128xf32> to vector<1x32xf32>
    %261 = vector.extract_strided_slice %258 {offsets = [0, 64], sizes = [1, 32], strides = [1, 1]} : vector<1x128xf32> to vector<1x32xf32>
    %262 = vector.extract_strided_slice %257 {offsets = [0, 96], sizes = [1, 32], strides = [1, 1]} : vector<1x128xf32> to vector<1x32xf32>
    %263 = arith.mulf %260, %223 : vector<1x32xf32>
    %264 = arith.mulf %259, %261 : vector<1x32xf32>
    %265 = arith.addf %263, %264 : vector<1x32xf32>
    %266 = math.tanh %265 : vector<1x32xf32>
    %267 = arith.mulf %262, %266 : vector<1x32xf32>
    %c0_76 = arith.constant 0 : index
    %c5_77 = arith.constant 5 : index
    %c0_78 = arith.constant 0 : index
    %268 = vector.load %arg19[%c0_76, %c5_77, %c0_78] : memref<1x16x32xf32, #tpu.memory_space<vmem>>, vector<1x1x32xf32>
    %269 = vector.shape_cast %268 : vector<1x1x32xf32> to vector<1x32xf32>
    %270 = vector.shape_cast %267 : vector<1x32xf32> to vector<1x1x32xf32>
    tpu.vector_store %arg19[%c0_76, %c5_77, %c0_78], %270 {strides = array<i32>} : memref<1x16x32xf32, #tpu.memory_space<vmem>>, vector<1x1x32xf32>,
    %c0_79 = arith.constant 0 : index
    %c6 = arith.constant 6 : index
    %c0_80 = arith.constant 0 : index
    %271 = vector.load %arg18[%c0_79, %c6, %c0_80] : memref<1x16x128xf32, #tpu.memory_space<vmem>>, vector<1x1x128xf32>
    %272 = vector.shape_cast %271 : vector<1x1x128xf32> to vector<1x128xf32>
    %273 = arith.truncf %248 : vector<1x32xf32> to vector<1x32xbf16>
    %cst_81 = arith.constant dense<0.000000e+00> : vector<1x128xf32>
    %274 = tpu.matmul %273, %12, %cst_81 {dimension_numbers = #tpu.dot_dimension_numbers<[1], [0], [0], [1], [0, 0, 1, 1], [], []>} : vector<1x32xbf16>, vector<32x128xbf16>, vector<1x128xf32> -> vector<1x128xf32>
    %275 = arith.addf %272, %274 : vector<1x128xf32>
    %276 = arith.negf %275 : vector<1x128xf32>
    %277 = math.exp %276 : vector<1x128xf32>
    %cst_82 = arith.constant 1.000000e+00 : f32
    %278 = vector.broadcast %cst_82 : f32 to vector<1x128xf32>
    %279 = arith.addf %278, %277 : vector<1x128xf32>
    %280 = arith.divf %278, %279 : vector<1x128xf32>
    %281 = math.tanh %275 : vector<1x128xf32>
    %282 = vector.extract_strided_slice %280 {offsets = [0, 0], sizes = [1, 32], strides = [1, 1]} : vector<1x128xf32> to vector<1x32xf32>
    %283 = vector.extract_strided_slice %280 {offsets = [0, 32], sizes = [1, 32], strides = [1, 1]} : vector<1x128xf32> to vector<1x32xf32>
    %284 = vector.extract_strided_slice %281 {offsets = [0, 64], sizes = [1, 32], strides = [1, 1]} : vector<1x128xf32> to vector<1x32xf32>
    %285 = vector.extract_strided_slice %280 {offsets = [0, 96], sizes = [1, 32], strides = [1, 1]} : vector<1x128xf32> to vector<1x32xf32>
    %286 = arith.mulf %283, %246 : vector<1x32xf32>
    %287 = arith.mulf %282, %284 : vector<1x32xf32>
    %288 = arith.addf %286, %287 : vector<1x32xf32>
    %289 = math.tanh %288 : vector<1x32xf32>
    %290 = arith.mulf %285, %289 : vector<1x32xf32>
    %291 = tpu.concatenate %290, %267 in 1 : vector<1x32xf32>, vector<1x32xf32> -> vector<1x64xf32>
    %292 = arith.truncf %291 : vector<1x64xf32> to vector<1x64xbf16>
    %cst_83 = arith.constant dense<0.000000e+00> : vector<1x128xf32>
    %293 = tpu.matmul %292, %13, %cst_83 {dimension_numbers = #tpu.dot_dimension_numbers<[1], [0], [0], [1], [0, 0, 1, 1], [], []>} : vector<1x64xbf16>, vector<64x128xbf16>, vector<1x128xf32> -> vector<1x128xf32>
    %294 = arith.addf %293, %14 : vector<1x128xf32>
    %295 = arith.negf %294 : vector<1x128xf32>
    %296 = math.exp %295 : vector<1x128xf32>
    %cst_84 = arith.constant 1.000000e+00 : f32
    %297 = vector.broadcast %cst_84 : f32 to vector<1x128xf32>
    %298 = arith.addf %297, %296 : vector<1x128xf32>
    %299 = arith.divf %297, %298 : vector<1x128xf32>
    %300 = math.tanh %294 : vector<1x128xf32>
    %301 = vector.extract_strided_slice %299 {offsets = [0, 0], sizes = [1, 32], strides = [1, 1]} : vector<1x128xf32> to vector<1x32xf32>
    %302 = vector.extract_strided_slice %299 {offsets = [0, 32], sizes = [1, 32], strides = [1, 1]} : vector<1x128xf32> to vector<1x32xf32>
    %303 = vector.extract_strided_slice %300 {offsets = [0, 64], sizes = [1, 32], strides = [1, 1]} : vector<1x128xf32> to vector<1x32xf32>
    %304 = vector.extract_strided_slice %299 {offsets = [0, 96], sizes = [1, 32], strides = [1, 1]} : vector<1x128xf32> to vector<1x32xf32>
    %305 = arith.mulf %302, %265 : vector<1x32xf32>
    %306 = arith.mulf %301, %303 : vector<1x32xf32>
    %307 = arith.addf %305, %306 : vector<1x32xf32>
    %308 = math.tanh %307 : vector<1x32xf32>
    %309 = arith.mulf %304, %308 : vector<1x32xf32>
    %c0_85 = arith.constant 0 : index
    %c6_86 = arith.constant 6 : index
    %c0_87 = arith.constant 0 : index
    %310 = vector.load %arg19[%c0_85, %c6_86, %c0_87] : memref<1x16x32xf32, #tpu.memory_space<vmem>>, vector<1x1x32xf32>
    %311 = vector.shape_cast %310 : vector<1x1x32xf32> to vector<1x32xf32>
    %312 = vector.shape_cast %309 : vector<1x32xf32> to vector<1x1x32xf32>
    tpu.vector_store %arg19[%c0_85, %c6_86, %c0_87], %312 {strides = array<i32>} : memref<1x16x32xf32, #tpu.memory_space<vmem>>, vector<1x1x32xf32>,
    %c0_88 = arith.constant 0 : index
    %c7 = arith.constant 7 : index
    %c0_89 = arith.constant 0 : index
    %313 = vector.load %arg18[%c0_88, %c7, %c0_89] : memref<1x16x128xf32, #tpu.memory_space<vmem>>, vector<1x1x128xf32>
    %314 = vector.shape_cast %313 : vector<1x1x128xf32> to vector<1x128xf32>
    %315 = arith.truncf %290 : vector<1x32xf32> to vector<1x32xbf16>
    %cst_90 = arith.constant dense<0.000000e+00> : vector<1x128xf32>
    %316 = tpu.matmul %315, %12, %cst_90 {dimension_numbers = #tpu.dot_dimension_numbers<[1], [0], [0], [1], [0, 0, 1, 1], [], []>} : vector<1x32xbf16>, vector<32x128xbf16>, vector<1x128xf32> -> vector<1x128xf32>
    %317 = arith.addf %314, %316 : vector<1x128xf32>
    %318 = arith.negf %317 : vector<1x128xf32>
    %319 = math.exp %318 : vector<1x128xf32>
    %cst_91 = arith.constant 1.000000e+00 : f32
    %320 = vector.broadcast %cst_91 : f32 to vector<1x128xf32>
    %321 = arith.addf %320, %319 : vector<1x128xf32>
    %322 = arith.divf %320, %321 : vector<1x128xf32>
    %323 = math.tanh %317 : vector<1x128xf32>
    %324 = vector.extract_strided_slice %322 {offsets = [0, 0], sizes = [1, 32], strides = [1, 1]} : vector<1x128xf32> to vector<1x32xf32>
    %325 = vector.extract_strided_slice %322 {offsets = [0, 32], sizes = [1, 32], strides = [1, 1]} : vector<1x128xf32> to vector<1x32xf32>
    %326 = vector.extract_strided_slice %323 {offsets = [0, 64], sizes = [1, 32], strides = [1, 1]} : vector<1x128xf32> to vector<1x32xf32>
    %327 = vector.extract_strided_slice %322 {offsets = [0, 96], sizes = [1, 32], strides = [1, 1]} : vector<1x128xf32> to vector<1x32xf32>
    %328 = arith.mulf %325, %288 : vector<1x32xf32>
    %329 = arith.mulf %324, %326 : vector<1x32xf32>
    %330 = arith.addf %328, %329 : vector<1x32xf32>
    %331 = math.tanh %330 : vector<1x32xf32>
    %332 = arith.mulf %327, %331 : vector<1x32xf32>
    %333 = tpu.concatenate %332, %309 in 1 : vector<1x32xf32>, vector<1x32xf32> -> vector<1x64xf32>
    %334 = arith.truncf %333 : vector<1x64xf32> to vector<1x64xbf16>
    %cst_92 = arith.constant dense<0.000000e+00> : vector<1x128xf32>
    %335 = tpu.matmul %334, %13, %cst_92 {dimension_numbers = #tpu.dot_dimension_numbers<[1], [0], [0], [1], [0, 0, 1, 1], [], []>} : vector<1x64xbf16>, vector<64x128xbf16>, vector<1x128xf32> -> vector<1x128xf32>
    %336 = arith.addf %335, %14 : vector<1x128xf32>
    %337 = arith.negf %336 : vector<1x128xf32>
    %338 = math.exp %337 : vector<1x128xf32>
    %cst_93 = arith.constant 1.000000e+00 : f32
    %339 = vector.broadcast %cst_93 : f32 to vector<1x128xf32>
    %340 = arith.addf %339, %338 : vector<1x128xf32>
    %341 = arith.divf %339, %340 : vector<1x128xf32>
    %342 = math.tanh %336 : vector<1x128xf32>
    %343 = vector.extract_strided_slice %341 {offsets = [0, 0], sizes = [1, 32], strides = [1, 1]} : vector<1x128xf32> to vector<1x32xf32>
    %344 = vector.extract_strided_slice %341 {offsets = [0, 32], sizes = [1, 32], strides = [1, 1]} : vector<1x128xf32> to vector<1x32xf32>
    %345 = vector.extract_strided_slice %342 {offsets = [0, 64], sizes = [1, 32], strides = [1, 1]} : vector<1x128xf32> to vector<1x32xf32>
    %346 = vector.extract_strided_slice %341 {offsets = [0, 96], sizes = [1, 32], strides = [1, 1]} : vector<1x128xf32> to vector<1x32xf32>
    %347 = arith.mulf %344, %307 : vector<1x32xf32>
    %348 = arith.mulf %343, %345 : vector<1x32xf32>
    %349 = arith.addf %347, %348 : vector<1x32xf32>
    %350 = math.tanh %349 : vector<1x32xf32>
    %351 = arith.mulf %346, %350 : vector<1x32xf32>
    %c0_94 = arith.constant 0 : index
    %c7_95 = arith.constant 7 : index
    %c0_96 = arith.constant 0 : index
    %352 = vector.load %arg19[%c0_94, %c7_95, %c0_96] : memref<1x16x32xf32, #tpu.memory_space<vmem>>, vector<1x1x32xf32>
    %353 = vector.shape_cast %352 : vector<1x1x32xf32> to vector<1x32xf32>
    %354 = vector.shape_cast %351 : vector<1x32xf32> to vector<1x1x32xf32>
    tpu.vector_store %arg19[%c0_94, %c7_95, %c0_96], %354 {strides = array<i32>} : memref<1x16x32xf32, #tpu.memory_space<vmem>>, vector<1x1x32xf32>,
    %c0_97 = arith.constant 0 : index
    %c8 = arith.constant 8 : index
    %c0_98 = arith.constant 0 : index
    %355 = vector.load %arg18[%c0_97, %c8, %c0_98] : memref<1x16x128xf32, #tpu.memory_space<vmem>>, vector<1x1x128xf32>
    %356 = vector.shape_cast %355 : vector<1x1x128xf32> to vector<1x128xf32>
    %357 = arith.truncf %332 : vector<1x32xf32> to vector<1x32xbf16>
    %cst_99 = arith.constant dense<0.000000e+00> : vector<1x128xf32>
    %358 = tpu.matmul %357, %12, %cst_99 {dimension_numbers = #tpu.dot_dimension_numbers<[1], [0], [0], [1], [0, 0, 1, 1], [], []>} : vector<1x32xbf16>, vector<32x128xbf16>, vector<1x128xf32> -> vector<1x128xf32>
    %359 = arith.addf %356, %358 : vector<1x128xf32>
    %360 = arith.negf %359 : vector<1x128xf32>
    %361 = math.exp %360 : vector<1x128xf32>
    %cst_100 = arith.constant 1.000000e+00 : f32
    %362 = vector.broadcast %cst_100 : f32 to vector<1x128xf32>
    %363 = arith.addf %362, %361 : vector<1x128xf32>
    %364 = arith.divf %362, %363 : vector<1x128xf32>
    %365 = math.tanh %359 : vector<1x128xf32>
    %366 = vector.extract_strided_slice %364 {offsets = [0, 0], sizes = [1, 32], strides = [1, 1]} : vector<1x128xf32> to vector<1x32xf32>
    %367 = vector.extract_strided_slice %364 {offsets = [0, 32], sizes = [1, 32], strides = [1, 1]} : vector<1x128xf32> to vector<1x32xf32>
    %368 = vector.extract_strided_slice %365 {offsets = [0, 64], sizes = [1, 32], strides = [1, 1]} : vector<1x128xf32> to vector<1x32xf32>
    %369 = vector.extract_strided_slice %364 {offsets = [0, 96], sizes = [1, 32], strides = [1, 1]} : vector<1x128xf32> to vector<1x32xf32>
    %370 = arith.mulf %367, %330 : vector<1x32xf32>
    %371 = arith.mulf %366, %368 : vector<1x32xf32>
    %372 = arith.addf %370, %371 : vector<1x32xf32>
    %373 = math.tanh %372 : vector<1x32xf32>
    %374 = arith.mulf %369, %373 : vector<1x32xf32>
    %375 = tpu.concatenate %374, %351 in 1 : vector<1x32xf32>, vector<1x32xf32> -> vector<1x64xf32>
    %376 = arith.truncf %375 : vector<1x64xf32> to vector<1x64xbf16>
    %cst_101 = arith.constant dense<0.000000e+00> : vector<1x128xf32>
    %377 = tpu.matmul %376, %13, %cst_101 {dimension_numbers = #tpu.dot_dimension_numbers<[1], [0], [0], [1], [0, 0, 1, 1], [], []>} : vector<1x64xbf16>, vector<64x128xbf16>, vector<1x128xf32> -> vector<1x128xf32>
    %378 = arith.addf %377, %14 : vector<1x128xf32>
    %379 = arith.negf %378 : vector<1x128xf32>
    %380 = math.exp %379 : vector<1x128xf32>
    %cst_102 = arith.constant 1.000000e+00 : f32
    %381 = vector.broadcast %cst_102 : f32 to vector<1x128xf32>
    %382 = arith.addf %381, %380 : vector<1x128xf32>
    %383 = arith.divf %381, %382 : vector<1x128xf32>
    %384 = math.tanh %378 : vector<1x128xf32>
    %385 = vector.extract_strided_slice %383 {offsets = [0, 0], sizes = [1, 32], strides = [1, 1]} : vector<1x128xf32> to vector<1x32xf32>
    %386 = vector.extract_strided_slice %383 {offsets = [0, 32], sizes = [1, 32], strides = [1, 1]} : vector<1x128xf32> to vector<1x32xf32>
    %387 = vector.extract_strided_slice %384 {offsets = [0, 64], sizes = [1, 32], strides = [1, 1]} : vector<1x128xf32> to vector<1x32xf32>
    %388 = vector.extract_strided_slice %383 {offsets = [0, 96], sizes = [1, 32], strides = [1, 1]} : vector<1x128xf32> to vector<1x32xf32>
    %389 = arith.mulf %386, %349 : vector<1x32xf32>
    %390 = arith.mulf %385, %387 : vector<1x32xf32>
    %391 = arith.addf %389, %390 : vector<1x32xf32>
    %392 = math.tanh %391 : vector<1x32xf32>
    %393 = arith.mulf %388, %392 : vector<1x32xf32>
    %c0_103 = arith.constant 0 : index
    %c8_104 = arith.constant 8 : index
    %c0_105 = arith.constant 0 : index
    %394 = vector.load %arg19[%c0_103, %c8_104, %c0_105] : memref<1x16x32xf32, #tpu.memory_space<vmem>>, vector<1x1x32xf32>
    %395 = vector.shape_cast %394 : vector<1x1x32xf32> to vector<1x32xf32>
    %396 = vector.shape_cast %393 : vector<1x32xf32> to vector<1x1x32xf32>
    tpu.vector_store %arg19[%c0_103, %c8_104, %c0_105], %396 {strides = array<i32>} : memref<1x16x32xf32, #tpu.memory_space<vmem>>, vector<1x1x32xf32>,
    %c0_106 = arith.constant 0 : index
    %c9 = arith.constant 9 : index
    %c0_107 = arith.constant 0 : index
    %397 = vector.load %arg18[%c0_106, %c9, %c0_107] : memref<1x16x128xf32, #tpu.memory_space<vmem>>, vector<1x1x128xf32>
    %398 = vector.shape_cast %397 : vector<1x1x128xf32> to vector<1x128xf32>
    %399 = arith.truncf %374 : vector<1x32xf32> to vector<1x32xbf16>
    %cst_108 = arith.constant dense<0.000000e+00> : vector<1x128xf32>
    %400 = tpu.matmul %399, %12, %cst_108 {dimension_numbers = #tpu.dot_dimension_numbers<[1], [0], [0], [1], [0, 0, 1, 1], [], []>} : vector<1x32xbf16>, vector<32x128xbf16>, vector<1x128xf32> -> vector<1x128xf32>
    %401 = arith.addf %398, %400 : vector<1x128xf32>
    %402 = arith.negf %401 : vector<1x128xf32>
    %403 = math.exp %402 : vector<1x128xf32>
    %cst_109 = arith.constant 1.000000e+00 : f32
    %404 = vector.broadcast %cst_109 : f32 to vector<1x128xf32>
    %405 = arith.addf %404, %403 : vector<1x128xf32>
    %406 = arith.divf %404, %405 : vector<1x128xf32>
    %407 = math.tanh %401 : vector<1x128xf32>
    %408 = vector.extract_strided_slice %406 {offsets = [0, 0], sizes = [1, 32], strides = [1, 1]} : vector<1x128xf32> to vector<1x32xf32>
    %409 = vector.extract_strided_slice %406 {offsets = [0, 32], sizes = [1, 32], strides = [1, 1]} : vector<1x128xf32> to vector<1x32xf32>
    %410 = vector.extract_strided_slice %407 {offsets = [0, 64], sizes = [1, 32], strides = [1, 1]} : vector<1x128xf32> to vector<1x32xf32>
    %411 = vector.extract_strided_slice %406 {offsets = [0, 96], sizes = [1, 32], strides = [1, 1]} : vector<1x128xf32> to vector<1x32xf32>
    %412 = arith.mulf %409, %372 : vector<1x32xf32>
    %413 = arith.mulf %408, %410 : vector<1x32xf32>
    %414 = arith.addf %412, %413 : vector<1x32xf32>
    %415 = math.tanh %414 : vector<1x32xf32>
    %416 = arith.mulf %411, %415 : vector<1x32xf32>
    %417 = tpu.concatenate %416, %393 in 1 : vector<1x32xf32>, vector<1x32xf32> -> vector<1x64xf32>
    %418 = arith.truncf %417 : vector<1x64xf32> to vector<1x64xbf16>
    %cst_110 = arith.constant dense<0.000000e+00> : vector<1x128xf32>
    %419 = tpu.matmul %418, %13, %cst_110 {dimension_numbers = #tpu.dot_dimension_numbers<[1], [0], [0], [1], [0, 0, 1, 1], [], []>} : vector<1x64xbf16>, vector<64x128xbf16>, vector<1x128xf32> -> vector<1x128xf32>
    %420 = arith.addf %419, %14 : vector<1x128xf32>
    %421 = arith.negf %420 : vector<1x128xf32>
    %422 = math.exp %421 : vector<1x128xf32>
    %cst_111 = arith.constant 1.000000e+00 : f32
    %423 = vector.broadcast %cst_111 : f32 to vector<1x128xf32>
    %424 = arith.addf %423, %422 : vector<1x128xf32>
    %425 = arith.divf %423, %424 : vector<1x128xf32>
    %426 = math.tanh %420 : vector<1x128xf32>
    %427 = vector.extract_strided_slice %425 {offsets = [0, 0], sizes = [1, 32], strides = [1, 1]} : vector<1x128xf32> to vector<1x32xf32>
    %428 = vector.extract_strided_slice %425 {offsets = [0, 32], sizes = [1, 32], strides = [1, 1]} : vector<1x128xf32> to vector<1x32xf32>
    %429 = vector.extract_strided_slice %426 {offsets = [0, 64], sizes = [1, 32], strides = [1, 1]} : vector<1x128xf32> to vector<1x32xf32>
    %430 = vector.extract_strided_slice %425 {offsets = [0, 96], sizes = [1, 32], strides = [1, 1]} : vector<1x128xf32> to vector<1x32xf32>
    %431 = arith.mulf %428, %391 : vector<1x32xf32>
    %432 = arith.mulf %427, %429 : vector<1x32xf32>
    %433 = arith.addf %431, %432 : vector<1x32xf32>
    %434 = math.tanh %433 : vector<1x32xf32>
    %435 = arith.mulf %430, %434 : vector<1x32xf32>
    %c0_112 = arith.constant 0 : index
    %c9_113 = arith.constant 9 : index
    %c0_114 = arith.constant 0 : index
    %436 = vector.load %arg19[%c0_112, %c9_113, %c0_114] : memref<1x16x32xf32, #tpu.memory_space<vmem>>, vector<1x1x32xf32>
    %437 = vector.shape_cast %436 : vector<1x1x32xf32> to vector<1x32xf32>
    %438 = vector.shape_cast %435 : vector<1x32xf32> to vector<1x1x32xf32>
    tpu.vector_store %arg19[%c0_112, %c9_113, %c0_114], %438 {strides = array<i32>} : memref<1x16x32xf32, #tpu.memory_space<vmem>>, vector<1x1x32xf32>,
    %c0_115 = arith.constant 0 : index
    %c10 = arith.constant 10 : index
    %c0_116 = arith.constant 0 : index
    %439 = vector.load %arg18[%c0_115, %c10, %c0_116] : memref<1x16x128xf32, #tpu.memory_space<vmem>>, vector<1x1x128xf32>
    %440 = vector.shape_cast %439 : vector<1x1x128xf32> to vector<1x128xf32>
    %441 = arith.truncf %416 : vector<1x32xf32> to vector<1x32xbf16>
    %cst_117 = arith.constant dense<0.000000e+00> : vector<1x128xf32>
    %442 = tpu.matmul %441, %12, %cst_117 {dimension_numbers = #tpu.dot_dimension_numbers<[1], [0], [0], [1], [0, 0, 1, 1], [], []>} : vector<1x32xbf16>, vector<32x128xbf16>, vector<1x128xf32> -> vector<1x128xf32>
    %443 = arith.addf %440, %442 : vector<1x128xf32>
    %444 = arith.negf %443 : vector<1x128xf32>
    %445 = math.exp %444 : vector<1x128xf32>
    %cst_118 = arith.constant 1.000000e+00 : f32
    %446 = vector.broadcast %cst_118 : f32 to vector<1x128xf32>
    %447 = arith.addf %446, %445 : vector<1x128xf32>
    %448 = arith.divf %446, %447 : vector<1x128xf32>
    %449 = math.tanh %443 : vector<1x128xf32>
    %450 = vector.extract_strided_slice %448 {offsets = [0, 0], sizes = [1, 32], strides = [1, 1]} : vector<1x128xf32> to vector<1x32xf32>
    %451 = vector.extract_strided_slice %448 {offsets = [0, 32], sizes = [1, 32], strides = [1, 1]} : vector<1x128xf32> to vector<1x32xf32>
    %452 = vector.extract_strided_slice %449 {offsets = [0, 64], sizes = [1, 32], strides = [1, 1]} : vector<1x128xf32> to vector<1x32xf32>
    %453 = vector.extract_strided_slice %448 {offsets = [0, 96], sizes = [1, 32], strides = [1, 1]} : vector<1x128xf32> to vector<1x32xf32>
    %454 = arith.mulf %451, %414 : vector<1x32xf32>
    %455 = arith.mulf %450, %452 : vector<1x32xf32>
    %456 = arith.addf %454, %455 : vector<1x32xf32>
    %457 = math.tanh %456 : vector<1x32xf32>
    %458 = arith.mulf %453, %457 : vector<1x32xf32>
    %459 = tpu.concatenate %458, %435 in 1 : vector<1x32xf32>, vector<1x32xf32> -> vector<1x64xf32>
    %460 = arith.truncf %459 : vector<1x64xf32> to vector<1x64xbf16>
    %cst_119 = arith.constant dense<0.000000e+00> : vector<1x128xf32>
    %461 = tpu.matmul %460, %13, %cst_119 {dimension_numbers = #tpu.dot_dimension_numbers<[1], [0], [0], [1], [0, 0, 1, 1], [], []>} : vector<1x64xbf16>, vector<64x128xbf16>, vector<1x128xf32> -> vector<1x128xf32>
    %462 = arith.addf %461, %14 : vector<1x128xf32>
    %463 = arith.negf %462 : vector<1x128xf32>
    %464 = math.exp %463 : vector<1x128xf32>
    %cst_120 = arith.constant 1.000000e+00 : f32
    %465 = vector.broadcast %cst_120 : f32 to vector<1x128xf32>
    %466 = arith.addf %465, %464 : vector<1x128xf32>
    %467 = arith.divf %465, %466 : vector<1x128xf32>
    %468 = math.tanh %462 : vector<1x128xf32>
    %469 = vector.extract_strided_slice %467 {offsets = [0, 0], sizes = [1, 32], strides = [1, 1]} : vector<1x128xf32> to vector<1x32xf32>
    %470 = vector.extract_strided_slice %467 {offsets = [0, 32], sizes = [1, 32], strides = [1, 1]} : vector<1x128xf32> to vector<1x32xf32>
    %471 = vector.extract_strided_slice %468 {offsets = [0, 64], sizes = [1, 32], strides = [1, 1]} : vector<1x128xf32> to vector<1x32xf32>
    %472 = vector.extract_strided_slice %467 {offsets = [0, 96], sizes = [1, 32], strides = [1, 1]} : vector<1x128xf32> to vector<1x32xf32>
    %473 = arith.mulf %470, %433 : vector<1x32xf32>
    %474 = arith.mulf %469, %471 : vector<1x32xf32>
    %475 = arith.addf %473, %474 : vector<1x32xf32>
    %476 = math.tanh %475 : vector<1x32xf32>
    %477 = arith.mulf %472, %476 : vector<1x32xf32>
    %c0_121 = arith.constant 0 : index
    %c10_122 = arith.constant 10 : index
    %c0_123 = arith.constant 0 : index
    %478 = vector.load %arg19[%c0_121, %c10_122, %c0_123] : memref<1x16x32xf32, #tpu.memory_space<vmem>>, vector<1x1x32xf32>
    %479 = vector.shape_cast %478 : vector<1x1x32xf32> to vector<1x32xf32>
    %480 = vector.shape_cast %477 : vector<1x32xf32> to vector<1x1x32xf32>
    tpu.vector_store %arg19[%c0_121, %c10_122, %c0_123], %480 {strides = array<i32>} : memref<1x16x32xf32, #tpu.memory_space<vmem>>, vector<1x1x32xf32>,
    %c0_124 = arith.constant 0 : index
    %c11 = arith.constant 11 : index
    %c0_125 = arith.constant 0 : index
    %481 = vector.load %arg18[%c0_124, %c11, %c0_125] : memref<1x16x128xf32, #tpu.memory_space<vmem>>, vector<1x1x128xf32>
    %482 = vector.shape_cast %481 : vector<1x1x128xf32> to vector<1x128xf32>
    %483 = arith.truncf %458 : vector<1x32xf32> to vector<1x32xbf16>
    %cst_126 = arith.constant dense<0.000000e+00> : vector<1x128xf32>
    %484 = tpu.matmul %483, %12, %cst_126 {dimension_numbers = #tpu.dot_dimension_numbers<[1], [0], [0], [1], [0, 0, 1, 1], [], []>} : vector<1x32xbf16>, vector<32x128xbf16>, vector<1x128xf32> -> vector<1x128xf32>
    %485 = arith.addf %482, %484 : vector<1x128xf32>
    %486 = arith.negf %485 : vector<1x128xf32>
    %487 = math.exp %486 : vector<1x128xf32>
    %cst_127 = arith.constant 1.000000e+00 : f32
    %488 = vector.broadcast %cst_127 : f32 to vector<1x128xf32>
    %489 = arith.addf %488, %487 : vector<1x128xf32>
    %490 = arith.divf %488, %489 : vector<1x128xf32>
    %491 = math.tanh %485 : vector<1x128xf32>
    %492 = vector.extract_strided_slice %490 {offsets = [0, 0], sizes = [1, 32], strides = [1, 1]} : vector<1x128xf32> to vector<1x32xf32>
    %493 = vector.extract_strided_slice %490 {offsets = [0, 32], sizes = [1, 32], strides = [1, 1]} : vector<1x128xf32> to vector<1x32xf32>
    %494 = vector.extract_strided_slice %491 {offsets = [0, 64], sizes = [1, 32], strides = [1, 1]} : vector<1x128xf32> to vector<1x32xf32>
    %495 = vector.extract_strided_slice %490 {offsets = [0, 96], sizes = [1, 32], strides = [1, 1]} : vector<1x128xf32> to vector<1x32xf32>
    %496 = arith.mulf %493, %456 : vector<1x32xf32>
    %497 = arith.mulf %492, %494 : vector<1x32xf32>
    %498 = arith.addf %496, %497 : vector<1x32xf32>
    %499 = math.tanh %498 : vector<1x32xf32>
    %500 = arith.mulf %495, %499 : vector<1x32xf32>
    %501 = tpu.concatenate %500, %477 in 1 : vector<1x32xf32>, vector<1x32xf32> -> vector<1x64xf32>
    %502 = arith.truncf %501 : vector<1x64xf32> to vector<1x64xbf16>
    %cst_128 = arith.constant dense<0.000000e+00> : vector<1x128xf32>
    %503 = tpu.matmul %502, %13, %cst_128 {dimension_numbers = #tpu.dot_dimension_numbers<[1], [0], [0], [1], [0, 0, 1, 1], [], []>} : vector<1x64xbf16>, vector<64x128xbf16>, vector<1x128xf32> -> vector<1x128xf32>
    %504 = arith.addf %503, %14 : vector<1x128xf32>
    %505 = arith.negf %504 : vector<1x128xf32>
    %506 = math.exp %505 : vector<1x128xf32>
    %cst_129 = arith.constant 1.000000e+00 : f32
    %507 = vector.broadcast %cst_129 : f32 to vector<1x128xf32>
    %508 = arith.addf %507, %506 : vector<1x128xf32>
    %509 = arith.divf %507, %508 : vector<1x128xf32>
    %510 = math.tanh %504 : vector<1x128xf32>
    %511 = vector.extract_strided_slice %509 {offsets = [0, 0], sizes = [1, 32], strides = [1, 1]} : vector<1x128xf32> to vector<1x32xf32>
    %512 = vector.extract_strided_slice %509 {offsets = [0, 32], sizes = [1, 32], strides = [1, 1]} : vector<1x128xf32> to vector<1x32xf32>
    %513 = vector.extract_strided_slice %510 {offsets = [0, 64], sizes = [1, 32], strides = [1, 1]} : vector<1x128xf32> to vector<1x32xf32>
    %514 = vector.extract_strided_slice %509 {offsets = [0, 96], sizes = [1, 32], strides = [1, 1]} : vector<1x128xf32> to vector<1x32xf32>
    %515 = arith.mulf %512, %475 : vector<1x32xf32>
    %516 = arith.mulf %511, %513 : vector<1x32xf32>
    %517 = arith.addf %515, %516 : vector<1x32xf32>
    %518 = math.tanh %517 : vector<1x32xf32>
    %519 = arith.mulf %514, %518 : vector<1x32xf32>
    %c0_130 = arith.constant 0 : index
    %c11_131 = arith.constant 11 : index
    %c0_132 = arith.constant 0 : index
    %520 = vector.load %arg19[%c0_130, %c11_131, %c0_132] : memref<1x16x32xf32, #tpu.memory_space<vmem>>, vector<1x1x32xf32>
    %521 = vector.shape_cast %520 : vector<1x1x32xf32> to vector<1x32xf32>
    %522 = vector.shape_cast %519 : vector<1x32xf32> to vector<1x1x32xf32>
    tpu.vector_store %arg19[%c0_130, %c11_131, %c0_132], %522 {strides = array<i32>} : memref<1x16x32xf32, #tpu.memory_space<vmem>>, vector<1x1x32xf32>,
    %c0_133 = arith.constant 0 : index
    %c12 = arith.constant 12 : index
    %c0_134 = arith.constant 0 : index
    %523 = vector.load %arg18[%c0_133, %c12, %c0_134] : memref<1x16x128xf32, #tpu.memory_space<vmem>>, vector<1x1x128xf32>
    %524 = vector.shape_cast %523 : vector<1x1x128xf32> to vector<1x128xf32>
    %525 = arith.truncf %500 : vector<1x32xf32> to vector<1x32xbf16>
    %cst_135 = arith.constant dense<0.000000e+00> : vector<1x128xf32>
    %526 = tpu.matmul %525, %12, %cst_135 {dimension_numbers = #tpu.dot_dimension_numbers<[1], [0], [0], [1], [0, 0, 1, 1], [], []>} : vector<1x32xbf16>, vector<32x128xbf16>, vector<1x128xf32> -> vector<1x128xf32>
    %527 = arith.addf %524, %526 : vector<1x128xf32>
    %528 = arith.negf %527 : vector<1x128xf32>
    %529 = math.exp %528 : vector<1x128xf32>
    %cst_136 = arith.constant 1.000000e+00 : f32
    %530 = vector.broadcast %cst_136 : f32 to vector<1x128xf32>
    %531 = arith.addf %530, %529 : vector<1x128xf32>
    %532 = arith.divf %530, %531 : vector<1x128xf32>
    %533 = math.tanh %527 : vector<1x128xf32>
    %534 = vector.extract_strided_slice %532 {offsets = [0, 0], sizes = [1, 32], strides = [1, 1]} : vector<1x128xf32> to vector<1x32xf32>
    %535 = vector.extract_strided_slice %532 {offsets = [0, 32], sizes = [1, 32], strides = [1, 1]} : vector<1x128xf32> to vector<1x32xf32>
    %536 = vector.extract_strided_slice %533 {offsets = [0, 64], sizes = [1, 32], strides = [1, 1]} : vector<1x128xf32> to vector<1x32xf32>
    %537 = vector.extract_strided_slice %532 {offsets = [0, 96], sizes = [1, 32], strides = [1, 1]} : vector<1x128xf32> to vector<1x32xf32>
    %538 = arith.mulf %535, %498 : vector<1x32xf32>
    %539 = arith.mulf %534, %536 : vector<1x32xf32>
    %540 = arith.addf %538, %539 : vector<1x32xf32>
    %541 = math.tanh %540 : vector<1x32xf32>
    %542 = arith.mulf %537, %541 : vector<1x32xf32>
    %543 = tpu.concatenate %542, %519 in 1 : vector<1x32xf32>, vector<1x32xf32> -> vector<1x64xf32>
    %544 = arith.truncf %543 : vector<1x64xf32> to vector<1x64xbf16>
    %cst_137 = arith.constant dense<0.000000e+00> : vector<1x128xf32>
    %545 = tpu.matmul %544, %13, %cst_137 {dimension_numbers = #tpu.dot_dimension_numbers<[1], [0], [0], [1], [0, 0, 1, 1], [], []>} : vector<1x64xbf16>, vector<64x128xbf16>, vector<1x128xf32> -> vector<1x128xf32>
    %546 = arith.addf %545, %14 : vector<1x128xf32>
    %547 = arith.negf %546 : vector<1x128xf32>
    %548 = math.exp %547 : vector<1x128xf32>
    %cst_138 = arith.constant 1.000000e+00 : f32
    %549 = vector.broadcast %cst_138 : f32 to vector<1x128xf32>
    %550 = arith.addf %549, %548 : vector<1x128xf32>
    %551 = arith.divf %549, %550 : vector<1x128xf32>
    %552 = math.tanh %546 : vector<1x128xf32>
    %553 = vector.extract_strided_slice %551 {offsets = [0, 0], sizes = [1, 32], strides = [1, 1]} : vector<1x128xf32> to vector<1x32xf32>
    %554 = vector.extract_strided_slice %551 {offsets = [0, 32], sizes = [1, 32], strides = [1, 1]} : vector<1x128xf32> to vector<1x32xf32>
    %555 = vector.extract_strided_slice %552 {offsets = [0, 64], sizes = [1, 32], strides = [1, 1]} : vector<1x128xf32> to vector<1x32xf32>
    %556 = vector.extract_strided_slice %551 {offsets = [0, 96], sizes = [1, 32], strides = [1, 1]} : vector<1x128xf32> to vector<1x32xf32>
    %557 = arith.mulf %554, %517 : vector<1x32xf32>
    %558 = arith.mulf %553, %555 : vector<1x32xf32>
    %559 = arith.addf %557, %558 : vector<1x32xf32>
    %560 = math.tanh %559 : vector<1x32xf32>
    %561 = arith.mulf %556, %560 : vector<1x32xf32>
    %c0_139 = arith.constant 0 : index
    %c12_140 = arith.constant 12 : index
    %c0_141 = arith.constant 0 : index
    %562 = vector.load %arg19[%c0_139, %c12_140, %c0_141] : memref<1x16x32xf32, #tpu.memory_space<vmem>>, vector<1x1x32xf32>
    %563 = vector.shape_cast %562 : vector<1x1x32xf32> to vector<1x32xf32>
    %564 = vector.shape_cast %561 : vector<1x32xf32> to vector<1x1x32xf32>
    tpu.vector_store %arg19[%c0_139, %c12_140, %c0_141], %564 {strides = array<i32>} : memref<1x16x32xf32, #tpu.memory_space<vmem>>, vector<1x1x32xf32>,
    %c0_142 = arith.constant 0 : index
    %c13 = arith.constant 13 : index
    %c0_143 = arith.constant 0 : index
    %565 = vector.load %arg18[%c0_142, %c13, %c0_143] : memref<1x16x128xf32, #tpu.memory_space<vmem>>, vector<1x1x128xf32>
    %566 = vector.shape_cast %565 : vector<1x1x128xf32> to vector<1x128xf32>
    %567 = arith.truncf %542 : vector<1x32xf32> to vector<1x32xbf16>
    %cst_144 = arith.constant dense<0.000000e+00> : vector<1x128xf32>
    %568 = tpu.matmul %567, %12, %cst_144 {dimension_numbers = #tpu.dot_dimension_numbers<[1], [0], [0], [1], [0, 0, 1, 1], [], []>} : vector<1x32xbf16>, vector<32x128xbf16>, vector<1x128xf32> -> vector<1x128xf32>
    %569 = arith.addf %566, %568 : vector<1x128xf32>
    %570 = arith.negf %569 : vector<1x128xf32>
    %571 = math.exp %570 : vector<1x128xf32>
    %cst_145 = arith.constant 1.000000e+00 : f32
    %572 = vector.broadcast %cst_145 : f32 to vector<1x128xf32>
    %573 = arith.addf %572, %571 : vector<1x128xf32>
    %574 = arith.divf %572, %573 : vector<1x128xf32>
    %575 = math.tanh %569 : vector<1x128xf32>
    %576 = vector.extract_strided_slice %574 {offsets = [0, 0], sizes = [1, 32], strides = [1, 1]} : vector<1x128xf32> to vector<1x32xf32>
    %577 = vector.extract_strided_slice %574 {offsets = [0, 32], sizes = [1, 32], strides = [1, 1]} : vector<1x128xf32> to vector<1x32xf32>
    %578 = vector.extract_strided_slice %575 {offsets = [0, 64], sizes = [1, 32], strides = [1, 1]} : vector<1x128xf32> to vector<1x32xf32>
    %579 = vector.extract_strided_slice %574 {offsets = [0, 96], sizes = [1, 32], strides = [1, 1]} : vector<1x128xf32> to vector<1x32xf32>
    %580 = arith.mulf %577, %540 : vector<1x32xf32>
    %581 = arith.mulf %576, %578 : vector<1x32xf32>
    %582 = arith.addf %580, %581 : vector<1x32xf32>
    %583 = math.tanh %582 : vector<1x32xf32>
    %584 = arith.mulf %579, %583 : vector<1x32xf32>
    %585 = tpu.concatenate %584, %561 in 1 : vector<1x32xf32>, vector<1x32xf32> -> vector<1x64xf32>
    %586 = arith.truncf %585 : vector<1x64xf32> to vector<1x64xbf16>
    %cst_146 = arith.constant dense<0.000000e+00> : vector<1x128xf32>
    %587 = tpu.matmul %586, %13, %cst_146 {dimension_numbers = #tpu.dot_dimension_numbers<[1], [0], [0], [1], [0, 0, 1, 1], [], []>} : vector<1x64xbf16>, vector<64x128xbf16>, vector<1x128xf32> -> vector<1x128xf32>
    %588 = arith.addf %587, %14 : vector<1x128xf32>
    %589 = arith.negf %588 : vector<1x128xf32>
    %590 = math.exp %589 : vector<1x128xf32>
    %cst_147 = arith.constant 1.000000e+00 : f32
    %591 = vector.broadcast %cst_147 : f32 to vector<1x128xf32>
    %592 = arith.addf %591, %590 : vector<1x128xf32>
    %593 = arith.divf %591, %592 : vector<1x128xf32>
    %594 = math.tanh %588 : vector<1x128xf32>
    %595 = vector.extract_strided_slice %593 {offsets = [0, 0], sizes = [1, 32], strides = [1, 1]} : vector<1x128xf32> to vector<1x32xf32>
    %596 = vector.extract_strided_slice %593 {offsets = [0, 32], sizes = [1, 32], strides = [1, 1]} : vector<1x128xf32> to vector<1x32xf32>
    %597 = vector.extract_strided_slice %594 {offsets = [0, 64], sizes = [1, 32], strides = [1, 1]} : vector<1x128xf32> to vector<1x32xf32>
    %598 = vector.extract_strided_slice %593 {offsets = [0, 96], sizes = [1, 32], strides = [1, 1]} : vector<1x128xf32> to vector<1x32xf32>
    %599 = arith.mulf %596, %559 : vector<1x32xf32>
    %600 = arith.mulf %595, %597 : vector<1x32xf32>
    %601 = arith.addf %599, %600 : vector<1x32xf32>
    %602 = math.tanh %601 : vector<1x32xf32>
    %603 = arith.mulf %598, %602 : vector<1x32xf32>
    %c0_148 = arith.constant 0 : index
    %c13_149 = arith.constant 13 : index
    %c0_150 = arith.constant 0 : index
    %604 = vector.load %arg19[%c0_148, %c13_149, %c0_150] : memref<1x16x32xf32, #tpu.memory_space<vmem>>, vector<1x1x32xf32>
    %605 = vector.shape_cast %604 : vector<1x1x32xf32> to vector<1x32xf32>
    %606 = vector.shape_cast %603 : vector<1x32xf32> to vector<1x1x32xf32>
    tpu.vector_store %arg19[%c0_148, %c13_149, %c0_150], %606 {strides = array<i32>} : memref<1x16x32xf32, #tpu.memory_space<vmem>>, vector<1x1x32xf32>,
    %c0_151 = arith.constant 0 : index
    %c14 = arith.constant 14 : index
    %c0_152 = arith.constant 0 : index
    %607 = vector.load %arg18[%c0_151, %c14, %c0_152] : memref<1x16x128xf32, #tpu.memory_space<vmem>>, vector<1x1x128xf32>
    %608 = vector.shape_cast %607 : vector<1x1x128xf32> to vector<1x128xf32>
    %609 = arith.truncf %584 : vector<1x32xf32> to vector<1x32xbf16>
    %cst_153 = arith.constant dense<0.000000e+00> : vector<1x128xf32>
    %610 = tpu.matmul %609, %12, %cst_153 {dimension_numbers = #tpu.dot_dimension_numbers<[1], [0], [0], [1], [0, 0, 1, 1], [], []>} : vector<1x32xbf16>, vector<32x128xbf16>, vector<1x128xf32> -> vector<1x128xf32>
    %611 = arith.addf %608, %610 : vector<1x128xf32>
    %612 = arith.negf %611 : vector<1x128xf32>
    %613 = math.exp %612 : vector<1x128xf32>
    %cst_154 = arith.constant 1.000000e+00 : f32
    %614 = vector.broadcast %cst_154 : f32 to vector<1x128xf32>
    %615 = arith.addf %614, %613 : vector<1x128xf32>
    %616 = arith.divf %614, %615 : vector<1x128xf32>
    %617 = math.tanh %611 : vector<1x128xf32>
    %618 = vector.extract_strided_slice %616 {offsets = [0, 0], sizes = [1, 32], strides = [1, 1]} : vector<1x128xf32> to vector<1x32xf32>
    %619 = vector.extract_strided_slice %616 {offsets = [0, 32], sizes = [1, 32], strides = [1, 1]} : vector<1x128xf32> to vector<1x32xf32>
    %620 = vector.extract_strided_slice %617 {offsets = [0, 64], sizes = [1, 32], strides = [1, 1]} : vector<1x128xf32> to vector<1x32xf32>
    %621 = vector.extract_strided_slice %616 {offsets = [0, 96], sizes = [1, 32], strides = [1, 1]} : vector<1x128xf32> to vector<1x32xf32>
    %622 = arith.mulf %619, %582 : vector<1x32xf32>
    %623 = arith.mulf %618, %620 : vector<1x32xf32>
    %624 = arith.addf %622, %623 : vector<1x32xf32>
    %625 = math.tanh %624 : vector<1x32xf32>
    %626 = arith.mulf %621, %625 : vector<1x32xf32>
    %627 = tpu.concatenate %626, %603 in 1 : vector<1x32xf32>, vector<1x32xf32> -> vector<1x64xf32>
    %628 = arith.truncf %627 : vector<1x64xf32> to vector<1x64xbf16>
    %cst_155 = arith.constant dense<0.000000e+00> : vector<1x128xf32>
    %629 = tpu.matmul %628, %13, %cst_155 {dimension_numbers = #tpu.dot_dimension_numbers<[1], [0], [0], [1], [0, 0, 1, 1], [], []>} : vector<1x64xbf16>, vector<64x128xbf16>, vector<1x128xf32> -> vector<1x128xf32>
    %630 = arith.addf %629, %14 : vector<1x128xf32>
    %631 = arith.negf %630 : vector<1x128xf32>
    %632 = math.exp %631 : vector<1x128xf32>
    %cst_156 = arith.constant 1.000000e+00 : f32
    %633 = vector.broadcast %cst_156 : f32 to vector<1x128xf32>
    %634 = arith.addf %633, %632 : vector<1x128xf32>
    %635 = arith.divf %633, %634 : vector<1x128xf32>
    %636 = math.tanh %630 : vector<1x128xf32>
    %637 = vector.extract_strided_slice %635 {offsets = [0, 0], sizes = [1, 32], strides = [1, 1]} : vector<1x128xf32> to vector<1x32xf32>
    %638 = vector.extract_strided_slice %635 {offsets = [0, 32], sizes = [1, 32], strides = [1, 1]} : vector<1x128xf32> to vector<1x32xf32>
    %639 = vector.extract_strided_slice %636 {offsets = [0, 64], sizes = [1, 32], strides = [1, 1]} : vector<1x128xf32> to vector<1x32xf32>
    %640 = vector.extract_strided_slice %635 {offsets = [0, 96], sizes = [1, 32], strides = [1, 1]} : vector<1x128xf32> to vector<1x32xf32>
    %641 = arith.mulf %638, %601 : vector<1x32xf32>
    %642 = arith.mulf %637, %639 : vector<1x32xf32>
    %643 = arith.addf %641, %642 : vector<1x32xf32>
    %644 = math.tanh %643 : vector<1x32xf32>
    %645 = arith.mulf %640, %644 : vector<1x32xf32>
    %c0_157 = arith.constant 0 : index
    %c14_158 = arith.constant 14 : index
    %c0_159 = arith.constant 0 : index
    %646 = vector.load %arg19[%c0_157, %c14_158, %c0_159] : memref<1x16x32xf32, #tpu.memory_space<vmem>>, vector<1x1x32xf32>
    %647 = vector.shape_cast %646 : vector<1x1x32xf32> to vector<1x32xf32>
    %648 = vector.shape_cast %645 : vector<1x32xf32> to vector<1x1x32xf32>
    tpu.vector_store %arg19[%c0_157, %c14_158, %c0_159], %648 {strides = array<i32>} : memref<1x16x32xf32, #tpu.memory_space<vmem>>, vector<1x1x32xf32>,
    %c0_160 = arith.constant 0 : index
    %c15 = arith.constant 15 : index
    %c0_161 = arith.constant 0 : index
    %649 = vector.load %arg18[%c0_160, %c15, %c0_161] : memref<1x16x128xf32, #tpu.memory_space<vmem>>, vector<1x1x128xf32>
    %650 = vector.shape_cast %649 : vector<1x1x128xf32> to vector<1x128xf32>
    %651 = arith.truncf %626 : vector<1x32xf32> to vector<1x32xbf16>
    %cst_162 = arith.constant dense<0.000000e+00> : vector<1x128xf32>
    %652 = tpu.matmul %651, %12, %cst_162 {dimension_numbers = #tpu.dot_dimension_numbers<[1], [0], [0], [1], [0, 0, 1, 1], [], []>} : vector<1x32xbf16>, vector<32x128xbf16>, vector<1x128xf32> -> vector<1x128xf32>
    %653 = arith.addf %650, %652 : vector<1x128xf32>
    %654 = arith.negf %653 : vector<1x128xf32>
    %655 = math.exp %654 : vector<1x128xf32>
    %cst_163 = arith.constant 1.000000e+00 : f32
    %656 = vector.broadcast %cst_163 : f32 to vector<1x128xf32>
    %657 = arith.addf %656, %655 : vector<1x128xf32>
    %658 = arith.divf %656, %657 : vector<1x128xf32>
    %659 = math.tanh %653 : vector<1x128xf32>
    %660 = vector.extract_strided_slice %658 {offsets = [0, 0], sizes = [1, 32], strides = [1, 1]} : vector<1x128xf32> to vector<1x32xf32>
    %661 = vector.extract_strided_slice %658 {offsets = [0, 32], sizes = [1, 32], strides = [1, 1]} : vector<1x128xf32> to vector<1x32xf32>
    %662 = vector.extract_strided_slice %659 {offsets = [0, 64], sizes = [1, 32], strides = [1, 1]} : vector<1x128xf32> to vector<1x32xf32>
    %663 = vector.extract_strided_slice %658 {offsets = [0, 96], sizes = [1, 32], strides = [1, 1]} : vector<1x128xf32> to vector<1x32xf32>
    %664 = arith.mulf %661, %624 : vector<1x32xf32>
    %665 = arith.mulf %660, %662 : vector<1x32xf32>
    %666 = arith.addf %664, %665 : vector<1x32xf32>
    %667 = math.tanh %666 : vector<1x32xf32>
    %668 = arith.mulf %663, %667 : vector<1x32xf32>
    %669 = tpu.concatenate %668, %645 in 1 : vector<1x32xf32>, vector<1x32xf32> -> vector<1x64xf32>
    %670 = arith.truncf %669 : vector<1x64xf32> to vector<1x64xbf16>
    %cst_164 = arith.constant dense<0.000000e+00> : vector<1x128xf32>
    %671 = tpu.matmul %670, %13, %cst_164 {dimension_numbers = #tpu.dot_dimension_numbers<[1], [0], [0], [1], [0, 0, 1, 1], [], []>} : vector<1x64xbf16>, vector<64x128xbf16>, vector<1x128xf32> -> vector<1x128xf32>
    %672 = arith.addf %671, %14 : vector<1x128xf32>
    %673 = arith.negf %672 : vector<1x128xf32>
    %674 = math.exp %673 : vector<1x128xf32>
    %cst_165 = arith.constant 1.000000e+00 : f32
    %675 = vector.broadcast %cst_165 : f32 to vector<1x128xf32>
    %676 = arith.addf %675, %674 : vector<1x128xf32>
    %677 = arith.divf %675, %676 : vector<1x128xf32>
    %678 = math.tanh %672 : vector<1x128xf32>
    %679 = vector.extract_strided_slice %677 {offsets = [0, 0], sizes = [1, 32], strides = [1, 1]} : vector<1x128xf32> to vector<1x32xf32>
    %680 = vector.extract_strided_slice %677 {offsets = [0, 32], sizes = [1, 32], strides = [1, 1]} : vector<1x128xf32> to vector<1x32xf32>
    %681 = vector.extract_strided_slice %678 {offsets = [0, 64], sizes = [1, 32], strides = [1, 1]} : vector<1x128xf32> to vector<1x32xf32>
    %682 = vector.extract_strided_slice %677 {offsets = [0, 96], sizes = [1, 32], strides = [1, 1]} : vector<1x128xf32> to vector<1x32xf32>
    %683 = arith.mulf %680, %643 : vector<1x32xf32>
    %684 = arith.mulf %679, %681 : vector<1x32xf32>
    %685 = arith.addf %683, %684 : vector<1x32xf32>
    %686 = math.tanh %685 : vector<1x32xf32>
    %687 = arith.mulf %682, %686 : vector<1x32xf32>
    %c0_166 = arith.constant 0 : index
    %c15_167 = arith.constant 15 : index
    %c0_168 = arith.constant 0 : index
    %688 = vector.load %arg19[%c0_166, %c15_167, %c0_168] : memref<1x16x32xf32, #tpu.memory_space<vmem>>, vector<1x1x32xf32>
    %689 = vector.shape_cast %688 : vector<1x1x32xf32> to vector<1x32xf32>
    %690 = vector.shape_cast %687 : vector<1x32xf32> to vector<1x1x32xf32>
    tpu.vector_store %arg19[%c0_166, %c15_167, %c0_168], %690 {strides = array<i32>} : memref<1x16x32xf32, #tpu.memory_space<vmem>>, vector<1x1x32xf32>,
    %c0_169 = arith.constant 0 : index
    %c0_170 = arith.constant 0 : index
    %691 = vector.load %arg14[%c0_169, %c0_170] : memref<1x32xf32, #tpu.memory_space<vmem>>, vector<1x32xf32>
    tpu.vector_store %arg14[%c0_169, %c0_170], %668 {strides = array<i32>} : memref<1x32xf32, #tpu.memory_space<vmem>>, vector<1x32xf32>,
    %c0_171 = arith.constant 0 : index
    %c0_172 = arith.constant 0 : index
    %692 = vector.load %arg15[%c0_171, %c0_172] : memref<1x32xf32, #tpu.memory_space<vmem>>, vector<1x32xf32>
    tpu.vector_store %arg15[%c0_171, %c0_172], %666 {strides = array<i32>} : memref<1x32xf32, #tpu.memory_space<vmem>>, vector<1x32xf32>,
    %c0_173 = arith.constant 0 : index
    %c0_174 = arith.constant 0 : index
    %693 = vector.load %arg16[%c0_173, %c0_174] : memref<1x32xf32, #tpu.memory_space<vmem>>, vector<1x32xf32>
    tpu.vector_store %arg16[%c0_173, %c0_174], %687 {strides = array<i32>} : memref<1x32xf32, #tpu.memory_space<vmem>>, vector<1x32xf32>,
    %c0_175 = arith.constant 0 : index
    %c0_176 = arith.constant 0 : index
    %694 = vector.load %arg17[%c0_175, %c0_176] : memref<1x32xf32, #tpu.memory_space<vmem>>, vector<1x32xf32>
    tpu.vector_store %arg17[%c0_175, %c0_176], %685 {strides = array<i32>} : memref<1x32xf32, #tpu.memory_space<vmem>>, vector<1x32xf32>,
    %c0_177 = arith.constant 0 : index
    %c0_178 = arith.constant 0 : index
    %c0_179 = arith.constant 0 : index
    %695 = vector.load %arg19[%c0_177, %c0_178, %c0_179] : memref<1x16x32xf32, #tpu.memory_space<vmem>>, vector<1x16x32xf32>
    %696 = vector.shape_cast %695 : vector<1x16x32xf32> to vector<16x32xf32>
    %cst_180 = arith.constant dense<0.000000e+00> : vector<16xf32>
    %697 = vector.multi_reduction <add>, %696, %cst_180 [1] : vector<16x32xf32> to vector<16xf32>
    %698 = vector.shape_cast %697 : vector<16xf32> to vector<16x1xf32>
    %cst_181 = arith.constant 3.200000e+01 : f32
    %699 = vector.broadcast %cst_181 : f32 to vector<16x1xf32>
    %700 = arith.divf %698, %699 : vector<16x1xf32>
    %701 = vector.broadcast %700 : vector<16x1xf32> to vector<16x32xf32>
    %702 = arith.subf %696, %701 : vector<16x32xf32>
    %703 = arith.mulf %702, %702 : vector<16x32xf32>
    %cst_182 = arith.constant dense<0.000000e+00> : vector<16xf32>
    %704 = vector.multi_reduction <add>, %703, %cst_182 [1] : vector<16x32xf32> to vector<16xf32>
    %705 = vector.shape_cast %704 : vector<16xf32> to vector<16x1xf32>
    %cst_183 = arith.constant 3.200000e+01 : f32
    %706 = vector.broadcast %cst_183 : f32 to vector<16x1xf32>
    %707 = arith.divf %705, %706 : vector<16x1xf32>
    %708 = vector.broadcast %700 : vector<16x1xf32> to vector<16x32xf32>
    %709 = arith.subf %696, %708 : vector<16x32xf32>
    %cst_184 = arith.constant 9.99999974E-6 : f32
    %710 = vector.broadcast %cst_184 : f32 to vector<16x1xf32>
    %711 = arith.addf %707, %710 : vector<16x1xf32>
    %712 = math.rsqrt %711 : vector<16x1xf32>
    %713 = vector.broadcast %712 : vector<16x1xf32> to vector<16x32xf32>
    %714 = arith.mulf %709, %713 : vector<16x32xf32>
    %c0_185 = arith.constant 0 : index
    %c0_186 = arith.constant 0 : index
    %715 = vector.load %arg8[%c0_185, %c0_186] : memref<1x32xf32, #tpu.memory_space<vmem>>, vector<1x32xf32>
    %716 = vector.broadcast %715 : vector<1x32xf32> to vector<16x32xf32>
    %717 = arith.mulf %714, %716 : vector<16x32xf32>
    %c0_187 = arith.constant 0 : index
    %c0_188 = arith.constant 0 : index
    %718 = vector.load %arg9[%c0_187, %c0_188] : memref<1x32xf32, #tpu.memory_space<vmem>>, vector<1x32xf32>
    %719 = vector.broadcast %718 : vector<1x32xf32> to vector<16x32xf32>
    %720 = arith.addf %717, %719 : vector<16x32xf32>
    %721 = vector.shape_cast %720 : vector<16x32xf32> to vector<1x16x32xf32>
    %c0_189 = arith.constant 0 : index
    %c0_190 = arith.constant 0 : index
    %c0_191 = arith.constant 0 : index
    %722 = vector.load %arg13[%c0_189, %c0_190, %c0_191] : memref<1x16x32xf32, #tpu.memory_space<vmem>>, vector<1x16x32xf32>
    tpu.vector_store %arg13[%c0_189, %c0_190, %c0_191], %721 {strides = array<i32>} : memref<1x16x32xf32, #tpu.memory_space<vmem>>, vector<1x16x32xf32>,
    %c0_192 = arith.constant 0 : index
    %c0_193 = arith.constant 0 : index
    %723 = vector.load %arg10[%c0_192, %c0_193] : memref<32x4xf32, #tpu.memory_space<vmem>>, vector<32x4xf32>
    %cst_194 = arith.constant dense<0.000000e+00> : vector<16x4xf32>
    %724 = tpu.matmul %720, %723, %cst_194 {dimension_numbers = #tpu.dot_dimension_numbers<[1], [0], [0], [1], [0, 0, 1, 1], [], []>} : vector<16x32xf32>, vector<32x4xf32>, vector<16x4xf32> -> vector<16x4xf32>
    %c0_195 = arith.constant 0 : index
    %c0_196 = arith.constant 0 : index
    %725 = vector.load %arg11[%c0_195, %c0_196] : memref<1x4xf32, #tpu.memory_space<vmem>>, vector<1x4xf32>
    %726 = vector.broadcast %725 : vector<1x4xf32> to vector<16x4xf32>
    %727 = arith.addf %724, %726 : vector<16x4xf32>
    %728 = arith.negf %727 : vector<16x4xf32>
    %729 = math.exp %728 : vector<16x4xf32>
    %cst_197 = arith.constant 1.000000e+00 : f32
    %730 = vector.broadcast %cst_197 : f32 to vector<16x4xf32>
    %731 = arith.addf %730, %729 : vector<16x4xf32>
    %732 = arith.divf %730, %731 : vector<16x4xf32>
    %733 = vector.shape_cast %732 : vector<16x4xf32> to vector<1x16x4xf32>
    %c0_198 = arith.constant 0 : index
    %c0_199 = arith.constant 0 : index
    %c0_200 = arith.constant 0 : index
    %734 = vector.load %arg12[%c0_198, %c0_199, %c0_200] : memref<1x16x4xf32, #tpu.memory_space<vmem>>, vector<1x16x4xf32>
    tpu.vector_store %arg12[%c0_198, %c0_199, %c0_200], %733 {strides = array<i32>} : memref<1x16x4xf32, #tpu.memory_space<vmem>>, vector<1x16x4xf32>,
    return
  }
  func.func @transform_0(%arg0: i32, %arg1: i32) -> (i32, i32, i32) {
    %c0_i32 = arith.constant 0 : i32
    %c0_i32_0 = arith.constant 0 : i32
    return %arg0, %arg1, %c0_i32 : i32, i32, i32
  }
  func.func @transform_1(%arg0: i32, %arg1: i32) -> (i32, i32) {
    %c0_i32 = arith.constant 0 : i32
    %c0_i32_0 = arith.constant 0 : i32
    %c0_i32_1 = arith.constant 0 : i32
    return %c0_i32, %c0_i32_0 : i32, i32
  }
  func.func @transform_2(%arg0: i32, %arg1: i32) -> (i32, i32) {
    %c0_i32 = arith.constant 0 : i32
    %c0_i32_0 = arith.constant 0 : i32
    %c0_i32_1 = arith.constant 0 : i32
    return %c0_i32, %c0_i32_0 : i32, i32
  }
  func.func @transform_3(%arg0: i32, %arg1: i32) -> (i32, i32) {
    %c0_i32 = arith.constant 0 : i32
    %c0_i32_0 = arith.constant 0 : i32
    %c0_i32_1 = arith.constant 0 : i32
    return %c0_i32, %c0_i32_0 : i32, i32
  }
  func.func @transform_4(%arg0: i32, %arg1: i32) -> (i32, i32) {
    %c0_i32 = arith.constant 0 : i32
    %c0_i32_0 = arith.constant 0 : i32
    %c0_i32_1 = arith.constant 0 : i32
    return %c0_i32, %c0_i32_0 : i32, i32
  }
  func.func @transform_5(%arg0: i32, %arg1: i32) -> (i32, i32) {
    %c0_i32 = arith.constant 0 : i32
    %c0_i32_0 = arith.constant 0 : i32
    %c0_i32_1 = arith.constant 0 : i32
    return %c0_i32, %c0_i32_0 : i32, i32
  }
  func.func @transform_6(%arg0: i32, %arg1: i32) -> (i32, i32) {
    %c0_i32 = arith.constant 0 : i32
    %c0_i32_0 = arith.constant 0 : i32
    %c0_i32_1 = arith.constant 0 : i32
    return %c0_i32, %c0_i32_0 : i32, i32
  }
  func.func @transform_7(%arg0: i32, %arg1: i32) -> (i32, i32) {
    %c0_i32 = arith.constant 0 : i32
    %c0_i32_0 = arith.constant 0 : i32
    %c0_i32_1 = arith.constant 0 : i32
    return %c0_i32, %c0_i32_0 : i32, i32
  }
  func.func @transform_8(%arg0: i32, %arg1: i32) -> (i32, i32) {
    %c0_i32 = arith.constant 0 : i32
    %c0_i32_0 = arith.constant 0 : i32
    %c0_i32_1 = arith.constant 0 : i32
    return %c0_i32, %c0_i32_0 : i32, i32
  }
  func.func @transform_9(%arg0: i32, %arg1: i32) -> (i32, i32) {
    %c0_i32 = arith.constant 0 : i32
    %c0_i32_0 = arith.constant 0 : i32
    %c0_i32_1 = arith.constant 0 : i32
    return %c0_i32, %c0_i32_0 : i32, i32
  }
  func.func @transform_10(%arg0: i32, %arg1: i32) -> (i32, i32, i32) {
    %c0_i32 = arith.constant 0 : i32
    %c0_i32_0 = arith.constant 0 : i32
    return %arg0, %arg1, %c0_i32 : i32, i32, i32
  }
  func.func @transform_11(%arg0: i32, %arg1: i32) -> (i32, i32, i32) {
    %c0_i32 = arith.constant 0 : i32
    %c0_i32_0 = arith.constant 0 : i32
    return %arg0, %arg1, %c0_i32 : i32, i32, i32
  }
}

</mosaic_0001>

<bundles_post_ra>
// kernel: lab8_lstm_forward.1
= control target key start
LH: loop header
LB: loop body
LE: loop exit
PB: predicated region body
PF: predicated region fallthrough
CT: control target
= control target key end

     0   :  { %s4318_s0 = inlined_call_operand.vmem [shape: bf16[2,32,16], index: 0, kind: input, shape index: {}]   ;;  %s4319_s1 = inlined_call_operand.vmem [shape: bf16[16,128], index: 1, kind: input, shape index: {}]   ;;  %s4320_s2 = inlined_call_operand.vmem [shape: bf16[32,128], index: 2, kind: input, shape index: {}]   ;;  %s4321_s3 = inlined_call_operand.vmem [shape: f32[1,128], index: 3, kind: input, shape index: {}]   ;;  %s4322_s4 = inlined_call_operand.vmem [shape: bf16[64,128], index: 4, kind: input, shape index: {}]   ;;  %s4323_s5 = inlined_call_operand.vmem [shape: f32[1,128], index: 5, kind: input, shape index: {}]   ;;  %s4324_s6 = inlined_call_operand.vmem [shape: f32[1,32], index: 6, kind: input, shape index: {}]   ;;  %s4325_s7 = inlined_call_operand.vmem [shape: f32[1,32], index: 7, kind: input, shape index: {}]   ;;  %s4326_s8 = inlined_call_operand.vmem [shape: f32[32,4], index: 8, kind: input, shape index: {}]   ;;  %s4327_s9 = inlined_call_operand.vmem [shape: f32[1,4], index: 9, kind: input, shape index: {}]   ;;  %s4328_s10 = inlined_call_operand.vmem [shape: f32[2,32,4], index: 10, kind: output, shape index: {0}]   ;;  %s4329_s11 = inlined_call_operand.hbm [shape: f32[2,32,32], index: 11, kind: output, shape index: {1}]  }
   0x1   :  { %4339 = sst [smem:[#allocation20_spill]] %s4327_s9 }
   0x2   :  { %17 = vsyncpa [#allocation9], 0 }
   0x3   :  { %19 = vsyncpa [#allocation9 + $0x1], 0  ;;  %s3540_s17 = smov 0   ;;  %s3542_s18 = smov 0  }
   0x4   :  { %s3544_s19 = smov 0   ;;  %s3546_s20 = smov 0  }
   0x5   :  { %s3548_s21 = smov 0   ;;  %s3550_s22 = smov 0  }
   0x6   :  { %s3552_s23 = smov 0   ;;  %s3554_s24 = smov 0  }
   0x7 LB: > { %4340 = sst [smem:[#allocation11_spill]] %s3443_s17  ;;  %s2877_s25 = sadd.s32 4294967295, %s3471_s24   ;;  %s3471_s24 = sphi %s3554_s24, %s25_s24   ;;  %s3467_s23 = sphi %s3552_s23, %s4360_s23   ;;  %s3463_s22 = sphi %s3550_s22, %s4359_s22   ;;  %s3459_s21 = sphi %s3548_s21, %s4358_s21   ;;  %s3455_s20 = sphi %s3546_s20, %s4357_s20   ;;  %s3451_s19 = sphi %s3544_s19, %s4356_s19   ;;  %s3447_s18 = sphi %s3542_s18, %s4362_s18   ;;  %s3443_s17 = sphi %s3540_s17, %s4361_s17  }
   0x8   : > { %4341 = sst [smem:[#allocation12_spill]] %s3451_s19  ;;  %s2878_s26 = sadd.s32 4294967294, %s3471_s24  }
   0x9   : > { %4342 = sst [smem:[#allocation13_spill]] %s3463_s22  ;;  %s34_s27 = sadd.s32 1, %s3463_s22 }
   0xa   : > { %4343 = sst [smem:[#allocation14_spill]] %s3467_s23  ;;  %p35_p0 = scmp.ge.s32.totalorder %s34_s27, 2 }
   0xb   : > { %4344 = sst [smem:[#allocation15_spill]] %s3471_s24  ;;  %s37_s28 = sadd.s32 1, %s3467_s23 }
   0xc   : > { %p301_p1 = scmp.ne.s32.totalorder %s3451_s19, %s3447_s18  ;;  %p302_p2 = scmp.eq.s32.totalorder %s2877_s25, 3 }
   0xd   : > { %s4364_s27 = smov (%p35_p0, %s34_s27), 0  ;;  %s4366_s28 = smov (!%p35_p0, %s37_s28), %s3467_s23 }
   0xe   : > { %4345 = sst [smem:[#allocation16_spill]] %s4364_s27  ;;  %s287_s29 = ssub.s32 %s3463_s22, %s4364_s27 }
   0xf   : > { %p3591_p3 = por %p302_p2, %p301_p1  ;;  %p39_p4 = scmp.ge.s32.totalorder %s4366_s28, 2 }
  0x10   : > { %p307_p5 = scmp.ne.s32.totalorder %s3447_s18, %s3443_s17  ;;  %p308_p6 = scmp.eq.s32.totalorder %s2878_s26, 3 }
  0x11   : > { %p2881_p7 = scmp.ge.s32.totalorder %s3471_s24, 1  ;;  %s4368_s28 = smov (%p39_p4, %s4366_s28), 0 }
  0x12   : > { %4347 = sst [smem:[#allocation17_spill]] %s4368_s28  ;;  %p3600_p8 = por %p308_p6, %p307_p5 }
  0x13   : > { %p366_p9 = scmp.lt.s32.totalorder %s3471_s24, 5  ;;  %s286_s13 = ssub.s32 %s3467_s23, %s4368_s28 }
  0x14   : > { %s4348_s12 = scalar_select %p3600_p8, 1, 0 }
  0x15   : > { %s291_s14 = sadd.s32 1, %s3451_s19  ;;  %s288_s15 = sor.u32 %s287_s29, %s286_s13 }
  0x16   : > { %4349 = sst [smem:[#allocation18_spill]] %s4348_s12  ;;  %p367_p10 = pnand %p2881_p7, %p366_p9 }
  0x17   : > { %p289_p11 = scmp.eq.s32.totalorder %s288_s15, 0  ;;  %s416_s25 = sand.u32 (!%p367_p10), 1, %s3447_s18  }
  0x18   : > { %370 = sbr.rel (%p367_p10) target bundleno = 10537 (0x2929), region = 60  ;;  %s3613_s26 = sshll.u32 (!%p367_p10), %s3455_s20, 1 }
  0x19   : > { %s3609_s16 = scalar_select %p289_p11, %s3451_s19, %s291_s14  }
  0x1a   : > { %s2882_s27 = sshll.u32 (!%p367_p10), %s416_s25, 4  ;;  %p420_p12 = scmp.lt.s32.totalorder (!%p367_p10), %s3459_s21, 1 }
  0x1b   : > { %4350 = sst [smem:[#allocation19_spill]] %s3609_s16  ;;  %p422_p13 = scmp.lt.s32.totalorder (!%p367_p10), %s3613_s26, 3 }
  0x1c   : > { %s3629_s9 = scalar_lea.vmem (!%p367_p10), [#allocation8], %s2882_s27  ;;  %p2889_p0 = scmp.ne.s32.totalorder (!%p367_p10), %s3455_s20, 0 }
  0x1d   : > { %s421_s29 = scalar_select %p420_p12, %s3459_s21, 1 }
  0x1e   : > { %s423_s13 = scalar_select %p422_p13, %s3613_s26, 3 }
  0x1f   : > { %s2884_s15 = sshll.u32 %s421_s29, 2  ;;  %444 = sbr.rel (%p2889_p0) target bundleno = 41 (0x29), region = 64 }
  0x20   : > { %s425_s14 = sadd.s32 %s2884_s15, %s423_s13 }
  0x21   : > { %s2885_s28 = sshll.u32 %s425_s14, 2  ;;  %s2888_s23 = sshll.u32 %s425_s14, 3 }
  0x22   : > { %s427_s19 = scalar_lea.vmem %s4318_s0, %s2885_s28  ;;  %s3627_s24 = scalar_lea.vmem %s4328_s10, %s2888_s23 }
  0x24   : > { %vm445_vm0 = vcmask 253952   ;;  %v3473_v0 = vmov 0.0  }
  0x25   : > { %446 = vst.msk [vmem:[#allocation2] sm:$0x1] %vm445_vm0, %v3473_v0 }
  0x26   : > { %447 = vst.msk [vmem:[#allocation3] sm:$0x1] %vm445_vm0, %v3473_v0 }
  0x27   : > { %448 = vst.msk [vmem:[#allocation4] sm:$0x1] %vm445_vm0, %v3473_v0 }
  0x28   : > { %449 = vst.msk [vmem:[#allocation5] sm:$0x1] %vm445_vm0, %v3473_v0 }
  0x29 PF: > { %v2998_v1 = vld [vmem:[%s4319_s1] sm:$0xff]  ;;  %v3638_v2 = vld [vmem:[%s4320_s2 + $0x8] sm:$0xff]  ;;  %vm469_vm1 = vcmask 130048   ;;  %vm520_vm2 = vcmask 261120   ;;  %s3474_s12 = smov 64   ;;  %s3475_s16 = smov 32  }
  0x2a   : > { %v2997_v3 = vld [vmem:[%s427_s19] sm:$0xff]  ;;  %480 = vmatpush.bf16.msra.mxu0 %v2998_v1  ;;  %530 = vmatpush.bf16.msra.mxu1 %v3638_v2  ;;  %v3667_v38 = vld [vmem:[%s4322_s4 + $0x18] sm:$0xff]  ;;  %v3673_v39 = vld [vmem:[%s4322_s4 + $0x10] sm:$0xff]  ;;  %vm615_vm7 = vcmask 523264   ;;  %s2755_s23 = sshll.u32 %s3629_s9, 4  ;;  %s2737_s27 = scalar_lea.sflag [#allocation9], %s416_s25  ;;  %s2756_s23 = int_to_ptr.vmem [resolvable:$true] %s2755_s23 }
  0x2b   : > { %v3643_v4 = vld [vmem:[%s4320_s2] sm:$0xff]  ;;  %694 = vmatpush.bf16.msra.mxu3 %v3638_v2  ;;  %623 = vmatpush.bf16.msra.mxu2 %v3667_v38  ;;  %v3681_v40 = vld [vmem:[%s4322_s4 + $0x8] sm:$0xff]  ;;  %s3397_s14 = scalar_lea.hbm %s4329_s11, 64 }
  0x2c   : > { %v502_v5 = vld [vmem:[#allocation2] sm:$0x1] }
  0x2d   : > { %2898 = vmatmul.msk.bf16.vlgmr.msra.gmra.mxu0 %vm469_vm1, %v2997_v3  ;;  %v507_v6 = vpack.c.bf16 %v502_v5, %v502_v5  ;;  %v3092_v7 = vld [vmem:[%s4321_s3] ss:$0 sm:$0xff]  ;;  %v3093_v17 = vld [vmem:[#allocation3] ss:$0 sm:$0xff] }
  0x2e   : > { %531 = vmatpush.bf16.msra.mxu1 %v3643_v4  ;;  %755 = vmatpush.bf16.msrb.mxu0 %v3667_v38  ;;  %v3094_v41 = vld [vmem:[#allocation4] ss:$0 sm:$0xff]  ;;  %v3717_v54 = vld [vmem:[%s4323_s5] sm:$0x1] }
  0x2f   : > { %695 = vmatpush.bf16.msra.mxu3 %v3643_v4  ;;  %624 = vmatpush.bf16.msra.mxu2 %v3673_v39  ;;  %v3693_v46 = vld [vmem:[%s4322_s4] sm:$0xff] }
  0x30   : > { %v3095_v47 = vld [vmem:[#allocation5] ss:$0 sm:$0xff] }
  0x31   : > { %2907 = vmatmul.msk.bf16.vlgmr.msra.gmra.mxu1 %vm520_vm2, %v507_v6 }
  0x32   : > { %820 = vmatpush.bf16.msrb.mxu1 %v3638_v2  ;;  %756 = vmatpush.bf16.msrb.mxu0 %v3673_v39 }
  0x33   : > { %881 = vmatpush.bf16.msrb.mxu3 %v3667_v38  ;;  %625 = vmatpush.bf16.msra.mxu2 %v3681_v40 }
  0x36   : > { %821 = vmatpush.bf16.msrb.mxu1 %v3643_v4  ;;  %757 = vmatpush.bf16.msrb.mxu0 %v3681_v40 }
  0x37   : > { %882 = vmatpush.bf16.msrb.mxu3 %v3673_v39  ;;  %626 = vmatpush.bf16.msra.mxu2 %v3693_v46 }
  0x3a   : > { %1072 = vmatpush.bf16.msra.mxu1 %v3638_v2  ;;  %758 = vmatpush.bf16.msrb.mxu0 %v3693_v46 }
  0x3b   : > { %883 = vmatpush.bf16.msrb.mxu3 %v3681_v40  ;;  %946 = vmatpush.bf16.msrb.mxu2 %v3638_v2 }
  0x3e   : > { %1073 = vmatpush.bf16.msra.mxu1 %v3643_v4  ;;  %1007 = vmatpush.bf16.msra.mxu0 %v3667_v38 }
  0x3f   : > { %884 = vmatpush.bf16.msrb.mxu3 %v3693_v46  ;;  %947 = vmatpush.bf16.msrb.mxu2 %v3643_v4 }
  0x42   : > { %1008 = vmatpush.bf16.msra.mxu0 %v3673_v39 }
  0x46   : > { %1009 = vmatpush.bf16.msra.mxu0 %v3681_v40 }
  0x4a   : > { %1010 = vmatpush.bf16.msra.mxu0 %v3693_v46 }
  0xaa   : > { %v482_v8 = vpop.f32.mrf.mxu0 }
  0xab   : > { %v483_v9 = vadd.f32 %v3092_v7, %v482_v8 }
  0xad   : > { %487 = vst [vmem:[#allocation6] sm:$0xff] %v483_v9 }
  0xae   : > { %v533_v10 = vpop.f32.mrf.mxu1 }
  0xb2   : > { %v484_v11 = vpop.f32.mrf.mxu0 }
  0xb3   : > { %v485_v12 = vadd.f32 %v3092_v7, %v484_v11 }
  0xb4   : > { %v506_v13 = vld [vmem:[#allocation6] sm:$0x1]  ;;  %v680_v57 = vld [vmem:[#allocation6 + $0x1] sm:$0x1] }
  0xb5   : > { %v537_v14 = vadd.f32 %v533_v10, %v506_v13  ;;  %488 = vst [vmem:[#allocation6 + $0x8] sm:$0xff] %v485_v12 }
  0xb6   : > { %v535_v15 = vpop.f32.mrf.mxu1 }
  0xb7   : > { %3099 = vtanh.f32 %v537_v14  ;;  %v2908_v18 = vmul.f32 -1.442695, %v537_v14 }
  0xb9   : > { %3101 = vpow2.f32 %v2908_v18 }
  0xbd   : > { %v3100_v16 = vpop.eup %3099 }
  0xbe   : > { %565 = vrot.lane.b32.xlu0 %v3100_v16, %s3474_s12 }
  0xbf   : > { %v3102_v19 = vpop.eup %3101 }
  0xc0   : > { %v541_v20 = vadd.f32 1.0, %v3102_v19 }
  0xc2   : > { %3103 = vrcp.f32 %v541_v20  ;;  %v553_v26 = vand.u32 2147483648, %v541_v20  ;;  %vm547_vm4 = vweird.f32 %v541_v20  ;;  %v551_v27 = vand.u32 2147483647, %v541_v20 }
  0xc4   : > { %v554_v29 = vor.u32 1.1754944e-38, %v553_v26  ;;  %vm552_vm6 = vcmp.eq.f32.partialorder %v551_v27, 8.507059e+37 }
  0xc6   : > { %560 = vrot.lane.b32.xlu0 %v3093_v17, %s3475_s16 }
  0xc8   : > { %v3104_v21 = vpop.eup %3103 }
  0xc9   : > { %v543_v22 = vmul.f32 %v3104_v21, %v541_v20  ;;  %vm548_vm3 = vweird.f32 %v3104_v21 }
  0xca   : > { %vm549_vm5 = vmor %vm547_vm4, %vm548_vm3 }
  0xcb   : > { %v544_v23 = vsub.f32 1.0, %v543_v22 }
  0xcd   : > { %v545_v24 = vmul.f32 %v3104_v21, %v544_v23 }
  0xcf   : > { %v546_v25 = vadd.f32 %v3104_v21, %v545_v24 }
  0xd1   : > { %v550_v28 = vsel %vm549_vm5, %v3104_v21, %v546_v25 }
  0xd2   : > { %v555_v31 = vsel %vm552_vm6, %v554_v29, %v550_v28 }
 0x130   : > { %v566_v30 = vpop.permute.xlu0 %565 }
 0x131   : > { %v568_v32 = vmul.f32 %v566_v30, %v555_v31 }
 0x133   : > { %570 = vrot.lane.b32.xlu1 %v568_v32, %s3475_s16 }
 0x138   : > { %v561_v33 = vpop.permute.xlu0 %560 }
 0x139   : > { %v563_v34 = vmul.f32 %v561_v33, %v555_v31 }
 0x1a5   : > { %v571_v35 = vpop.permute.xlu1 %570 }
 0x1a6   : > { %v3660_v36 = vadd.f32 %v571_v35, %v563_v34 }
 0x1a8   : > { %3105 = vtanh.f32 %v3660_v36 }
 0x1ae   : > { %v3106_v37 = vpop.eup %3105 }
 0x1af   : > { %576 = vrot.lane.b32.xlu1 %v3106_v37, %s3474_s12 }
 0x221   : > { %v577_v42 = vpop.permute.xlu1 %576 }
 0x222   : > { %v579_v43 = vmul.f32 %v577_v42, %v555_v31 }
 0x224   : > { %v3087_v44 = vpack.i.bf16 %v3094_v41, %v579_v43  ;;  %v681_v45 = vpack.c.bf16 %v579_v43, %v579_v43 }
 0x226   : > { %3088 = vrot.lane.b32.xlu2 %v3087_v44, %s3475_s16 }
 0x22e   : > { %683 = vrot.lane.b32.xlu2 %v681_v45, %s3475_s16 }
 0x236   : > { %654 = vrot.lane.b32.xlu2 %v3095_v47, %s3475_s16 }
 0x280   : > { %v3089_v48 = vpop.permute.xlu2 %3088 }
 0x281   : > { %v3091_v49 = vunpack.i.h.bf16 %v3089_v48  ;;  %v3090_v50 = vunpack.i.l.bf16 %v3089_v48 }
 0x283   : > { %v589_v51 = vsel %vm520_vm2, %v3090_v50, %v3091_v49 }
 0x284   : > { %v590_v52 = vpack.c.bf16 %v589_v51, %v589_v51 }
 0x286   : > { %2925 = vmatmul.msk.bf16.vlgmr.msra.gmra.mxu2 %vm615_vm7, %v590_v52 }
 0x287   : > { %1198 = vmatpush.bf16.msra.mxu2 %v3638_v2 }
 0x288   : > { %v684_v53 = vpop.permute.xlu2 %683 }
 0x289   : > { %2927 = vmatmul.msk.bf16.vlgmr.msra.gmra.mxu3 %vm520_vm2, %v684_v53 }
 0x28a   : > { %1133 = vmatpush.bf16.msra.mxu3 %v3667_v38 }
 0x28b   : > { %1199 = vmatpush.bf16.msra.mxu2 %v3643_v4 }
 0x28e   : > { %1134 = vmatpush.bf16.msra.mxu3 %v3673_v39 }
 0x290   : > { %v655_v32 = vpop.permute.xlu2 %654 }
 0x292   : > { %1135 = vmatpush.bf16.msra.mxu3 %v3681_v40 }
 0x296   : > { %1136 = vmatpush.bf16.msra.mxu3 %v3693_v46 }
 0x309   : > { %v628_v55 = vpop.f32.mrf.mxu2 }
 0x30a   : > { %v629_v56 = vadd.f32 %v628_v55, %v3717_v54 }
 0x30c   : > { %3107 = vtanh.f32 %v629_v56  ;;  %v697_v58 = vpop.f32.mrf.mxu3  ;;  %v2926_v0 = vmul.f32 -1.442695, %v629_v56  ;;  %v806_v56 = vld [vmem:[#allocation6 + $0x2] sm:$0x1] }
 0x30d   : > { %v701_v59 = vadd.f32 %v697_v58, %v680_v57 }
 0x30f   : > { %3109 = vtanh.f32 %v701_v59  ;;  %v2928_v1 = vmul.f32 -1.442695, %v701_v59 }
 0x310   : > { %3111 = vpow2.f32 %v2926_v0 }
 0x311   : > { %v630_v60 = vpop.f32.mrf.mxu2  ;;  %3113 = vpow2.f32 %v2928_v1 }
 0x312   : > { %v3108_v61 = vpop.eup %3107 }
 0x313   : > { %659 = vrot.lane.b32.xlu0 %v3108_v61, %s3474_s12 }
 0x314   : > { %v699_v62 = vpop.f32.mrf.mxu3 }
 0x315   : > { %v3110_v63 = vpop.eup %3109 }
 0x316   : > { %724 = vrot.lane.b32.xlu1 %v3110_v63, %s3474_s12  ;;  %v3112_v3 = vpop.eup %3111 }
 0x317   : > { %v3114_v5 = vpop.eup %3113  ;;  %v635_v6 = vadd.f32 1.0, %v3112_v3 }
 0x318   : > { %v705_v7 = vadd.f32 1.0, %v3114_v5 }
 0x319   : > { %3115 = vrcp.f32 %v635_v6  ;;  %v647_v17 = vand.u32 2147483648, %v635_v6  ;;  %vm641_vm9 = vweird.f32 %v635_v6  ;;  %v645_v18 = vand.u32 2147483647, %v635_v6 }
 0x31a   : > { %3117 = vrcp.f32 %v705_v7  ;;  %v717_v21 = vand.u32 2147483648, %v705_v7  ;;  %vm711_vm12 = vweird.f32 %v705_v7  ;;  %v715_v23 = vand.u32 2147483647, %v705_v7 }
 0x31b   : > { %v648_v22 = vor.u32 1.1754944e-38, %v647_v17  ;;  %vm646_vm13 = vcmp.eq.f32.partialorder %v645_v18, 8.507059e+37 }
 0x31c   : > { %v718_v28 = vor.u32 1.1754944e-38, %v717_v21  ;;  %vm716_vm15 = vcmp.eq.f32.partialorder %v715_v23, 8.507059e+37 }
 0x31f   : > { %v3116_v8 = vpop.eup %3115 }
 0x320   : > { %v3118_v9 = vpop.eup %3117  ;;  %v637_v10 = vmul.f32 %v3116_v8, %v635_v6  ;;  %vm642_vm8 = vweird.f32 %v3116_v8 }
 0x321   : > { %v707_v11 = vmul.f32 %v3118_v9, %v705_v7  ;;  %vm643_vm10 = vmor %vm641_vm9, %vm642_vm8  ;;  %vm712_vm11 = vweird.f32 %v3118_v9 }
 0x322   : > { %v638_v12 = vsub.f32 1.0, %v637_v10  ;;  %vm713_vm14 = vmor %vm711_vm12, %vm712_vm11 }
 0x323   : > { %v708_v13 = vsub.f32 1.0, %v707_v11 }
 0x324   : > { %v639_v14 = vmul.f32 %v3116_v8, %v638_v12 }
 0x325   : > { %v709_v15 = vmul.f32 %v3118_v9, %v708_v13 }
 0x326   : > { %v640_v16 = vadd.f32 %v3116_v8, %v639_v14 }
 0x327   : > { %v710_v19 = vadd.f32 %v3118_v9, %v709_v15 }
 0x328   : > { %v644_v20 = vsel %vm643_vm10, %v3116_v8, %v640_v16 }
 0x329   : > { %v649_v24 = vsel %vm646_vm13, %v648_v22, %v644_v20  ;;  %v714_v26 = vsel %vm713_vm14, %v3118_v9, %v710_v19 }
 0x32a   : > { %v719_v30 = vsel %vm716_vm15, %v718_v28, %v714_v26  ;;  %v657_v33 = vmul.f32 %v655_v32, %v649_v24 }
 0x32b   : > { %v722_v37 = vmul.f32 %v719_v30, %v3660_v36 }
 0x385   : > { %v660_v25 = vpop.permute.xlu0 %659 }
 0x386   : > { %v662_v27 = vmul.f32 %v660_v25, %v649_v24 }
 0x388   : > { %664 = vrot.lane.b32.xlu0 %v662_v27, %s3475_s16  ;;  %v725_v29 = vpop.permute.xlu1 %724 }
 0x389   : > { %v727_v31 = vmul.f32 %v725_v29, %v719_v30 }
 0x38b   : > { %729 = vrot.lane.b32.xlu1 %v727_v31, %s3475_s16 }
 0x3fa   : > { %v665_v34 = vpop.permute.xlu0 %664 }
 0x3fb   : > { %v3724_v35 = vadd.f32 %v665_v34, %v657_v33 }
 0x3fd   : > { %3119 = vtanh.f32 %v3724_v35  ;;  %v730_v41 = vpop.permute.xlu1 %729 }
 0x3fe   : > { %v3728_v42 = vadd.f32 %v730_v41, %v722_v37 }
 0x400   : > { %3121 = vtanh.f32 %v3728_v42 }
 0x403   : > { %v3120_v43 = vpop.eup %3119 }
 0x404   : > { %670 = vrot.lane.b32.xlu2 %v3120_v43, %s3474_s12 }
 0x406   : > { %v3122_v44 = vpop.eup %3121 }
 0x407   : > { %735 = vrot.lane.b32.xlu0 %v3122_v44, %s3474_s12 }
 0x45e   : > { %v671_v45 = vpop.permute.xlu2 %670 }
 0x45f   : > { %v3733_v47 = vmul.f32 %v671_v45, %v649_v24 }
 0x461   : > { %743 = vrot.lane.b32.xlu2 %v3733_v47, %s3474_s12 }
 0x479   : > { %v736_v36 = vpop.permute.xlu0 %735 }
 0x47a   : > { %v738_v48 = vmul.f32 %v736_v36, %v719_v30 }
 0x47c   : > { %v807_v49 = vpack.c.bf16 %v738_v48, %v738_v48  ;;  %740 = vrot.lane.b32.xlu1 %v738_v48, %s3475_s16 }
 0x47e   : > { %809 = vrot.lane.b32.xlu0 %v807_v49, %s3475_s16 }
 0x4bb   : > { %v744_v50 = vpop.permute.xlu2 %743 }
 0x4ee   : > { %v741_v51 = vpop.permute.xlu1 %740 }
 0x4ef   : > { %v746_v52 = vsel %vm520_vm2, %v741_v51, %v744_v50 }
 0x4f0   : > { %v747_v53 = vpack.c.bf16 %v746_v52, %v746_v52  ;;  %v810_v55 = vpop.permute.xlu0 %809 }
 0x4f1   : > { %2931 = vmatmul.msk.bf16.vlgmr.msrb.gmra.mxu1 %vm520_vm2, %v810_v55 }
 0x4f2   : > { %2929 = vmatmul.msk.bf16.vlgmr.msrb.gmra.mxu0 %vm615_vm7, %v747_v53  ;;  %1324 = vmatpush.bf16.msrb.mxu1 %v3638_v2 }
 0x4f3   : > { %1259 = vmatpush.bf16.msrb.mxu0 %v3667_v38 }
 0x4f6   : > { %1325 = vmatpush.bf16.msrb.mxu1 %v3643_v4 }
 0x4f7   : > { %1260 = vmatpush.bf16.msrb.mxu0 %v3673_v39 }
 0x4fb   : > { %1261 = vmatpush.bf16.msrb.mxu0 %v3681_v40 }
 0x4ff   : > { %1262 = vmatpush.bf16.msrb.mxu0 %v3693_v46 }
 0x56e   : > { %v823_v57 = vpop.f32.mrf.mxu1 }
 0x56f   : > { %v827_v58 = vadd.f32 %v823_v57, %v806_v56  ;;  %v760_v59 = vpop.f32.mrf.mxu0  ;;  %v932_v57 = vld [vmem:[#allocation6 + $0x3] sm:$0x1] }
 0x570   : > { %v761_v60 = vadd.f32 %v760_v59, %v3717_v54 }
 0x571   : > { %3123 = vtanh.f32 %v827_v58  ;;  %v2932_v1 = vmul.f32 -1.442695, %v827_v58 }
 0x572   : > { %3125 = vtanh.f32 %v761_v60  ;;  %v2930_v7 = vmul.f32 -1.442695, %v761_v60 }
 0x573   : > { %3127 = vpow2.f32 %v2932_v1 }
 0x576   : > { %v825_v61 = vpop.f32.mrf.mxu1 }
 0x577   : > { %v3124_v62 = vpop.eup %3123  ;;  %v762_v63 = vpop.f32.mrf.mxu0 }
 0x578   : > { %v3126_v0 = vpop.eup %3125  ;;  %850 = vrot.lane.b32.xlu2 %v3124_v62, %s3474_s12 }
 0x579   : > { %786 = vrot.lane.b32.xlu1 %v3126_v0, %s3474_s12  ;;  %v3128_v3 = vpop.eup %3127 }
 0x57a   : > { %v831_v5 = vadd.f32 1.0, %v3128_v3 }
 0x57c   : > { %3129 = vrcp.f32 %v831_v5  ;;  %v843_v14 = vand.u32 2147483648, %v831_v5  ;;  %vm837_vm1 = vweird.f32 %v831_v5  ;;  %v841_v15 = vand.u32 2147483647, %v831_v5 }
 0x57d   : > { %3131 = vpow2.f32 %v2930_v7 }
 0x57e   : > { %v844_v17 = vor.u32 1.1754944e-38, %v843_v14  ;;  %vm842_vm4 = vcmp.eq.f32.partialorder %v841_v15, 8.507059e+37 }
 0x582   : > { %v3130_v6 = vpop.eup %3129 }
 0x583   : > { %v833_v8 = vmul.f32 %v3130_v6, %v831_v5  ;;  %v3132_v11 = vpop.eup %3131  ;;  %vm838_vm0 = vweird.f32 %v3130_v6 }
 0x584   : > { %v767_v12 = vadd.f32 1.0, %v3132_v11  ;;  %vm839_vm3 = vmor %vm837_vm1, %vm838_vm0 }
 0x585   : > { %v834_v9 = vsub.f32 1.0, %v833_v8 }
 0x586   : > { %3133 = vrcp.f32 %v767_v12  ;;  %v779_v26 = vand.u32 2147483648, %v767_v12  ;;  %vm773_vm6 = vweird.f32 %v767_v12  ;;  %v777_v27 = vand.u32 2147483647, %v767_v12 }
 0x587   : > { %v835_v10 = vmul.f32 %v3130_v6, %v834_v9 }
 0x588   : > { %v780_v29 = vor.u32 1.1754944e-38, %v779_v26  ;;  %vm778_vm9 = vcmp.eq.f32.partialorder %v777_v27, 8.507059e+37 }
 0x589   : > { %v836_v13 = vadd.f32 %v3130_v6, %v835_v10 }
 0x58b   : > { %v840_v16 = vsel %vm839_vm3, %v3130_v6, %v836_v13 }
 0x58c   : > { %v845_v18 = vsel %vm842_vm4, %v844_v17, %v840_v16  ;;  %v3134_v21 = vpop.eup %3133 }
 0x58d   : > { %v769_v22 = vmul.f32 %v3134_v21, %v767_v12  ;;  %vm774_vm5 = vweird.f32 %v3134_v21  ;;  %v848_v33 = vmul.f32 %v845_v18, %v3728_v42 }
 0x58e   : > { %vm775_vm8 = vmor %vm773_vm6, %vm774_vm5 }
 0x58f   : > { %v770_v23 = vsub.f32 1.0, %v769_v22 }
 0x591   : > { %v771_v24 = vmul.f32 %v3134_v21, %v770_v23 }
 0x593   : > { %v772_v25 = vadd.f32 %v3134_v21, %v771_v24 }
 0x595   : > { %v776_v28 = vsel %vm775_vm8, %v3134_v21, %v772_v25 }
 0x596   : > { %v781_v31 = vsel %vm778_vm9, %v780_v29, %v776_v28 }
 0x597   : > { %v784_v43 = vmul.f32 %v781_v31, %v3724_v35 }
 0x5d2   : > { %v851_v19 = vpop.permute.xlu2 %850 }
 0x5d3   : > { %v853_v20 = vmul.f32 %v851_v19, %v845_v18 }
 0x5d5   : > { %855 = vrot.lane.b32.xlu1 %v853_v20, %s3475_s16 }
 0x5eb   : > { %v787_v30 = vpop.permute.xlu1 %786 }
 0x5ec   : > { %v789_v32 = vmul.f32 %v787_v30, %v781_v31 }
 0x5ee   : > { %791 = vrot.lane.b32.xlu0 %v789_v32, %s3475_s16 }
 0x647   : > { %v856_v34 = vpop.permute.xlu1 %855 }
 0x648   : > { %v3754_v37 = vadd.f32 %v856_v34, %v848_v33 }
 0x64a   : > { %3135 = vtanh.f32 %v3754_v37 }
 0x650   : > { %v3136_v41 = vpop.eup %3135 }
 0x651   : > { %861 = vrot.lane.b32.xlu0 %v3136_v41, %s3474_s12 }
 0x660   : > { %v792_v44 = vpop.permute.xlu0 %791 }
 0x661   : > { %v3759_v45 = vadd.f32 %v792_v44, %v784_v43 }
 0x663   : > { %3137 = vtanh.f32 %v3759_v45 }
 0x669   : > { %v3138_v36 = vpop.eup %3137 }
 0x66a   : > { %797 = vrot.lane.b32.xlu2 %v3138_v36, %s3474_s12 }
 0x6c3   : > { %v862_v48 = vpop.permute.xlu0 %861 }
 0x6c4   : > { %v864_v42 = vmul.f32 %v862_v48, %v845_v18  ;;  %v798_v49 = vpop.permute.xlu2 %797 }
 0x6c5   : > { %v3763_v50 = vmul.f32 %v798_v49, %v781_v31 }
 0x6c6   : > { %v933_v51 = vpack.c.bf16 %v864_v42, %v864_v42  ;;  %866 = vrot.lane.b32.xlu1 %v864_v42, %s3475_s16 }
 0x6c7   : > { %869 = vrot.lane.b32.xlu2 %v3763_v50, %s3474_s12 }
 0x6c8   : > { %935 = vrot.lane.b32.xlu0 %v933_v51, %s3475_s16 }
 0x721   : > { %v870_v35 = vpop.permute.xlu2 %869 }
 0x738   : > { %v867_v52 = vpop.permute.xlu1 %866 }
 0x739   : > { %v872_v53 = vsel %vm520_vm2, %v867_v52, %v870_v35 }
 0x73a   : > { %v873_v55 = vpack.c.bf16 %v872_v53, %v872_v53  ;;  %v936_v56 = vpop.permute.xlu0 %935 }
 0x73b   : > { %2935 = vmatmul.msk.bf16.vlgmr.msrb.gmra.mxu2 %vm520_vm2, %v936_v56 }
 0x73c   : > { %2933 = vmatmul.msk.bf16.vlgmr.msrb.gmra.mxu3 %vm615_vm7, %v873_v55  ;;  %1450 = vmatpush.bf16.msrb.mxu2 %v3638_v2 }
 0x73d   : > { %1385 = vmatpush.bf16.msrb.mxu3 %v3667_v38 }
 0x740   : > { %1451 = vmatpush.bf16.msrb.mxu2 %v3643_v4 }
 0x741   : > { %1386 = vmatpush.bf16.msrb.mxu3 %v3673_v39 }
 0x745   : > { %1387 = vmatpush.bf16.msrb.mxu3 %v3681_v40 }
 0x749   : > { %1388 = vmatpush.bf16.msrb.mxu3 %v3693_v46 }
 0x7be   : > { %v949_v58 = vpop.f32.mrf.mxu2 }
 0x7bf   : > { %v953_v59 = vadd.f32 %v949_v58, %v932_v57  ;;  %v886_v60 = vpop.f32.mrf.mxu3 }
 0x7c0   : > { %v887_v61 = vadd.f32 %v886_v60, %v3717_v54 }
 0x7c1   : > { %3139 = vtanh.f32 %v953_v59  ;;  %v2936_v3 = vmul.f32 -1.442695, %v953_v59  ;;  %v1058_v59 = vld [vmem:[#allocation6 + $0x4] sm:$0x1] }
 0x7c2   : > { %3141 = vtanh.f32 %v887_v61  ;;  %v2934_v8 = vmul.f32 -1.442695, %v887_v61 }
 0x7c3   : > { %3143 = vpow2.f32 %v2936_v3 }
 0x7c6   : > { %v951_v62 = vpop.f32.mrf.mxu2 }
 0x7c7   : > { %v3140_v63 = vpop.eup %3139  ;;  %v888_v0 = vpop.f32.mrf.mxu3 }
 0x7c8   : > { %v3142_v1 = vpop.eup %3141  ;;  %976 = vrot.lane.b32.xlu2 %v3140_v63, %s3474_s12 }
 0x7c9   : > { %912 = vrot.lane.b32.xlu1 %v3142_v1, %s3474_s12  ;;  %v3144_v5 = vpop.eup %3143 }
 0x7ca   : > { %v957_v6 = vadd.f32 1.0, %v3144_v5 }
 0x7cc   : > { %3145 = vrcp.f32 %v957_v6  ;;  %v969_v15 = vand.u32 2147483648, %v957_v6  ;;  %vm963_vm11 = vweird.f32 %v957_v6  ;;  %v967_v16 = vand.u32 2147483647, %v957_v6 }
 0x7cd   : > { %3147 = vpow2.f32 %v2934_v8 }
 0x7ce   : > { %v970_v18 = vor.u32 1.1754944e-38, %v969_v15  ;;  %vm968_vm13 = vcmp.eq.f32.partialorder %v967_v16, 8.507059e+37 }
 0x7d2   : > { %v3146_v7 = vpop.eup %3145 }
 0x7d3   : > { %v959_v9 = vmul.f32 %v3146_v7, %v957_v6  ;;  %v3148_v12 = vpop.eup %3147  ;;  %vm964_vm10 = vweird.f32 %v3146_v7 }
 0x7d4   : > { %v893_v13 = vadd.f32 1.0, %v3148_v12  ;;  %vm965_vm12 = vmor %vm963_vm11, %vm964_vm10 }
 0x7d5   : > { %v960_v10 = vsub.f32 1.0, %v959_v9 }
 0x7d6   : > { %3149 = vrcp.f32 %v893_v13  ;;  %v905_v27 = vand.u32 2147483648, %v893_v13  ;;  %vm899_vm15 = vweird.f32 %v893_v13  ;;  %v903_v28 = vand.u32 2147483647, %v893_v13 }
 0x7d7   : > { %v961_v11 = vmul.f32 %v3146_v7, %v960_v10 }
 0x7d8   : > { %v906_v30 = vor.u32 1.1754944e-38, %v905_v27  ;;  %vm904_vm1 = vcmp.eq.f32.partialorder %v903_v28, 8.507059e+37 }
 0x7d9   : > { %v962_v14 = vadd.f32 %v3146_v7, %v961_v11 }
 0x7db   : > { %v966_v17 = vsel %vm965_vm12, %v3146_v7, %v962_v14 }
 0x7dc   : > { %v971_v19 = vsel %vm968_vm13, %v970_v18, %v966_v17  ;;  %v3150_v22 = vpop.eup %3149 }
 0x7dd   : > { %v895_v23 = vmul.f32 %v3150_v22, %v893_v13  ;;  %vm900_vm14 = vweird.f32 %v3150_v22  ;;  %v974_v34 = vmul.f32 %v971_v19, %v3754_v37 }
 0x7de   : > { %vm901_vm0 = vmor %vm899_vm15, %vm900_vm14 }
 0x7df   : > { %v896_v24 = vsub.f32 1.0, %v895_v23 }
 0x7e1   : > { %v897_v25 = vmul.f32 %v3150_v22, %v896_v24 }
 0x7e3   : > { %v898_v26 = vadd.f32 %v3150_v22, %v897_v25 }
 0x7e5   : > { %v902_v29 = vsel %vm901_vm0, %v3150_v22, %v898_v26 }
 0x7e6   : > { %v907_v32 = vsel %vm904_vm1, %v906_v30, %v902_v29 }
 0x7e7   : > { %v910_v36 = vmul.f32 %v907_v32, %v3759_v45 }
 0x822   : > { %v977_v20 = vpop.permute.xlu2 %976 }
 0x823   : > { %v979_v21 = vmul.f32 %v977_v20, %v971_v19 }
 0x825   : > { %981 = vrot.lane.b32.xlu1 %v979_v21, %s3475_s16 }
 0x83b   : > { %v913_v31 = vpop.permute.xlu1 %912 }
 0x83c   : > { %v915_v33 = vmul.f32 %v913_v31, %v907_v32 }
 0x83e   : > { %917 = vrot.lane.b32.xlu0 %v915_v33, %s3475_s16 }
 0x897   : > { %v982_v41 = vpop.permute.xlu1 %981 }
 0x898   : > { %v3784_v43 = vadd.f32 %v982_v41, %v974_v34 }
 0x89a   : > { %3151 = vtanh.f32 %v3784_v43 }
 0x8a0   : > { %v3152_v44 = vpop.eup %3151 }
 0x8a1   : > { %987 = vrot.lane.b32.xlu0 %v3152_v44, %s3474_s12 }
 0x8b0   : > { %v918_v48 = vpop.permute.xlu0 %917 }
 0x8b1   : > { %v3789_v42 = vadd.f32 %v918_v48, %v910_v36 }
 0x8b3   : > { %3153 = vtanh.f32 %v3789_v42 }
 0x8b9   : > { %v3154_v49 = vpop.eup %3153 }
 0x8ba   : > { %923 = vrot.lane.b32.xlu2 %v3154_v49, %s3474_s12 }
 0x913   : > { %v988_v51 = vpop.permute.xlu0 %987 }
 0x914   : > { %v990_v37 = vmul.f32 %v988_v51, %v971_v19  ;;  %v924_v35 = vpop.permute.xlu2 %923 }
 0x915   : > { %v3793_v52 = vmul.f32 %v924_v35, %v907_v32 }
 0x916   : > { %v1059_v53 = vpack.c.bf16 %v990_v37, %v990_v37  ;;  %992 = vrot.lane.b32.xlu1 %v990_v37, %s3475_s16 }
 0x917   : > { %995 = vrot.lane.b32.xlu2 %v3793_v52, %s3474_s12 }
 0x918   : > { %1061 = vrot.lane.b32.xlu0 %v1059_v53, %s3475_s16 }
 0x971   : > { %v996_v45 = vpop.permute.xlu2 %995 }
 0x988   : > { %v993_v55 = vpop.permute.xlu1 %992 }
 0x989   : > { %v998_v56 = vsel %vm520_vm2, %v993_v55, %v996_v45 }
 0x98a   : > { %v999_v57 = vpack.c.bf16 %v998_v56, %v998_v56  ;;  %v1062_v58 = vpop.permute.xlu0 %1061 }
 0x98b   : > { %2939 = vmatmul.msk.bf16.vlgmr.msra.gmra.mxu1 %vm520_vm2, %v1062_v58 }
 0x98c   : > { %2937 = vmatmul.msk.bf16.vlgmr.msra.gmra.mxu0 %vm615_vm7, %v999_v57  ;;  %1576 = vmatpush.bf16.msra.mxu1 %v3638_v2 }
 0x98d   : > { %1511 = vmatpush.bf16.msra.mxu0 %v3667_v38 }
 0x990   : > { %1577 = vmatpush.bf16.msra.mxu1 %v3643_v4 }
 0x991   : > { %1512 = vmatpush.bf16.msra.mxu0 %v3673_v39 }
 0x995   : > { %1513 = vmatpush.bf16.msra.mxu0 %v3681_v40 }
 0x999   : > { %1514 = vmatpush.bf16.msra.mxu0 %v3693_v46 }
 0xa08   : > { %v1075_v60 = vpop.f32.mrf.mxu1 }
 0xa09   : > { %v1079_v61 = vadd.f32 %v1075_v60, %v1058_v59  ;;  %v1012_v62 = vpop.f32.mrf.mxu0 }
 0xa0a   : > { %v1013_v63 = vadd.f32 %v1012_v62, %v3717_v54  ;;  %v1184_v62 = vld [vmem:[#allocation6 + $0x5] sm:$0x1] }
 0xa0b   : > { %3155 = vtanh.f32 %v1079_v61  ;;  %v2940_v6 = vmul.f32 -1.442695, %v1079_v61 }
 0xa0c   : > { %3157 = vtanh.f32 %v1013_v63  ;;  %v2938_v10 = vmul.f32 -1.442695, %v1013_v63 }
 0xa0d   : > { %3159 = vpow2.f32 %v2940_v6 }
 0xa10   : > { %v1077_v0 = vpop.f32.mrf.mxu1 }
 0xa11   : > { %v3156_v1 = vpop.eup %3155  ;;  %v1014_v3 = vpop.f32.mrf.mxu0 }
 0xa12   : > { %v3158_v5 = vpop.eup %3157  ;;  %1102 = vrot.lane.b32.xlu2 %v3156_v1, %s3474_s12 }
 0xa13   : > { %1038 = vrot.lane.b32.xlu1 %v3158_v5, %s3474_s12  ;;  %v3160_v7 = vpop.eup %3159 }
 0xa14   : > { %v1083_v8 = vadd.f32 1.0, %v3160_v7 }
 0xa16   : > { %3161 = vrcp.f32 %v1083_v8  ;;  %v1095_v17 = vand.u32 2147483648, %v1083_v8  ;;  %vm1089_vm4 = vweird.f32 %v1083_v8  ;;  %v1093_v18 = vand.u32 2147483647, %v1083_v8 }
 0xa17   : > { %3163 = vpow2.f32 %v2938_v10 }
 0xa18   : > { %v1096_v20 = vor.u32 1.1754944e-38, %v1095_v17  ;;  %vm1094_vm6 = vcmp.eq.f32.partialorder %v1093_v18, 8.507059e+37 }
 0xa1c   : > { %v3162_v9 = vpop.eup %3161 }
 0xa1d   : > { %v1085_v11 = vmul.f32 %v3162_v9, %v1083_v8  ;;  %v3164_v14 = vpop.eup %3163  ;;  %vm1090_vm3 = vweird.f32 %v3162_v9 }
 0xa1e   : > { %v1019_v15 = vadd.f32 1.0, %v3164_v14  ;;  %vm1091_vm5 = vmor %vm1089_vm4, %vm1090_vm3 }
 0xa1f   : > { %v1086_v12 = vsub.f32 1.0, %v1085_v11 }
 0xa20   : > { %3165 = vrcp.f32 %v1019_v15  ;;  %v1031_v29 = vand.u32 2147483648, %v1019_v15  ;;  %vm1025_vm9 = vweird.f32 %v1019_v15  ;;  %v1029_v30 = vand.u32 2147483647, %v1019_v15 }
 0xa21   : > { %v1087_v13 = vmul.f32 %v3162_v9, %v1086_v12 }
 0xa22   : > { %v1032_v32 = vor.u32 1.1754944e-38, %v1031_v29  ;;  %vm1030_vm11 = vcmp.eq.f32.partialorder %v1029_v30, 8.507059e+37 }
 0xa23   : > { %v1088_v16 = vadd.f32 %v3162_v9, %v1087_v13 }
 0xa25   : > { %v1092_v19 = vsel %vm1091_vm5, %v3162_v9, %v1088_v16 }
 0xa26   : > { %v1097_v21 = vsel %vm1094_vm6, %v1096_v20, %v1092_v19  ;;  %v3166_v24 = vpop.eup %3165 }
 0xa27   : > { %v1021_v25 = vmul.f32 %v3166_v24, %v1019_v15  ;;  %vm1026_vm8 = vweird.f32 %v3166_v24  ;;  %v1100_v44 = vmul.f32 %v1097_v21, %v3784_v43 }
 0xa28   : > { %vm1027_vm10 = vmor %vm1025_vm9, %vm1026_vm8 }
 0xa29   : > { %v1022_v26 = vsub.f32 1.0, %v1021_v25 }
 0xa2b   : > { %v1023_v27 = vmul.f32 %v3166_v24, %v1022_v26 }
 0xa2d   : > { %v1024_v28 = vadd.f32 %v3166_v24, %v1023_v27 }
 0xa2f   : > { %v1028_v31 = vsel %vm1027_vm10, %v3166_v24, %v1024_v28 }
 0xa30   : > { %v1033_v34 = vsel %vm1030_vm11, %v1032_v32, %v1028_v31 }
 0xa31   : > { %v1036_v51 = vmul.f32 %v1033_v34, %v3789_v42 }
 0xa6c   : > { %v1103_v22 = vpop.permute.xlu2 %1102 }
 0xa6d   : > { %v1105_v23 = vmul.f32 %v1103_v22, %v1097_v21 }
 0xa6f   : > { %1107 = vrot.lane.b32.xlu1 %v1105_v23, %s3475_s16 }
 0xa85   : > { %v1039_v33 = vpop.permute.xlu1 %1038 }
 0xa86   : > { %v1041_v41 = vmul.f32 %v1039_v33, %v1033_v34 }
 0xa88   : > { %1043 = vrot.lane.b32.xlu0 %v1041_v41, %s3475_s16 }
 0xae1   : > { %v1108_v36 = vpop.permute.xlu1 %1107 }
 0xae2   : > { %v3814_v48 = vadd.f32 %v1108_v36, %v1100_v44 }
 0xae4   : > { %3167 = vtanh.f32 %v3814_v48 }
 0xaea   : > { %v3168_v49 = vpop.eup %3167 }
 0xaeb   : > { %1113 = vrot.lane.b32.xlu0 %v3168_v49, %s3474_s12 }
 0xafa   : > { %v1044_v37 = vpop.permute.xlu0 %1043 }
 0xafb   : > { %v3819_v35 = vadd.f32 %v1044_v37, %v1036_v51 }
 0xafd   : > { %3169 = vtanh.f32 %v3819_v35 }
 0xb03   : > { %v3170_v53 = vpop.eup %3169 }
 0xb04   : > { %1049 = vrot.lane.b32.xlu2 %v3170_v53, %s3474_s12 }
 0xb5d   : > { %v1114_v45 = vpop.permute.xlu0 %1113 }
 0xb5e   : > { %v1116_v43 = vmul.f32 %v1114_v45, %v1097_v21  ;;  %v1050_v55 = vpop.permute.xlu2 %1049 }
 0xb5f   : > { %v3823_v56 = vmul.f32 %v1050_v55, %v1033_v34 }
 0xb60   : > { %v1185_v57 = vpack.c.bf16 %v1116_v43, %v1116_v43  ;;  %1118 = vrot.lane.b32.xlu1 %v1116_v43, %s3475_s16 }
 0xb61   : > { %1121 = vrot.lane.b32.xlu2 %v3823_v56, %s3474_s12 }
 0xb62   : > { %1187 = vrot.lane.b32.xlu0 %v1185_v57, %s3475_s16 }
 0xbbb   : > { %v1122_v42 = vpop.permute.xlu2 %1121 }
 0xbd2   : > { %v1119_v58 = vpop.permute.xlu1 %1118 }
 0xbd3   : > { %v1124_v59 = vsel %vm520_vm2, %v1119_v58, %v1122_v42 }
 0xbd4   : > { %v1125_v60 = vpack.c.bf16 %v1124_v59, %v1124_v59  ;;  %v1188_v61 = vpop.permute.xlu0 %1187 }
 0xbd5   : > { %2943 = vmatmul.msk.bf16.vlgmr.msra.gmra.mxu2 %vm520_vm2, %v1188_v61 }
 0xbd6   : > { %2941 = vmatmul.msk.bf16.vlgmr.msra.gmra.mxu3 %vm615_vm7, %v1125_v60  ;;  %1702 = vmatpush.bf16.msra.mxu2 %v3638_v2 }
 0xbd7   : > { %1637 = vmatpush.bf16.msra.mxu3 %v3667_v38 }
 0xbda   : > { %1703 = vmatpush.bf16.msra.mxu2 %v3643_v4 }
 0xbdb   : > { %1638 = vmatpush.bf16.msra.mxu3 %v3673_v39 }
 0xbdf   : > { %1639 = vmatpush.bf16.msra.mxu3 %v3681_v40 }
 0xbe3   : > { %1640 = vmatpush.bf16.msra.mxu3 %v3693_v46 }
 0xc58   : > { %v1201_v63 = vpop.f32.mrf.mxu2 }
 0xc59   : > { %v1205_v0 = vadd.f32 %v1201_v63, %v1184_v62  ;;  %v1138_v1 = vpop.f32.mrf.mxu3 }
 0xc5a   : > { %v1139_v3 = vadd.f32 %v1138_v1, %v3717_v54  ;;  %v3872_v1 = vld [vmem:[%s4320_s2] sm:$0xff] }
 0xc5b   : > { %3171 = vtanh.f32 %v1205_v0  ;;  %v2944_v4 = vmul.f32 -1.442695, %v1205_v0  ;;  %v3865_v0 = vld [vmem:[%s4320_s2 + $0x8] sm:$0xff] }
 0xc5c   : > { %3173 = vtanh.f32 %v1139_v3  ;;  %v2942_v11 = vmul.f32 -1.442695, %v1139_v3  ;;  %v1310_v3 = vld [vmem:[#allocation6 + $0x6] sm:$0x1] }
 0xc5d   : > { %3175 = vpow2.f32 %v2944_v4 }
 0xc60   : > { %v1203_v5 = vpop.f32.mrf.mxu2 }
 0xc61   : > { %v3172_v2 = vpop.eup %3171  ;;  %v1140_v6 = vpop.f32.mrf.mxu3 }
 0xc62   : > { %v3174_v7 = vpop.eup %3173  ;;  %1228 = vrot.lane.b32.xlu2 %v3172_v2, %s3474_s12 }
 0xc63   : > { %1164 = vrot.lane.b32.xlu1 %v3174_v7, %s3474_s12  ;;  %v3176_v8 = vpop.eup %3175 }
 0xc64   : > { %v1209_v9 = vadd.f32 1.0, %v3176_v8 }
 0xc66   : > { %3177 = vrcp.f32 %v1209_v9  ;;  %v1221_v18 = vand.u32 2147483648, %v1209_v9  ;;  %vm1215_vm13 = vweird.f32 %v1209_v9  ;;  %v1219_v19 = vand.u32 2147483647, %v1209_v9 }
 0xc67   : > { %3179 = vpow2.f32 %v2942_v11 }
 0xc68   : > { %v1222_v21 = vor.u32 1.1754944e-38, %v1221_v18  ;;  %vm1220_vm15 = vcmp.eq.f32.partialorder %v1219_v19, 8.507059e+37 }
 0xc6c   : > { %v3178_v10 = vpop.eup %3177 }
 0xc6d   : > { %v1211_v12 = vmul.f32 %v3178_v10, %v1209_v9  ;;  %v3180_v15 = vpop.eup %3179  ;;  %vm1216_vm12 = vweird.f32 %v3178_v10 }
 0xc6e   : > { %v1145_v16 = vadd.f32 1.0, %v3180_v15  ;;  %vm1217_vm14 = vmor %vm1215_vm13, %vm1216_vm12 }
 0xc6f   : > { %v1212_v13 = vsub.f32 1.0, %v1211_v12 }
 0xc70   : > { %3181 = vrcp.f32 %v1145_v16  ;;  %v1157_v30 = vand.u32 2147483648, %v1145_v16  ;;  %vm1151_vm1 = vweird.f32 %v1145_v16  ;;  %v1155_v31 = vand.u32 2147483647, %v1145_v16 }
 0xc71   : > { %v1213_v14 = vmul.f32 %v3178_v10, %v1212_v13 }
 0xc72   : > { %v1158_v33 = vor.u32 1.1754944e-38, %v1157_v30  ;;  %vm1156_vm4 = vcmp.eq.f32.partialorder %v1155_v31, 8.507059e+37 }
 0xc73   : > { %v1214_v17 = vadd.f32 %v3178_v10, %v1213_v14 }
 0xc75   : > { %v1218_v20 = vsel %vm1217_vm14, %v3178_v10, %v1214_v17 }
 0xc76   : > { %v1223_v22 = vsel %vm1220_vm15, %v1222_v21, %v1218_v20  ;;  %v3182_v25 = vpop.eup %3181 }
 0xc77   : > { %v1147_v26 = vmul.f32 %v3182_v25, %v1145_v16  ;;  %vm1152_vm0 = vweird.f32 %v3182_v25  ;;  %v1226_v36 = vmul.f32 %v1223_v22, %v3814_v48 }
 0xc78   : > { %vm1153_vm3 = vmor %vm1151_vm1, %vm1152_vm0 }
 0xc79   : > { %v1148_v27 = vsub.f32 1.0, %v1147_v26 }
 0xc7b   : > { %v1149_v28 = vmul.f32 %v3182_v25, %v1148_v27 }
 0xc7d   : > { %v1150_v29 = vadd.f32 %v3182_v25, %v1149_v28 }
 0xc7f   : > { %v1154_v32 = vsel %vm1153_vm3, %v3182_v25, %v1150_v29 }
 0xc80   : > { %v1159_v41 = vsel %vm1156_vm4, %v1158_v33, %v1154_v32 }
 0xc81   : > { %v1162_v53 = vmul.f32 %v1159_v41, %v3819_v35 }
 0xcbc   : > { %v1229_v23 = vpop.permute.xlu2 %1228 }
 0xcbd   : > { %v1231_v24 = vmul.f32 %v1229_v23, %v1223_v22 }
 0xcbf   : > { %1233 = vrot.lane.b32.xlu1 %v1231_v24, %s3475_s16 }
 0xcd5   : > { %v1165_v34 = vpop.permute.xlu1 %1164 }
 0xcd6   : > { %v1167_v44 = vmul.f32 %v1165_v34, %v1159_v41 }
 0xcd8   : > { %1169 = vrot.lane.b32.xlu0 %v1167_v44, %s3475_s16 }
 0xd31   : > { %v1234_v49 = vpop.permute.xlu1 %1233 }
 0xd32   : > { %v3844_v51 = vadd.f32 %v1234_v49, %v1226_v36 }
 0xd34   : > { %3183 = vtanh.f32 %v3844_v51 }
 0xd3a   : > { %v3184_v37 = vpop.eup %3183 }
 0xd3b   : > { %1239 = vrot.lane.b32.xlu0 %v3184_v37, %s3474_s12 }
 0xd4a   : > { %v1170_v45 = vpop.permute.xlu0 %1169 }
 0xd4b   : > { %v3849_v43 = vadd.f32 %v1170_v45, %v1162_v53 }
 0xd4d   : > { %3185 = vtanh.f32 %v3849_v43 }
 0xd53   : > { %v3186_v55 = vpop.eup %3185 }
 0xd54   : > { %1175 = vrot.lane.b32.xlu2 %v3186_v55, %s3474_s12 }
 0xdad   : > { %v1240_v57 = vpop.permute.xlu0 %1239 }
 0xdae   : > { %v1242_v48 = vmul.f32 %v1240_v57, %v1223_v22  ;;  %v1176_v42 = vpop.permute.xlu2 %1175 }
 0xdaf   : > { %v3853_v58 = vmul.f32 %v1176_v42, %v1159_v41 }
 0xdb0   : > { %v1311_v59 = vpack.c.bf16 %v1242_v48, %v1242_v48  ;;  %1244 = vrot.lane.b32.xlu1 %v1242_v48, %s3475_s16 }
 0xdb1   : > { %1247 = vrot.lane.b32.xlu2 %v3853_v58, %s3474_s12 }
 0xdb2   : > { %1313 = vrot.lane.b32.xlu0 %v1311_v59, %s3475_s16 }
 0xe0b   : > { %v1248_v35 = vpop.permute.xlu2 %1247 }
 0xe22   : > { %v1245_v60 = vpop.permute.xlu1 %1244 }
 0xe23   : > { %v1250_v61 = vsel %vm520_vm2, %v1245_v60, %v1248_v35 }
 0xe24   : > { %v1251_v62 = vpack.c.bf16 %v1250_v61, %v1250_v61  ;;  %v1314_v63 = vpop.permute.xlu0 %1313 }
 0xe25   : > { %2947 = vmatmul.msk.bf16.vlgmr.msrb.gmra.mxu1 %vm520_vm2, %v1314_v63 }
 0xe26   : > { %2945 = vmatmul.msk.bf16.vlgmr.msrb.gmra.mxu0 %vm615_vm7, %v1251_v62  ;;  %1828 = vmatpush.bf16.msrb.mxu1 %v3865_v0 }
 0xe27   : > { %1763 = vmatpush.bf16.msrb.mxu0 %v3667_v38 }
 0xe2a   : > { %1829 = vmatpush.bf16.msrb.mxu1 %v3872_v1 }
 0xe2b   : > { %1764 = vmatpush.bf16.msrb.mxu0 %v3673_v39 }
 0xe2f   : > { %1765 = vmatpush.bf16.msrb.mxu0 %v3681_v40 }
 0xe33   : > { %1766 = vmatpush.bf16.msrb.mxu0 %v3693_v46 }
 0xea2   : > { %v1327_v5 = vpop.f32.mrf.mxu1 }
 0xea3   : > { %v1331_v2 = vadd.f32 %v1327_v5, %v1310_v3  ;;  %v1264_v6 = vpop.f32.mrf.mxu0  ;;  %v3906_v3 = vld [vmem:[%s4322_s4 + $0x18] sm:$0xff]  ;;  %v3913_v5 = vld [vmem:[%s4322_s4 + $0x10] sm:$0xff] }
 0xea4   : > { %v1265_v7 = vadd.f32 %v1264_v6, %v3717_v54  ;;  %v3925_v6 = vld [vmem:[%s4322_s4] sm:$0xff] }
 0xea5   : > { %3187 = vtanh.f32 %v1331_v2  ;;  %v2948_v39 = vmul.f32 -1.442695, %v1331_v2  ;;  %v3919_v2 = vld [vmem:[%s4322_s4 + $0x8] sm:$0xff] }
 0xea6   : > { %3189 = vtanh.f32 %v1265_v7  ;;  %v2946_v11 = vmul.f32 -1.442695, %v1265_v7  ;;  %v1436_v7 = vld [vmem:[#allocation6 + $0x7] sm:$0x1] }
 0xea7   : > { %3191 = vpow2.f32 %v2948_v39 }
 0xeaa   : > { %v1329_v38 = vpop.f32.mrf.mxu1 }
 0xeab   : > { %v3188_v4 = vpop.eup %3187  ;;  %v1266_v8 = vpop.f32.mrf.mxu0 }
 0xeac   : > { %v3190_v9 = vpop.eup %3189  ;;  %1354 = vrot.lane.b32.xlu2 %v3188_v4, %s3474_s12 }
 0xead   : > { %1290 = vrot.lane.b32.xlu1 %v3190_v9, %s3474_s12  ;;  %v3192_v40 = vpop.eup %3191  ;;  %v3931_v9 = vld [vmem:[%s4323_s5] sm:$0x1] }
 0xeae   : > { %v1335_v46 = vadd.f32 1.0, %v3192_v40 }
 0xeb0   : > { %3193 = vrcp.f32 %v1335_v46  ;;  %v1347_v17 = vand.u32 2147483648, %v1335_v46  ;;  %vm1341_vm6 = vweird.f32 %v1335_v46  ;;  %v1345_v18 = vand.u32 2147483647, %v1335_v46 }
 0xeb1   : > { %3195 = vpow2.f32 %v2946_v11 }
 0xeb2   : > { %v1348_v20 = vor.u32 1.1754944e-38, %v1347_v17  ;;  %vm1346_vm9 = vcmp.eq.f32.partialorder %v1345_v18, 8.507059e+37 }
 0xeb6   : > { %v3194_v10 = vpop.eup %3193 }
 0xeb7   : > { %v1337_v12 = vmul.f32 %v3194_v10, %v1335_v46  ;;  %v3196_v14 = vpop.eup %3195  ;;  %vm1342_vm5 = vweird.f32 %v3194_v10 }
 0xeb8   : > { %v1271_v15 = vadd.f32 1.0, %v3196_v14  ;;  %vm1343_vm8 = vmor %vm1341_vm6, %vm1342_vm5 }
 0xeb9   : > { %v1338_v54 = vsub.f32 1.0, %v1337_v12 }
 0xeba   : > { %3197 = vrcp.f32 %v1271_v15  ;;  %v1283_v29 = vand.u32 2147483648, %v1271_v15  ;;  %vm1277_vm11 = vweird.f32 %v1271_v15  ;;  %v1281_v30 = vand.u32 2147483647, %v1271_v15 }
 0xebb   : > { %v1339_v13 = vmul.f32 %v3194_v10, %v1338_v54 }
 0xebc   : > { %v1284_v32 = vor.u32 1.1754944e-38, %v1283_v29  ;;  %vm1282_vm13 = vcmp.eq.f32.partialorder %v1281_v30, 8.507059e+37 }
 0xebd   : > { %v1340_v16 = vadd.f32 %v3194_v10, %v1339_v13 }
 0xebf   : > { %v1344_v19 = vsel %vm1343_vm8, %v3194_v10, %v1340_v16 }
 0xec0   : > { %v1349_v21 = vsel %vm1346_vm9, %v1348_v20, %v1344_v19  ;;  %v3198_v24 = vpop.eup %3197 }
 0xec1   : > { %v1273_v25 = vmul.f32 %v3198_v24, %v1271_v15  ;;  %vm1278_vm10 = vweird.f32 %v3198_v24  ;;  %v1352_v44 = vmul.f32 %v1349_v21, %v3844_v51 }
 0xec2   : > { %vm1279_vm12 = vmor %vm1277_vm11, %vm1278_vm10 }
 0xec3   : > { %v1274_v26 = vsub.f32 1.0, %v1273_v25 }
 0xec5   : > { %v1275_v27 = vmul.f32 %v3198_v24, %v1274_v26 }
 0xec7   : > { %v1276_v28 = vadd.f32 %v3198_v24, %v1275_v27 }
 0xec9   : > { %v1280_v31 = vsel %vm1279_vm12, %v3198_v24, %v1276_v28 }
 0xeca   : > { %v1285_v34 = vsel %vm1282_vm13, %v1284_v32, %v1280_v31 }
 0xecb   : > { %v1288_v53 = vmul.f32 %v1285_v34, %v3849_v43 }
 0xf06   : > { %v1355_v22 = vpop.permute.xlu2 %1354 }
 0xf07   : > { %v1357_v23 = vmul.f32 %v1355_v22, %v1349_v21 }
 0xf09   : > { %1359 = vrot.lane.b32.xlu1 %v1357_v23, %s3475_s16 }
 0xf1f   : > { %v1291_v33 = vpop.permute.xlu1 %1290 }
 0xf20   : > { %v1293_v41 = vmul.f32 %v1291_v33, %v1285_v34 }
 0xf22   : > { %1295 = vrot.lane.b32.xlu0 %v1293_v41, %s3475_s16 }
 0xf7b   : > { %v1360_v36 = vpop.permute.xlu1 %1359 }
 0xf7c   : > { %v3884_v49 = vadd.f32 %v1360_v36, %v1352_v44 }
 0xf7e   : > { %3199 = vtanh.f32 %v3884_v49 }
 0xf84   : > { %v3200_v37 = vpop.eup %3199 }
 0xf85   : > { %1365 = vrot.lane.b32.xlu0 %v3200_v37, %s3474_s12 }
 0xf94   : > { %v1296_v45 = vpop.permute.xlu0 %1295 }
 0xf95   : > { %v3889_v55 = vadd.f32 %v1296_v45, %v1288_v53 }
 0xf97   : > { %3201 = vtanh.f32 %v3889_v55 }
 0xf9d   : > { %v3202_v57 = vpop.eup %3201 }
 0xf9e   : > { %1301 = vrot.lane.b32.xlu2 %v3202_v57, %s3474_s12 }
 0xff7   : > { %v1366_v48 = vpop.permute.xlu0 %1365 }
 0xff8   : > { %v1368_v51 = vmul.f32 %v1366_v48, %v1349_v21  ;;  %v1302_v42 = vpop.permute.xlu2 %1301 }
 0xff9   : > { %v3893_v59 = vmul.f32 %v1302_v42, %v1285_v34 }
 0xffa   : > { %v1437_v35 = vpack.c.bf16 %v1368_v51, %v1368_v51  ;;  %1370 = vrot.lane.b32.xlu1 %v1368_v51, %s3475_s16 }
 0xffb   : > { %1373 = vrot.lane.b32.xlu2 %v3893_v59, %s3474_s12 }
 0xffc   : > { %1439 = vrot.lane.b32.xlu0 %v1437_v35, %s3475_s16 }
0x1055   : > { %v1374_v43 = vpop.permute.xlu2 %1373 }
0x106c   : > { %v1371_v60 = vpop.permute.xlu1 %1370 }
0x106d   : > { %v1376_v61 = vsel %vm520_vm2, %v1371_v60, %v1374_v43 }
0x106e   : > { %v1377_v62 = vpack.c.bf16 %v1376_v61, %v1376_v61  ;;  %v1440_v63 = vpop.permute.xlu0 %1439 }
0x106f   : > { %2951 = vmatmul.msk.bf16.vlgmr.msrb.gmra.mxu2 %vm520_vm2, %v1440_v63 }
0x1070   : > { %2949 = vmatmul.msk.bf16.vlgmr.msrb.gmra.mxu3 %vm615_vm7, %v1377_v62  ;;  %1954 = vmatpush.bf16.msrb.mxu2 %v3865_v0 }
0x1071   : > { %1889 = vmatpush.bf16.msrb.mxu3 %v3906_v3 }
0x1074   : > { %1955 = vmatpush.bf16.msrb.mxu2 %v3872_v1 }
0x1075   : > { %1890 = vmatpush.bf16.msrb.mxu3 %v3913_v5 }
0x1079   : > { %1891 = vmatpush.bf16.msrb.mxu3 %v3919_v2 }
0x107d   : > { %1892 = vmatpush.bf16.msrb.mxu3 %v3925_v6 }
0x10f2   : > { %v1453_v38 = vpop.f32.mrf.mxu2 }
0x10f3   : > { %v1457_v4 = vadd.f32 %v1453_v38, %v1436_v7  ;;  %v1390_v8 = vpop.f32.mrf.mxu3 }
0x10f4   : > { %v1391_v39 = vadd.f32 %v3931_v9, %v1390_v8 }
0x10f5   : > { %3203 = vtanh.f32 %v1457_v4  ;;  %v2952_v12 = vmul.f32 -1.442695, %v1457_v4 }
0x10f6   : > { %3205 = vtanh.f32 %v1391_v39  ;;  %v2950_v15 = vmul.f32 -1.442695, %v1391_v39 }
0x10f7   : > { %3207 = vpow2.f32 %v2952_v12 }
0x10fa   : > { %v1455_v40 = vpop.f32.mrf.mxu2 }
0x10fb   : > { %v3204_v46 = vpop.eup %3203  ;;  %v1392_v10 = vpop.f32.mrf.mxu3 }
0x10fc   : > { %v3206_v11 = vpop.eup %3205  ;;  %1480 = vrot.lane.b32.xlu2 %v3204_v46, %s3474_s12  ;;  %v1562_v46 = vld [vmem:[#allocation6 + $0x8] sm:$0x1] }
0x10fd   : > { %1416 = vrot.lane.b32.xlu1 %v3206_v11, %s3474_s12  ;;  %v3208_v54 = vpop.eup %3207 }
0x10fe   : > { %v1461_v13 = vadd.f32 1.0, %v3208_v54 }
0x1100   : > { %3209 = vrcp.f32 %v1461_v13  ;;  %v1473_v22 = vand.u32 2147483648, %v1461_v13  ;;  %vm1467_vm15 = vweird.f32 %v1461_v13  ;;  %v1471_v23 = vand.u32 2147483647, %v1461_v13 }
0x1101   : > { %3211 = vpow2.f32 %v2950_v15 }
0x1102   : > { %v1474_v25 = vor.u32 1.1754944e-38, %v1473_v22  ;;  %vm1472_vm1 = vcmp.eq.f32.partialorder %v1471_v23, 8.507059e+37 }
0x1106   : > { %v3210_v14 = vpop.eup %3209 }
0x1107   : > { %v1463_v16 = vmul.f32 %v3210_v14, %v1461_v13  ;;  %v3212_v19 = vpop.eup %3211  ;;  %vm1468_vm14 = vweird.f32 %v3210_v14 }
0x1108   : > { %v1397_v20 = vadd.f32 1.0, %v3212_v19  ;;  %vm1469_vm0 = vmor %vm1467_vm15, %vm1468_vm14 }
0x1109   : > { %v1464_v17 = vsub.f32 1.0, %v1463_v16 }
0x110a   : > { %3213 = vrcp.f32 %v1397_v20  ;;  %v1409_v34 = vand.u32 2147483648, %v1397_v20  ;;  %vm1403_vm4 = vweird.f32 %v1397_v20  ;;  %v1407_v41 = vand.u32 2147483647, %v1397_v20 }
0x110b   : > { %v1465_v18 = vmul.f32 %v3210_v14, %v1464_v17 }
0x110c   : > { %v1410_v36 = vor.u32 1.1754944e-38, %v1409_v34  ;;  %vm1408_vm6 = vcmp.eq.f32.partialorder %v1407_v41, 8.507059e+37 }
0x110d   : > { %v1466_v21 = vadd.f32 %v3210_v14, %v1465_v18 }
0x110f   : > { %v1470_v24 = vsel %vm1469_vm0, %v3210_v14, %v1466_v21 }
0x1110   : > { %v1475_v26 = vsel %vm1472_vm1, %v1474_v25, %v1470_v24  ;;  %v3214_v29 = vpop.eup %3213 }
0x1111   : > { %v1399_v30 = vmul.f32 %v3214_v29, %v1397_v20  ;;  %vm1404_vm3 = vweird.f32 %v3214_v29  ;;  %v1478_v57 = vmul.f32 %v1475_v26, %v3884_v49 }
0x1112   : > { %vm1405_vm5 = vmor %vm1403_vm4, %vm1404_vm3 }
0x1113   : > { %v1400_v31 = vsub.f32 1.0, %v1399_v30 }
0x1115   : > { %v1401_v32 = vmul.f32 %v3214_v29, %v1400_v31 }
0x1117   : > { %v1402_v33 = vadd.f32 %v3214_v29, %v1401_v32 }
0x1119   : > { %v1406_v44 = vsel %vm1405_vm5, %v3214_v29, %v1402_v33 }
0x111a   : > { %v1411_v53 = vsel %vm1408_vm6, %v1410_v36, %v1406_v44 }
0x111b   : > { %v1414_v35 = vmul.f32 %v1411_v53, %v3889_v55 }
0x1156   : > { %v1481_v27 = vpop.permute.xlu2 %1480 }
0x1157   : > { %v1483_v28 = vmul.f32 %v1481_v27, %v1475_v26 }
0x1159   : > { %1485 = vrot.lane.b32.xlu1 %v1483_v28, %s3475_s16 }
0x116f   : > { %v1417_v37 = vpop.permute.xlu1 %1416 }
0x1170   : > { %v1419_v45 = vmul.f32 %v1417_v37, %v1411_v53 }
0x1172   : > { %1421 = vrot.lane.b32.xlu0 %v1419_v45, %s3475_s16 }
0x11cb   : > { %v1486_v48 = vpop.permute.xlu1 %1485 }
0x11cc   : > { %v3939_v51 = vadd.f32 %v1486_v48, %v1478_v57 }
0x11ce   : > { %3215 = vtanh.f32 %v3939_v51 }
0x11d4   : > { %v3216_v42 = vpop.eup %3215 }
0x11d5   : > { %1491 = vrot.lane.b32.xlu0 %v3216_v42, %s3474_s12 }
0x11e4   : > { %v1422_v43 = vpop.permute.xlu0 %1421 }
0x11e5   : > { %v3944_v60 = vadd.f32 %v1422_v43, %v1414_v35 }
0x11e7   : > { %3217 = vtanh.f32 %v3944_v60 }
0x11ed   : > { %v3218_v61 = vpop.eup %3217 }
0x11ee   : > { %1427 = vrot.lane.b32.xlu2 %v3218_v61, %s3474_s12 }
0x1247   : > { %v1492_v62 = vpop.permute.xlu0 %1491 }
0x1248   : > { %v1494_v49 = vmul.f32 %v1492_v62, %v1475_v26  ;;  %v1428_v63 = vpop.permute.xlu2 %1427 }
0x1249   : > { %v3948_v7 = vmul.f32 %v1428_v63, %v1411_v53 }
0x124a   : > { %v1563_v38 = vpack.c.bf16 %v1494_v49, %v1494_v49  ;;  %1496 = vrot.lane.b32.xlu1 %v1494_v49, %s3475_s16 }
0x124b   : > { %1499 = vrot.lane.b32.xlu2 %v3948_v7, %s3474_s12 }
0x124c   : > { %1565 = vrot.lane.b32.xlu0 %v1563_v38, %s3475_s16 }
0x12a5   : > { %v1500_v55 = vpop.permute.xlu2 %1499 }
0x12bc   : > { %v1497_v4 = vpop.permute.xlu1 %1496 }
0x12bd   : > { %v1502_v8 = vsel %vm520_vm2, %v1497_v4, %v1500_v55 }
0x12be   : > { %v1503_v39 = vpack.c.bf16 %v1502_v8, %v1502_v8  ;;  %v1566_v40 = vpop.permute.xlu0 %1565 }
0x12bf   : > { %2955 = vmatmul.msk.bf16.vlgmr.msra.gmra.mxu1 %vm520_vm2, %v1566_v40 }
0x12c0   : > { %2953 = vmatmul.msk.bf16.vlgmr.msra.gmra.mxu0 %vm615_vm7, %v1503_v39  ;;  %2080 = vmatpush.bf16.msra.mxu1 %v3865_v0 }
0x12c1   : > { %2015 = vmatpush.bf16.msra.mxu0 %v3906_v3 }
0x12c4   : > { %2081 = vmatpush.bf16.msra.mxu1 %v3872_v1 }
0x12c5   : > { %2016 = vmatpush.bf16.msra.mxu0 %v3913_v5 }
0x12c9   : > { %2017 = vmatpush.bf16.msra.mxu0 %v3919_v2 }
0x12cd   : > { %2018 = vmatpush.bf16.msra.mxu0 %v3925_v6 }
0x133c   : > { %v1579_v10 = vpop.f32.mrf.mxu1 }
0x133d   : > { %v1583_v11 = vadd.f32 %v1579_v10, %v1562_v46  ;;  %v1516_v12 = vpop.f32.mrf.mxu0 }
0x133e   : > { %v1517_v54 = vadd.f32 %v3931_v9, %v1516_v12 }
0x133f   : > { %3219 = vtanh.f32 %v1583_v11  ;;  %v2956_v17 = vmul.f32 -1.442695, %v1583_v11 }
0x1340   : > { %3221 = vtanh.f32 %v1517_v54  ;;  %v2954_v21 = vmul.f32 -1.442695, %v1517_v54 }
0x1341   : > { %3223 = vpow2.f32 %v2956_v17 }
0x1344   : > { %v1581_v13 = vpop.f32.mrf.mxu1 }
0x1345   : > { %v3220_v14 = vpop.eup %3219  ;;  %v1518_v15 = vpop.f32.mrf.mxu0 }
0x1346   : > { %v3222_v16 = vpop.eup %3221  ;;  %1606 = vrot.lane.b32.xlu2 %v3220_v14, %s3474_s12  ;;  %v1688_v15 = vld [vmem:[#allocation6 + $0x9] sm:$0x1] }
0x1347   : > { %1542 = vrot.lane.b32.xlu1 %v3222_v16, %s3474_s12  ;;  %v3224_v18 = vpop.eup %3223 }
0x1348   : > { %v1587_v19 = vadd.f32 1.0, %v3224_v18 }
0x134a   : > { %3225 = vrcp.f32 %v1587_v19  ;;  %v1599_v28 = vand.u32 2147483648, %v1587_v19  ;;  %vm1593_vm9 = vweird.f32 %v1587_v19  ;;  %v1597_v29 = vand.u32 2147483647, %v1587_v19 }
0x134b   : > { %3227 = vpow2.f32 %v2954_v21 }
0x134c   : > { %v1600_v31 = vor.u32 1.1754944e-38, %v1599_v28  ;;  %vm1598_vm11 = vcmp.eq.f32.partialorder %v1597_v29, 8.507059e+37 }
0x1350   : > { %v3226_v20 = vpop.eup %3225 }
0x1351   : > { %v1589_v22 = vmul.f32 %v3226_v20, %v1587_v19  ;;  %v3228_v25 = vpop.eup %3227  ;;  %vm1594_vm8 = vweird.f32 %v3226_v20 }
0x1352   : > { %v1523_v26 = vadd.f32 1.0, %v3228_v25  ;;  %vm1595_vm10 = vmor %vm1593_vm9, %vm1594_vm8 }
0x1353   : > { %v1590_v23 = vsub.f32 1.0, %v1589_v22 }
0x1354   : > { %3229 = vrcp.f32 %v1523_v26  ;;  %v1535_v45 = vand.u32 2147483648, %v1523_v26  ;;  %vm1529_vm13 = vweird.f32 %v1523_v26  ;;  %v1533_v57 = vand.u32 2147483647, %v1523_v26 }
0x1355   : > { %v1591_v24 = vmul.f32 %v3226_v20, %v1590_v23 }
0x1356   : > { %v1536_v42 = vor.u32 1.1754944e-38, %v1535_v45  ;;  %vm1534_vm15 = vcmp.eq.f32.partialorder %v1533_v57, 8.507059e+37 }
0x1357   : > { %v1592_v27 = vadd.f32 %v3226_v20, %v1591_v24 }
0x1359   : > { %v1596_v30 = vsel %vm1595_vm10, %v3226_v20, %v1592_v27 }
0x135a   : > { %v1601_v32 = vsel %vm1598_vm11, %v1600_v31, %v1596_v30  ;;  %v3230_v41 = vpop.eup %3229 }
0x135b   : > { %v1525_v44 = vmul.f32 %v3230_v41, %v1523_v26  ;;  %vm1530_vm12 = vweird.f32 %v3230_v41  ;;  %v1604_v62 = vmul.f32 %v1601_v32, %v3939_v51 }
0x135c   : > { %vm1531_vm14 = vmor %vm1529_vm13, %vm1530_vm12 }
0x135d   : > { %v1526_v36 = vsub.f32 1.0, %v1525_v44 }
0x135f   : > { %v1527_v37 = vmul.f32 %v3230_v41, %v1526_v36 }
0x1361   : > { %v1528_v53 = vadd.f32 %v3230_v41, %v1527_v37 }
0x1363   : > { %v1532_v48 = vsel %vm1531_vm14, %v3230_v41, %v1528_v53 }
0x1364   : > { %v1537_v43 = vsel %vm1534_vm15, %v1536_v42, %v1532_v48 }
0x1365   : > { %v1540_v55 = vmul.f32 %v1537_v43, %v3944_v60 }
0x13a0   : > { %v1607_v33 = vpop.permute.xlu2 %1606 }
0x13a1   : > { %v1609_v34 = vmul.f32 %v1607_v33, %v1601_v32 }
0x13a3   : > { %1611 = vrot.lane.b32.xlu1 %v1609_v34, %s3475_s16 }
0x13b9   : > { %v1543_v35 = vpop.permute.xlu1 %1542 }
0x13ba   : > { %v1545_v61 = vmul.f32 %v1543_v35, %v1537_v43 }
0x13bc   : > { %1547 = vrot.lane.b32.xlu0 %v1545_v61, %s3475_s16 }
0x1415   : > { %v1612_v49 = vpop.permute.xlu1 %1611 }
0x1416   : > { %v3969_v63 = vadd.f32 %v1612_v49, %v1604_v62 }
0x1418   : > { %3231 = vtanh.f32 %v3969_v63 }
0x141e   : > { %v3232_v38 = vpop.eup %3231 }
0x141f   : > { %1617 = vrot.lane.b32.xlu0 %v3232_v38, %s3474_s12 }
0x142e   : > { %v1548_v4 = vpop.permute.xlu0 %1547 }
0x142f   : > { %v3974_v8 = vadd.f32 %v1548_v4, %v1540_v55 }
0x1431   : > { %3233 = vtanh.f32 %v3974_v8 }
0x1437   : > { %v3234_v39 = vpop.eup %3233 }
0x1438   : > { %1553 = vrot.lane.b32.xlu2 %v3234_v39, %s3474_s12 }
0x1491   : > { %v1618_v40 = vpop.permute.xlu0 %1617 }
0x1492   : > { %v1620_v51 = vmul.f32 %v1618_v40, %v1601_v32  ;;  %v1554_v46 = vpop.permute.xlu2 %1553 }
0x1493   : > { %v3978_v10 = vmul.f32 %v1554_v46, %v1537_v43 }
0x1494   : > { %v1689_v11 = vpack.c.bf16 %v1620_v51, %v1620_v51  ;;  %1622 = vrot.lane.b32.xlu1 %v1620_v51, %s3475_s16 }
0x1495   : > { %1625 = vrot.lane.b32.xlu2 %v3978_v10, %s3474_s12 }
0x1496   : > { %1691 = vrot.lane.b32.xlu0 %v1689_v11, %s3475_s16 }
0x14ef   : > { %v1626_v60 = vpop.permute.xlu2 %1625 }
0x1506   : > { %v1623_v12 = vpop.permute.xlu1 %1622 }
0x1507   : > { %v1628_v54 = vsel %vm520_vm2, %v1623_v12, %v1626_v60 }
0x1508   : > { %v1629_v13 = vpack.c.bf16 %v1628_v54, %v1628_v54  ;;  %v1692_v14 = vpop.permute.xlu0 %1691 }
0x1509   : > { %2959 = vmatmul.msk.bf16.vlgmr.msra.gmra.mxu2 %vm520_vm2, %v1692_v14 }
0x150a   : > { %2957 = vmatmul.msk.bf16.vlgmr.msra.gmra.mxu3 %vm615_vm7, %v1629_v13  ;;  %2206 = vmatpush.bf16.msra.mxu2 %v3865_v0 }
0x150b   : > { %2141 = vmatpush.bf16.msra.mxu3 %v3906_v3 }
0x150e   : > { %2207 = vmatpush.bf16.msra.mxu2 %v3872_v1 }
0x150f   : > { %2142 = vmatpush.bf16.msra.mxu3 %v3913_v5 }
0x1513   : > { %2143 = vmatpush.bf16.msra.mxu3 %v3919_v2 }
0x1517   : > { %2144 = vmatpush.bf16.msra.mxu3 %v3925_v6 }
0x158c   : > { %v1705_v16 = vpop.f32.mrf.mxu2 }
0x158d   : > { %v1709_v17 = vadd.f32 %v1705_v16, %v1688_v15  ;;  %v1642_v18 = vpop.f32.mrf.mxu3 }
0x158e   : > { %v1643_v19 = vadd.f32 %v3931_v9, %v1642_v18 }
0x158f   : > { %3235 = vtanh.f32 %v1709_v17  ;;  %v2960_v24 = vmul.f32 -1.442695, %v1709_v17 }
0x1590   : > { %3237 = vtanh.f32 %v1643_v19  ;;  %v2958_v28 = vmul.f32 -1.442695, %v1643_v19 }
0x1591   : > { %3239 = vpow2.f32 %v2960_v24 }
0x1594   : > { %v1707_v20 = vpop.f32.mrf.mxu2 }
0x1595   : > { %v3236_v21 = vpop.eup %3235  ;;  %v1644_v22 = vpop.f32.mrf.mxu3 }
0x1596   : > { %v3238_v23 = vpop.eup %3237  ;;  %1732 = vrot.lane.b32.xlu2 %v3236_v21, %s3474_s12 }
0x1597   : > { %1668 = vrot.lane.b32.xlu1 %v3238_v23, %s3474_s12  ;;  %v3240_v25 = vpop.eup %3239  ;;  %v1814_v23 = vld [vmem:[#allocation6 + $0xa] sm:$0x1] }
0x1598   : > { %v1713_v26 = vadd.f32 1.0, %v3240_v25 }
0x159a   : > { %3241 = vrcp.f32 %v1713_v26  ;;  %v1725_v41 = vand.u32 2147483648, %v1713_v26  ;;  %vm1719_vm1 = vweird.f32 %v1713_v26  ;;  %v1723_v44 = vand.u32 2147483647, %v1713_v26 }
0x159b   : > { %3243 = vpow2.f32 %v2958_v28 }
0x159c   : > { %v1726_v37 = vor.u32 1.1754944e-38, %v1725_v41  ;;  %vm1724_vm4 = vcmp.eq.f32.partialorder %v1723_v44, 8.507059e+37 }
0x15a0   : > { %v3242_v27 = vpop.eup %3241 }
0x15a1   : > { %v1715_v29 = vmul.f32 %v3242_v27, %v1713_v26  ;;  %v3244_v32 = vpop.eup %3243  ;;  %vm1720_vm0 = vweird.f32 %v3242_v27 }
0x15a2   : > { %v1649_v33 = vadd.f32 1.0, %v3244_v32  ;;  %vm1721_vm3 = vmor %vm1719_vm1, %vm1720_vm0 }
0x15a3   : > { %v1716_v30 = vsub.f32 1.0, %v1715_v29 }
0x15a4   : > { %3245 = vrcp.f32 %v1649_v33  ;;  %v1661_v62 = vand.u32 2147483648, %v1649_v33  ;;  %vm1655_vm6 = vweird.f32 %v1649_v33  ;;  %v1659_v49 = vand.u32 2147483647, %v1649_v33 }
0x15a5   : > { %v1717_v31 = vmul.f32 %v3242_v27, %v1716_v30 }
0x15a6   : > { %v1662_v55 = vor.u32 1.1754944e-38, %v1661_v62  ;;  %vm1660_vm9 = vcmp.eq.f32.partialorder %v1659_v49, 8.507059e+37 }
0x15a7   : > { %v1718_v34 = vadd.f32 %v3242_v27, %v1717_v31 }
0x15a9   : > { %v1722_v36 = vsel %vm1721_vm3, %v3242_v27, %v1718_v34 }
0x15aa   : > { %v1727_v53 = vsel %vm1724_vm4, %v1726_v37, %v1722_v36  ;;  %v3246_v48 = vpop.eup %3245 }
0x15ab   : > { %v1651_v42 = vmul.f32 %v3246_v48, %v1649_v33  ;;  %vm1656_vm5 = vweird.f32 %v3246_v48  ;;  %v1730_v51 = vmul.f32 %v1727_v53, %v3969_v63 }
0x15ac   : > { %vm1657_vm8 = vmor %vm1655_vm6, %vm1656_vm5 }
0x15ad   : > { %v1652_v35 = vsub.f32 1.0, %v1651_v42 }
0x15af   : > { %v1653_v43 = vmul.f32 %v3246_v48, %v1652_v35 }
0x15b1   : > { %v1654_v61 = vadd.f32 %v3246_v48, %v1653_v43 }
0x15b3   : > { %v1658_v38 = vsel %vm1657_vm8, %v3246_v48, %v1654_v61 }
0x15b4   : > { %v1663_v39 = vsel %vm1660_vm9, %v1662_v55, %v1658_v38 }
0x15b5   : > { %v1666_v12 = vmul.f32 %v1663_v39, %v3974_v8 }
0x15f0   : > { %v1733_v45 = vpop.permute.xlu2 %1732 }
0x15f1   : > { %v1735_v57 = vmul.f32 %v1733_v45, %v1727_v53 }
0x15f3   : > { %1737 = vrot.lane.b32.xlu1 %v1735_v57, %s3475_s16 }
0x1609   : > { %v1669_v4 = vpop.permute.xlu1 %1668 }
0x160a   : > { %v1671_v40 = vmul.f32 %v1669_v4, %v1663_v39 }
0x160c   : > { %1673 = vrot.lane.b32.xlu0 %v1671_v40, %s3475_s16 }
0x1665   : > { %v1738_v46 = vpop.permute.xlu1 %1737 }
0x1666   : > { %v3999_v11 = vadd.f32 %v1738_v46, %v1730_v51 }
0x1668   : > { %3247 = vtanh.f32 %v3999_v11 }
0x166e   : > { %v3248_v60 = vpop.eup %3247 }
0x166f   : > { %1743 = vrot.lane.b32.xlu0 %v3248_v60, %s3474_s12 }
0x167e   : > { %v1674_v54 = vpop.permute.xlu0 %1673 }
0x167f   : > { %v4004_v13 = vadd.f32 %v1674_v54, %v1666_v12 }
0x1681   : > { %3249 = vtanh.f32 %v4004_v13 }
0x1687   : > { %v3250_v14 = vpop.eup %3249 }
0x1688   : > { %1679 = vrot.lane.b32.xlu2 %v3250_v14, %s3474_s12 }
0x16e1   : > { %v1744_v15 = vpop.permute.xlu0 %1743 }
0x16e2   : > { %v1746_v63 = vmul.f32 %v1744_v15, %v1727_v53  ;;  %v1680_v16 = vpop.permute.xlu2 %1679 }
0x16e3   : > { %v4008_v17 = vmul.f32 %v1680_v16, %v1663_v39 }
0x16e4   : > { %v1815_v18 = vpack.c.bf16 %v1746_v63, %v1746_v63  ;;  %1748 = vrot.lane.b32.xlu1 %v1746_v63, %s3475_s16 }
0x16e5   : > { %1751 = vrot.lane.b32.xlu2 %v4008_v17, %s3474_s12 }
0x16e6   : > { %1817 = vrot.lane.b32.xlu0 %v1815_v18, %s3475_s16 }
0x173f   : > { %v1752_v8 = vpop.permute.xlu2 %1751 }
0x1756   : > { %v1749_v19 = vpop.permute.xlu1 %1748 }
0x1757   : > { %v1754_v20 = vsel %vm520_vm2, %v1749_v19, %v1752_v8 }
0x1758   : > { %v1755_v21 = vpack.c.bf16 %v1754_v20, %v1754_v20  ;;  %v1818_v22 = vpop.permute.xlu0 %1817 }
0x1759   : > { %2963 = vmatmul.msk.bf16.vlgmr.msrb.gmra.mxu1 %vm520_vm2, %v1818_v22 }
0x175a   : > { %2961 = vmatmul.msk.bf16.vlgmr.msrb.gmra.mxu0 %vm615_vm7, %v1755_v21  ;;  %2332 = vmatpush.bf16.msrb.mxu1 %v3865_v0 }
0x175b   : > { %2267 = vmatpush.bf16.msrb.mxu0 %v3906_v3 }
0x175e   : > { %2333 = vmatpush.bf16.msrb.mxu1 %v3872_v1 }
0x175f   : > { %2268 = vmatpush.bf16.msrb.mxu0 %v3913_v5 }
0x1763   : > { %2269 = vmatpush.bf16.msrb.mxu0 %v3919_v2 }
0x1767   : > { %2270 = vmatpush.bf16.msrb.mxu0 %v3925_v6 }
0x17d6   : > { %v1831_v24 = vpop.f32.mrf.mxu1 }
0x17d7   : > { %v1835_v25 = vadd.f32 %v1831_v24, %v1814_v23  ;;  %v1768_v26 = vpop.f32.mrf.mxu0 }
0x17d8   : > { %v1769_v27 = vadd.f32 %v3931_v9, %v1768_v26 }
0x17d9   : > { %3251 = vtanh.f32 %v1835_v25  ;;  %v2964_v32 = vmul.f32 -1.442695, %v1835_v25 }
0x17da   : > { %3253 = vtanh.f32 %v1769_v27  ;;  %v2962_v44 = vmul.f32 -1.442695, %v1769_v27 }
0x17db   : > { %3255 = vpow2.f32 %v2964_v32  ;;  %v1940_v32 = vld [vmem:[#allocation6 + $0xb] sm:$0x1] }
0x17de   : > { %v1833_v28 = vpop.f32.mrf.mxu1 }
0x17df   : > { %v3252_v29 = vpop.eup %3251  ;;  %v1770_v30 = vpop.f32.mrf.mxu0 }
0x17e0   : > { %v3254_v31 = vpop.eup %3253  ;;  %1858 = vrot.lane.b32.xlu2 %v3252_v29, %s3474_s12 }
0x17e1   : > { %1794 = vrot.lane.b32.xlu1 %v3254_v31, %s3474_s12  ;;  %v3256_v33 = vpop.eup %3255 }
0x17e2   : > { %v1839_v34 = vadd.f32 1.0, %v3256_v33 }
0x17e4   : > { %3257 = vrcp.f32 %v1839_v34  ;;  %v1851_v42 = vand.u32 2147483648, %v1839_v34  ;;  %vm1845_vm11 = vweird.f32 %v1839_v34  ;;  %v1849_v35 = vand.u32 2147483647, %v1839_v34 }
0x17e5   : > { %3259 = vpow2.f32 %v2962_v44 }
0x17e6   : > { %v1852_v61 = vor.u32 1.1754944e-38, %v1851_v42  ;;  %vm1850_vm13 = vcmp.eq.f32.partialorder %v1849_v35, 8.507059e+37 }
0x17ea   : > { %v3258_v41 = vpop.eup %3257 }
0x17eb   : > { %v1841_v36 = vmul.f32 %v3258_v41, %v1839_v34  ;;  %v3260_v45 = vpop.eup %3259  ;;  %vm1846_vm10 = vweird.f32 %v3258_v41 }
0x17ec   : > { %v1775_v57 = vadd.f32 1.0, %v3260_v45  ;;  %vm1847_vm12 = vmor %vm1845_vm11, %vm1846_vm10 }
0x17ed   : > { %v1842_v37 = vsub.f32 1.0, %v1841_v36 }
0x17ee   : > { %3261 = vrcp.f32 %v1775_v57  ;;  %v1787_v46 = vand.u32 2147483648, %v1775_v57  ;;  %vm1781_vm15 = vweird.f32 %v1775_v57  ;;  %v1785_v60 = vand.u32 2147483647, %v1775_v57 }
0x17ef   : > { %v1843_v53 = vmul.f32 %v3258_v41, %v1842_v37 }
0x17f0   : > { %v1788_v54 = vor.u32 1.1754944e-38, %v1787_v46  ;;  %vm1786_vm1 = vcmp.eq.f32.partialorder %v1785_v60, 8.507059e+37 }
0x17f1   : > { %v1844_v48 = vadd.f32 %v3258_v41, %v1843_v53 }
0x17f3   : > { %v1848_v43 = vsel %vm1847_vm12, %v3258_v41, %v1844_v48 }
0x17f4   : > { %v1853_v62 = vsel %vm1850_vm13, %v1852_v61, %v1848_v43  ;;  %v3262_v55 = vpop.eup %3261 }
0x17f5   : > { %v1777_v4 = vmul.f32 %v3262_v55, %v1775_v57  ;;  %vm1782_vm14 = vweird.f32 %v3262_v55  ;;  %v1856_v16 = vmul.f32 %v1853_v62, %v3999_v11 }
0x17f6   : > { %vm1783_vm0 = vmor %vm1781_vm15, %vm1782_vm14 }
0x17f7   : > { %v1778_v39 = vsub.f32 1.0, %v1777_v4 }
0x17f9   : > { %v1779_v40 = vmul.f32 %v3262_v55, %v1778_v39 }
0x17fb   : > { %v1780_v51 = vadd.f32 %v3262_v55, %v1779_v40 }
0x17fd   : > { %v1784_v12 = vsel %vm1783_vm0, %v3262_v55, %v1780_v51 }
0x17fe   : > { %v1789_v15 = vsel %vm1786_vm1, %v1788_v54, %v1784_v12 }
0x17ff   : > { %v1792_v20 = vmul.f32 %v1789_v15, %v4004_v13 }
0x183a   : > { %v1859_v49 = vpop.permute.xlu2 %1858 }
0x183b   : > { %v1861_v38 = vmul.f32 %v1859_v49, %v1853_v62 }
0x183d   : > { %1863 = vrot.lane.b32.xlu1 %v1861_v38, %s3475_s16 }
0x1853   : > { %v1795_v14 = vpop.permute.xlu1 %1794 }
0x1854   : > { %v1797_v63 = vmul.f32 %v1795_v14, %v1789_v15 }
0x1856   : > { %1799 = vrot.lane.b32.xlu0 %v1797_v63, %s3475_s16 }
0x18af   : > { %v1864_v18 = vpop.permute.xlu1 %1863 }
0x18b0   : > { %v4029_v8 = vadd.f32 %v1864_v18, %v1856_v16 }
0x18b2   : > { %3263 = vtanh.f32 %v4029_v8 }
0x18b8   : > { %v3264_v19 = vpop.eup %3263 }
0x18b9   : > { %1869 = vrot.lane.b32.xlu0 %v3264_v19, %s3474_s12 }
0x18c8   : > { %v1800_v21 = vpop.permute.xlu0 %1799 }
0x18c9   : > { %v4034_v22 = vadd.f32 %v1800_v21, %v1792_v20 }
0x18cb   : > { %3265 = vtanh.f32 %v4034_v22 }
0x18d1   : > { %v3266_v23 = vpop.eup %3265 }
0x18d2   : > { %1805 = vrot.lane.b32.xlu2 %v3266_v23, %s3474_s12 }
0x192b   : > { %v1870_v24 = vpop.permute.xlu0 %1869 }
0x192c   : > { %v1872_v11 = vmul.f32 %v1870_v24, %v1853_v62  ;;  %v1806_v25 = vpop.permute.xlu2 %1805 }
0x192d   : > { %v4038_v26 = vmul.f32 %v1806_v25, %v1789_v15 }
0x192e   : > { %v1941_v27 = vpack.c.bf16 %v1872_v11, %v1872_v11  ;;  %1874 = vrot.lane.b32.xlu1 %v1872_v11, %s3475_s16 }
0x192f   : > { %1877 = vrot.lane.b32.xlu2 %v4038_v26, %s3474_s12 }
0x1930   : > { %1943 = vrot.lane.b32.xlu0 %v1941_v27, %s3475_s16 }
0x1989   : > { %v1878_v13 = vpop.permute.xlu2 %1877 }
0x19a0   : > { %v1875_v28 = vpop.permute.xlu1 %1874 }
0x19a1   : > { %v1880_v29 = vsel %vm520_vm2, %v1875_v28, %v1878_v13 }
0x19a2   : > { %v1881_v30 = vpack.c.bf16 %v1880_v29, %v1880_v29  ;;  %v1944_v31 = vpop.permute.xlu0 %1943 }
0x19a3   : > { %2967 = vmatmul.msk.bf16.vlgmr.msrb.gmra.mxu2 %vm520_vm2, %v1944_v31 }
0x19a4   : > { %2965 = vmatmul.msk.bf16.vlgmr.msrb.gmra.mxu3 %vm615_vm7, %v1881_v30  ;;  %2458 = vmatpush.bf16.msrb.mxu2 %v3865_v0 }
0x19a5   : > { %2393 = vmatpush.bf16.msrb.mxu3 %v3906_v3 }
0x19a8   : > { %2459 = vmatpush.bf16.msrb.mxu2 %v3872_v1 }
0x19a9   : > { %2394 = vmatpush.bf16.msrb.mxu3 %v3913_v5 }
0x19ad   : > { %2395 = vmatpush.bf16.msrb.mxu3 %v3919_v2 }
0x19b1   : > { %2396 = vmatpush.bf16.msrb.mxu3 %v3925_v6 }
0x1a26   : > { %v1957_v33 = vpop.f32.mrf.mxu2 }
0x1a27   : > { %v1961_v34 = vadd.f32 %v1957_v33, %v1940_v32  ;;  %v1894_v41 = vpop.f32.mrf.mxu3 }
0x1a28   : > { %v1895_v44 = vadd.f32 %v3931_v9, %v1894_v41 }
0x1a29   : > { %3267 = vtanh.f32 %v1961_v34  ;;  %v2968_v1 = vmul.f32 -1.442695, %v1961_v34 }
0x1a2a   : > { %3269 = vtanh.f32 %v1895_v44  ;;  %v2966_v42 = vmul.f32 -1.442695, %v1895_v44 }
0x1a2b   : > { %3271 = vpow2.f32 %v2968_v1 }
0x1a2e   : > { %v1959_v36 = vpop.f32.mrf.mxu2 }
0x1a2f   : > { %v3268_v0 = vpop.eup %3267  ;;  %v1896_v37 = vpop.f32.mrf.mxu3 }
0x1a30   : > { %v3270_v53 = vpop.eup %3269  ;;  %1984 = vrot.lane.b32.xlu2 %v3268_v0, %s3474_s12 }
0x1a31   : > { %1920 = vrot.lane.b32.xlu1 %v3270_v53, %s3474_s12  ;;  %v3272_v45 = vpop.eup %3271  ;;  %v2066_v53 = vld [vmem:[#allocation6 + $0xc] sm:$0x1] }
0x1a32   : > { %v1965_v57 = vadd.f32 1.0, %v3272_v45 }
0x1a34   : > { %3273 = vrcp.f32 %v1965_v57  ;;  %v1977_v55 = vand.u32 2147483648, %v1965_v57  ;;  %vm1971_vm4 = vweird.f32 %v1965_v57  ;;  %v1975_v4 = vand.u32 2147483647, %v1965_v57 }
0x1a35   : > { %3275 = vpow2.f32 %v2966_v42 }
0x1a36   : > { %v1978_v40 = vor.u32 1.1754944e-38, %v1977_v55  ;;  %vm1976_vm6 = vcmp.eq.f32.partialorder %v1975_v4, 8.507059e+37 }
0x1a3a   : > { %v3274_v48 = vpop.eup %3273 }
0x1a3b   : > { %v1967_v35 = vmul.f32 %v3274_v48, %v1965_v57  ;;  %v3276_v62 = vpop.eup %3275  ;;  %vm1972_vm3 = vweird.f32 %v3274_v48 }
0x1a3c   : > { %v1901_v49 = vadd.f32 1.0, %v3276_v62  ;;  %vm1973_vm5 = vmor %vm1971_vm4, %vm1972_vm3 }
0x1a3d   : > { %v1968_v43 = vsub.f32 1.0, %v1967_v35 }
0x1a3e   : > { %3277 = vrcp.f32 %v1901_v49  ;;  %v1913_v16 = vand.u32 2147483648, %v1901_v49  ;;  %vm1907_vm9 = vweird.f32 %v1901_v49  ;;  %v1911_v18 = vand.u32 2147483647, %v1901_v49 }
0x1a3f   : > { %v1969_v61 = vmul.f32 %v3274_v48, %v1968_v43 }
0x1a40   : > { %v1914_v20 = vor.u32 1.1754944e-38, %v1913_v16  ;;  %vm1912_vm11 = vcmp.eq.f32.partialorder %v1911_v18, 8.507059e+37 }
0x1a41   : > { %v1970_v38 = vadd.f32 %v3274_v48, %v1969_v61 }
0x1a43   : > { %v1974_v39 = vsel %vm1973_vm5, %v3274_v48, %v1970_v38 }
0x1a44   : > { %v1979_v51 = vsel %vm1976_vm6, %v1978_v40, %v1974_v39  ;;  %v3278_v12 = vpop.eup %3277 }
0x1a45   : > { %v1903_v54 = vmul.f32 %v3278_v12, %v1901_v49  ;;  %vm1908_vm8 = vweird.f32 %v3278_v12  ;;  %v1982_v11 = vmul.f32 %v1979_v51, %v4029_v8 }
0x1a46   : > { %vm1909_vm10 = vmor %vm1907_vm9, %vm1908_vm8 }
0x1a47   : > { %v1904_v14 = vsub.f32 1.0, %v1903_v54 }
0x1a49   : > { %v1905_v15 = vmul.f32 %v3278_v12, %v1904_v14 }
0x1a4b   : > { %v1906_v63 = vadd.f32 %v3278_v12, %v1905_v15 }
0x1a4d   : > { %v1910_v19 = vsel %vm1909_vm10, %v3278_v12, %v1906_v63 }
0x1a4e   : > { %v1915_v23 = vsel %vm1912_vm11, %v1914_v20, %v1910_v19 }
0x1a4f   : > { %v1918_v28 = vmul.f32 %v1915_v23, %v4034_v22 }
0x1a8a   : > { %v1985_v46 = vpop.permute.xlu2 %1984 }
0x1a8b   : > { %v1987_v60 = vmul.f32 %v1985_v46, %v1979_v51 }
0x1a8d   : > { %1989 = vrot.lane.b32.xlu1 %v1987_v60, %s3475_s16 }
0x1aa3   : > { %v1921_v21 = vpop.permute.xlu1 %1920 }
0x1aa4   : > { %v1923_v24 = vmul.f32 %v1921_v21, %v1915_v23 }
0x1aa6   : > { %1925 = vrot.lane.b32.xlu0 %v1923_v24, %s3475_s16 }
0x1aff   : > { %v1990_v25 = vpop.permute.xlu1 %1989 }
0x1b00   : > { %v4059_v27 = vadd.f32 %v1990_v25, %v1982_v11 }
0x1b02   : > { %3279 = vtanh.f32 %v4059_v27 }
0x1b08   : > { %v3280_v13 = vpop.eup %3279 }
0x1b09   : > { %1995 = vrot.lane.b32.xlu0 %v3280_v13, %s3474_s12 }
0x1b18   : > { %v1926_v29 = vpop.permute.xlu0 %1925 }
0x1b19   : > { %v4064_v30 = vadd.f32 %v1926_v29, %v1918_v28 }
0x1b1b   : > { %3281 = vtanh.f32 %v4064_v30 }
0x1b21   : > { %v3282_v31 = vpop.eup %3281 }
0x1b22   : > { %1931 = vrot.lane.b32.xlu2 %v3282_v31, %s3474_s12 }
0x1b7b   : > { %v1996_v32 = vpop.permute.xlu0 %1995 }
0x1b7c   : > { %v1998_v8 = vmul.f32 %v1996_v32, %v1979_v51  ;;  %v1932_v33 = vpop.permute.xlu2 %1931 }
0x1b7d   : > { %v4068_v34 = vmul.f32 %v1932_v33, %v1915_v23 }
0x1b7e   : > { %v2067_v41 = vpack.c.bf16 %v1998_v8, %v1998_v8  ;;  %2000 = vrot.lane.b32.xlu1 %v1998_v8, %s3475_s16 }
0x1b7f   : > { %2003 = vrot.lane.b32.xlu2 %v4068_v34, %s3474_s12 }
0x1b80   : > { %2069 = vrot.lane.b32.xlu0 %v2067_v41, %s3475_s16 }
0x1bd9   : > { %v2004_v22 = vpop.permute.xlu2 %2003 }
0x1bf0   : > { %v2001_v44 = vpop.permute.xlu1 %2000 }
0x1bf1   : > { %v2006_v36 = vsel %vm520_vm2, %v2001_v44, %v2004_v22 }
0x1bf2   : > { %v2007_v0 = vpack.c.bf16 %v2006_v36, %v2006_v36  ;;  %v2070_v37 = vpop.permute.xlu0 %2069 }
0x1bf3   : > { %2971 = vmatmul.msk.bf16.vlgmr.msra.gmra.mxu1 %vm520_vm2, %v2070_v37 }
0x1bf4   : > { %2969 = vmatmul.msk.bf16.vlgmr.msra.gmra.mxu0 %vm615_vm7, %v2007_v0 }
0x1bf5   : > { %2519 = vmatpush.bf16.msra.mxu0 %v3906_v3 }
0x1bf9   : > { %2520 = vmatpush.bf16.msra.mxu0 %v3913_v5 }
0x1bfd   : > { %2521 = vmatpush.bf16.msra.mxu0 %v3919_v2 }
0x1c01   : > { %2522 = vmatpush.bf16.msra.mxu0 %v3925_v6 }
0x1c70   : > { %v2083_v1 = vpop.f32.mrf.mxu1 }
0x1c71   : > { %v2087_v45 = vadd.f32 %v2083_v1, %v2066_v53  ;;  %v2020_v57 = vpop.f32.mrf.mxu0 }
0x1c72   : > { %v2021_v48 = vadd.f32 %v3931_v9, %v2020_v57 }
0x1c73   : > { %3283 = vtanh.f32 %v2087_v45  ;;  %v2972_v3 = vmul.f32 -1.442695, %v2087_v45 }
0x1c74   : > { %3285 = vtanh.f32 %v2021_v48  ;;  %v2970_v62 = vmul.f32 -1.442695, %v2021_v48  ;;  %v2192_v48 = vld [vmem:[#allocation6 + $0xd] sm:$0x1] }
0x1c75   : > { %3287 = vpow2.f32 %v2972_v3 }
0x1c78   : > { %v2085_v42 = vpop.f32.mrf.mxu1 }
0x1c79   : > { %v3284_v35 = vpop.eup %3283  ;;  %v2022_v43 = vpop.f32.mrf.mxu0 }
0x1c7a   : > { %v3286_v61 = vpop.eup %3285  ;;  %2110 = vrot.lane.b32.xlu2 %v3284_v35, %s3474_s12 }
0x1c7b   : > { %2046 = vrot.lane.b32.xlu1 %v3286_v61, %s3474_s12  ;;  %v3288_v5 = vpop.eup %3287  ;;  %v4108_v61 = vld [vmem:[%s4323_s5] sm:$0x1] }
0x1c7c   : > { %v2091_v2 = vadd.f32 1.0, %v3288_v5 }
0x1c7e   : > { %3289 = vrcp.f32 %v2091_v2  ;;  %v2103_v40 = vand.u32 2147483648, %v2091_v2  ;;  %vm2097_vm13 = vweird.f32 %v2091_v2  ;;  %v2101_v51 = vand.u32 2147483647, %v2091_v2 }
0x1c7f   : > { %3291 = vpow2.f32 %v2970_v62 }
0x1c80   : > { %v2104_v60 = vor.u32 1.1754944e-38, %v2103_v40  ;;  %vm2102_vm15 = vcmp.eq.f32.partialorder %v2101_v51, 8.507059e+37 }
0x1c84   : > { %v3290_v6 = vpop.eup %3289 }
0x1c85   : > { %v2093_v49 = vmul.f32 %v3290_v6, %v2091_v2  ;;  %v3292_v55 = vpop.eup %3291  ;;  %vm2098_vm12 = vweird.f32 %v3290_v6 }
0x1c86   : > { %v2027_v4 = vadd.f32 1.0, %v3292_v55  ;;  %vm2099_vm14 = vmor %vm2097_vm13, %vm2098_vm12 }
0x1c87   : > { %v2094_v9 = vsub.f32 1.0, %v2093_v49 }
0x1c88   : > { %3293 = vrcp.f32 %v2027_v4  ;;  %v2039_v20 = vand.u32 2147483648, %v2027_v4  ;;  %vm2033_vm1 = vweird.f32 %v2027_v4  ;;  %v2037_v21 = vand.u32 2147483647, %v2027_v4 }
0x1c89   : > { %v2095_v38 = vmul.f32 %v3290_v6, %v2094_v9 }
0x1c8a   : > { %v2040_v24 = vor.u32 1.1754944e-38, %v2039_v20  ;;  %vm2038_vm4 = vcmp.eq.f32.partialorder %v2037_v21, 8.507059e+37 }
0x1c8b   : > { %v2096_v39 = vadd.f32 %v3290_v6, %v2095_v38 }
0x1c8d   : > { %v2100_v46 = vsel %vm2099_vm14, %v3290_v6, %v2096_v39 }
0x1c8e   : > { %v2105_v12 = vsel %vm2102_vm15, %v2104_v60, %v2100_v46  ;;  %v3294_v15 = vpop.eup %3293 }
0x1c8f   : > { %v2029_v63 = vmul.f32 %v3294_v15, %v2027_v4  ;;  %vm2034_vm0 = vweird.f32 %v3294_v15  ;;  %v2108_v28 = vmul.f32 %v2105_v12, %v4059_v27 }
0x1c90   : > { %vm2035_vm3 = vmor %vm2033_vm1, %vm2034_vm0 }
0x1c91   : > { %v2030_v16 = vsub.f32 1.0, %v2029_v63 }
0x1c93   : > { %v2031_v18 = vmul.f32 %v3294_v15, %v2030_v16 }
0x1c95   : > { %v2032_v19 = vadd.f32 %v3294_v15, %v2031_v18 }
0x1c97   : > { %v2036_v23 = vsel %vm2035_vm3, %v3294_v15, %v2032_v19 }
0x1c98   : > { %v2041_v25 = vsel %vm2038_vm4, %v2040_v24, %v2036_v23 }
0x1c99   : > { %v2044_v8 = vmul.f32 %v2041_v25, %v4064_v30 }
0x1cd4   : > { %v2111_v54 = vpop.permute.xlu2 %2110 }
0x1cd5   : > { %v2113_v14 = vmul.f32 %v2111_v54, %v2105_v12 }
0x1cd7   : > { %2115 = vrot.lane.b32.xlu1 %v2113_v14, %s3475_s16 }
0x1ced   : > { %v2047_v11 = vpop.permute.xlu1 %2046 }
0x1cee   : > { %v2049_v13 = vmul.f32 %v2047_v11, %v2041_v25 }
0x1cf0   : > { %2051 = vrot.lane.b32.xlu0 %v2049_v13, %s3475_s16 }
0x1d49   : > { %v2116_v29 = vpop.permute.xlu1 %2115 }
0x1d4a   : > { %v4087_v31 = vadd.f32 %v2116_v29, %v2108_v28 }
0x1d4c   : > { %3295 = vtanh.f32 %v4087_v31 }
0x1d52   : > { %v3296_v32 = vpop.eup %3295 }
0x1d53   : > { %2121 = vrot.lane.b32.xlu0 %v3296_v32, %s3474_s12 }
0x1d62   : > { %v2052_v33 = vpop.permute.xlu0 %2051 }
0x1d63   : > { %v4092_v41 = vadd.f32 %v2052_v33, %v2044_v8 }
0x1d65   : > { %3297 = vtanh.f32 %v4092_v41 }
0x1d6b   : > { %v3298_v22 = vpop.eup %3297 }
0x1d6c   : > { %2057 = vrot.lane.b32.xlu2 %v3298_v22, %s3474_s12 }
0x1dc5   : > { %v2122_v44 = vpop.permute.xlu0 %2121 }
0x1dc6   : > { %v2124_v27 = vmul.f32 %v2122_v44, %v2105_v12  ;;  %v2058_v36 = vpop.permute.xlu2 %2057 }
0x1dc7   : > { %v4096_v0 = vmul.f32 %v2058_v36, %v2041_v25 }
0x1dc8   : > { %v2193_v37 = vpack.c.bf16 %v2124_v27, %v2124_v27  ;;  %2126 = vrot.lane.b32.xlu1 %v2124_v27, %s3475_s16 }
0x1dc9   : > { %2129 = vrot.lane.b32.xlu2 %v4096_v0, %s3474_s12 }
0x1dca   : > { %2195 = vrot.lane.b32.xlu0 %v2193_v37, %s3475_s16 }
0x1e23   : > { %v2130_v30 = vpop.permute.xlu2 %2129 }
0x1e3a   : > { %v2127_v53 = vpop.permute.xlu1 %2126 }
0x1e3b   : > { %v2132_v1 = vsel %vm520_vm2, %v2127_v53, %v2130_v30 }
0x1e3c   : > { %v2133_v45 = vpack.c.bf16 %v2132_v1, %v2132_v1  ;;  %v2196_v57 = vpop.permute.xlu0 %2195 }
0x1e3d   : > { %2975 = vmatmul.msk.bf16.vlgmr.msra.gmra.mxu2 %vm520_vm2, %v2196_v57 }
0x1e3e   : > { %2973 = vmatmul.msk.bf16.vlgmr.msra.gmra.mxu3 %vm615_vm7, %v2133_v45 }
0x1ec0   : > { %v2209_v42 = vpop.f32.mrf.mxu2 }
0x1ec1   : > { %v2213_v35 = vadd.f32 %v2209_v42, %v2192_v48  ;;  %v2146_v43 = vpop.f32.mrf.mxu3 }
0x1ec2   : > { %v2147_v3 = vadd.f32 %v4108_v61, %v2146_v43 }
0x1ec3   : > { %3299 = vtanh.f32 %v2213_v35  ;;  %v2976_v49 = vmul.f32 -1.442695, %v2213_v35 }
0x1ec4   : > { %3301 = vtanh.f32 %v2147_v3  ;;  %v2974_v4 = vmul.f32 -1.442695, %v2147_v3 }
0x1ec5   : > { %3303 = vpow2.f32 %v2976_v49 }
0x1ec8   : > { %v2211_v5 = vpop.f32.mrf.mxu2 }
0x1ec9   : > { %v3300_v2 = vpop.eup %3299  ;;  %v2148_v6 = vpop.f32.mrf.mxu3 }
0x1eca   : > { %v3302_v62 = vpop.eup %3301  ;;  %2236 = vrot.lane.b32.xlu2 %v3300_v2, %s3474_s12  ;;  %v2318_v2 = vld [vmem:[#allocation6 + $0xe] sm:$0x1] }
0x1ecb   : > { %2172 = vrot.lane.b32.xlu1 %v3302_v62, %s3474_s12  ;;  %v3304_v9 = vpop.eup %3303 }
0x1ecc   : > { %v2217_v38 = vadd.f32 1.0, %v3304_v9 }
0x1ece   : > { %3305 = vrcp.f32 %v2217_v38  ;;  %v2229_v54 = vand.u32 2147483648, %v2217_v38  ;;  %vm2223_vm6 = vweird.f32 %v2217_v38  ;;  %v2227_v14 = vand.u32 2147483647, %v2217_v38 }
0x1ecf   : > { %3307 = vpow2.f32 %v2974_v4 }
0x1ed0   : > { %v2230_v63 = vor.u32 1.1754944e-38, %v2229_v54  ;;  %vm2228_vm9 = vcmp.eq.f32.partialorder %v2227_v14, 8.507059e+37 }
0x1ed4   : > { %v3306_v55 = vpop.eup %3305 }
0x1ed5   : > { %v2219_v39 = vmul.f32 %v3306_v55, %v2217_v38  ;;  %v3308_v46 = vpop.eup %3307  ;;  %vm2224_vm5 = vweird.f32 %v3306_v55 }
0x1ed6   : > { %v2153_v60 = vadd.f32 1.0, %v3308_v46  ;;  %vm2225_vm8 = vmor %vm2223_vm6, %vm2224_vm5 }
0x1ed7   : > { %v2220_v40 = vsub.f32 1.0, %v2219_v39 }
0x1ed8   : > { %3309 = vrcp.f32 %v2153_v60  ;;  %v2165_v25 = vand.u32 2147483648, %v2153_v60  ;;  %vm2159_vm11 = vweird.f32 %v2153_v60  ;;  %v2163_v13 = vand.u32 2147483647, %v2153_v60 }
0x1ed9   : > { %v2221_v51 = vmul.f32 %v3306_v55, %v2220_v40 }
0x1eda   : > { %v2166_v29 = vor.u32 1.1754944e-38, %v2165_v25  ;;  %vm2164_vm13 = vcmp.eq.f32.partialorder %v2163_v13, 8.507059e+37 }
0x1edb   : > { %v2222_v12 = vadd.f32 %v3306_v55, %v2221_v51 }
0x1edd   : > { %v2226_v15 = vsel %vm2225_vm8, %v3306_v55, %v2222_v12 }
0x1ede   : > { %v2231_v16 = vsel %vm2228_vm9, %v2230_v63, %v2226_v15  ;;  %v3310_v20 = vpop.eup %3309 }
0x1edf   : > { %v2155_v21 = vmul.f32 %v3310_v20, %v2153_v60  ;;  %vm2160_vm10 = vweird.f32 %v3310_v20  ;;  %v2234_v22 = vmul.f32 %v2231_v16, %v4087_v31 }
0x1ee0   : > { %vm2161_vm12 = vmor %vm2159_vm11, %vm2160_vm10 }
0x1ee1   : > { %v2156_v23 = vsub.f32 1.0, %v2155_v21 }
0x1ee3   : > { %v2157_v24 = vmul.f32 %v3310_v20, %v2156_v23 }
0x1ee5   : > { %v2158_v11 = vadd.f32 %v3310_v20, %v2157_v24 }
0x1ee7   : > { %v2162_v28 = vsel %vm2161_vm12, %v3310_v20, %v2158_v11 }
0x1ee8   : > { %v2167_v8 = vsel %vm2164_vm13, %v2166_v29, %v2162_v28 }
0x1ee9   : > { %v2170_v37 = vmul.f32 %v2167_v8, %v4092_v41 }
0x1f24   : > { %v2237_v18 = vpop.permute.xlu2 %2236 }
0x1f25   : > { %v2239_v19 = vmul.f32 %v2237_v18, %v2231_v16 }
0x1f27   : > { %2241 = vrot.lane.b32.xlu1 %v2239_v19, %s3475_s16 }
0x1f3d   : > { %v2173_v32 = vpop.permute.xlu1 %2172 }
0x1f3e   : > { %v2175_v33 = vmul.f32 %v2173_v32, %v2167_v8 }
0x1f40   : > { %2177 = vrot.lane.b32.xlu0 %v2175_v33, %s3475_s16 }
0x1f99   : > { %v2242_v44 = vpop.permute.xlu1 %2241 }
0x1f9a   : > { %v4116_v27 = vadd.f32 %v2242_v44, %v2234_v22 }
0x1f9c   : > { %3311 = vtanh.f32 %v4116_v27 }
0x1fa2   : > { %v3312_v36 = vpop.eup %3311 }
0x1fa3   : > { %2247 = vrot.lane.b32.xlu0 %v3312_v36, %s3474_s12 }
0x1fb2   : > { %v2178_v30 = vpop.permute.xlu0 %2177 }
0x1fb3   : > { %v4121_v53 = vadd.f32 %v2178_v30, %v2170_v37 }
0x1fb5   : > { %3313 = vtanh.f32 %v4121_v53 }
0x1fbb   : > { %v3314_v1 = vpop.eup %3313 }
0x1fbc   : > { %2183 = vrot.lane.b32.xlu2 %v3314_v1, %s3474_s12 }
0x2015   : > { %v2248_v45 = vpop.permute.xlu0 %2247 }
0x2016   : > { %v2250_v31 = vmul.f32 %v2248_v45, %v2231_v16  ;;  %v2184_v57 = vpop.permute.xlu2 %2183 }
0x2017   : > { %v4125_v48 = vmul.f32 %v2184_v57, %v2167_v8 }
0x2018   : > { %v2319_v42 = vpack.c.bf16 %v2250_v31, %v2250_v31  ;;  %2252 = vrot.lane.b32.xlu1 %v2250_v31, %s3475_s16 }
0x2019   : > { %2255 = vrot.lane.b32.xlu2 %v4125_v48, %s3474_s12 }
0x201a   : > { %2321 = vrot.lane.b32.xlu0 %v2319_v42, %s3475_s16 }
0x2073   : > { %v2256_v41 = vpop.permute.xlu2 %2255 }
0x208a   : > { %v2253_v35 = vpop.permute.xlu1 %2252 }
0x208b   : > { %v2258_v43 = vsel %vm520_vm2, %v2253_v35, %v2256_v41 }
0x208c   : > { %v2259_v3 = vpack.c.bf16 %v2258_v43, %v2258_v43  ;;  %v2322_v5 = vpop.permute.xlu0 %2321 }
0x208d   : > { %2979 = vmatmul.msk.bf16.vlgmr.msrb.gmra.mxu1 %vm520_vm2, %v2322_v5 }
0x208e   : > { %2977 = vmatmul.msk.bf16.vlgmr.msrb.gmra.mxu0 %vm615_vm7, %v2259_v3 }
0x210a   : > { %v2335_v6 = vpop.f32.mrf.mxu1 }
0x210b   : > { %v2339_v62 = vadd.f32 %v2335_v6, %v2318_v2  ;;  %v2272_v49 = vpop.f32.mrf.mxu0 }
0x210c   : > { %v2273_v9 = vadd.f32 %v4108_v61, %v2272_v49 }
0x210d   : > { %3315 = vtanh.f32 %v2339_v62  ;;  %v2980_v40 = vmul.f32 -1.442695, %v2339_v62 }
0x210e   : > { %3317 = vtanh.f32 %v2273_v9  ;;  %v2978_v12 = vmul.f32 -1.442695, %v2273_v9 }
0x210f   : > { %3319 = vpow2.f32 %v2980_v40 }
0x2112   : > { %v2337_v38 = vpop.f32.mrf.mxu1 }
0x2113   : > { %v3316_v55 = vpop.eup %3315  ;;  %v2274_v4 = vpop.f32.mrf.mxu0 }
0x2114   : > { %v3318_v39 = vpop.eup %3317  ;;  %2362 = vrot.lane.b32.xlu2 %v3316_v55, %s3474_s12  ;;  %v2444_v4 = vld [vmem:[#allocation6 + $0xf] sm:$0x1] }
0x2115   : > { %2298 = vrot.lane.b32.xlu1 %v3318_v39, %s3474_s12  ;;  %v3320_v51 = vpop.eup %3319 }
0x2116   : > { %v2343_v46 = vadd.f32 1.0, %v3320_v51 }
0x2118   : > { %3321 = vrcp.f32 %v2343_v46  ;;  %v2355_v19 = vand.u32 2147483648, %v2343_v46  ;;  %vm2349_vm15 = vweird.f32 %v2343_v46  ;;  %v2353_v20 = vand.u32 2147483647, %v2343_v46 }
0x2119   : > { %3323 = vpow2.f32 %v2978_v12 }
0x211a   : > { %v2356_v23 = vor.u32 1.1754944e-38, %v2355_v19  ;;  %vm2354_vm1 = vcmp.eq.f32.partialorder %v2353_v20, 8.507059e+37 }
0x211e   : > { %v3322_v60 = vpop.eup %3321 }
0x211f   : > { %v2345_v54 = vmul.f32 %v3322_v60, %v2343_v46  ;;  %v3324_v63 = vpop.eup %3323  ;;  %vm2350_vm14 = vweird.f32 %v3322_v60 }
0x2120   : > { %v2279_v16 = vadd.f32 1.0, %v3324_v63  ;;  %vm2351_vm0 = vmor %vm2349_vm15, %vm2350_vm14 }
0x2121   : > { %v2346_v14 = vsub.f32 1.0, %v2345_v54 }
0x2122   : > { %3325 = vrcp.f32 %v2279_v16  ;;  %v2291_v33 = vand.u32 2147483648, %v2279_v16  ;;  %vm2285_vm4 = vweird.f32 %v2279_v16  ;;  %v2289_v22 = vand.u32 2147483647, %v2279_v16 }
0x2123   : > { %v2347_v15 = vmul.f32 %v3322_v60, %v2346_v14 }
0x2124   : > { %v2292_v36 = vor.u32 1.1754944e-38, %v2291_v33  ;;  %vm2290_vm6 = vcmp.eq.f32.partialorder %v2289_v22, 8.507059e+37 }
0x2125   : > { %v2348_v18 = vadd.f32 %v3322_v60, %v2347_v15 }
0x2127   : > { %v2352_v21 = vsel %vm2351_vm0, %v3322_v60, %v2348_v18  ;;  %vm678_vm0 = vcmask 253952  }
0x2128   : > { %v2357_v24 = vsel %vm2354_vm1, %v2356_v23, %v2352_v21  ;;  %v3326_v13 = vpop.eup %3325 }
0x2129   : > { %v2281_v28 = vmul.f32 %v3326_v13, %v2279_v16  ;;  %vm2286_vm3 = vweird.f32 %v3326_v13  ;;  %v2360_v45 = vmul.f32 %v2357_v24, %v4116_v27 }
0x212a   : > { %vm2287_vm5 = vmor %vm2285_vm4, %vm2286_vm3 }
0x212b   : > { %v2282_v29 = vsub.f32 1.0, %v2281_v28 }
0x212d   : > { %v2283_v32 = vmul.f32 %v3326_v13, %v2282_v29 }
0x212f   : > { %v2284_v8 = vadd.f32 %v3326_v13, %v2283_v32 }
0x2131   : > { %v2288_v44 = vsel %vm2287_vm5, %v3326_v13, %v2284_v8 }
0x2132   : > { %v2293_v30 = vsel %vm2290_vm6, %v2292_v36, %v2288_v44 }
0x2133   : > { %v2296_v41 = vmul.f32 %v2293_v30, %v4121_v53 }
0x216e   : > { %v2363_v11 = vpop.permute.xlu2 %2362 }
0x216f   : > { %v2365_v25 = vmul.f32 %v2363_v11, %v2357_v24 }
0x2171   : > { %2367 = vrot.lane.b32.xlu1 %v2365_v25, %s3475_s16 }
0x2187   : > { %v2299_v37 = vpop.permute.xlu1 %2298 }
0x2188   : > { %v2301_v1 = vmul.f32 %v2299_v37, %v2293_v30 }
0x218a   : > { %2303 = vrot.lane.b32.xlu0 %v2301_v1, %s3475_s16 }
0x21e3   : > { %v2368_v31 = vpop.permute.xlu1 %2367 }
0x21e4   : > { %v4140_v57 = vadd.f32 %v2368_v31, %v2360_v45 }
0x21e6   : > { %3327 = vtanh.f32 %v4140_v57 }
0x21ec   : > { %v3328_v42 = vpop.eup %3327 }
0x21ed   : > { %2373 = vrot.lane.b32.xlu0 %v3328_v42, %s3474_s12 }
0x21fc   : > { %v2304_v35 = vpop.permute.xlu0 %2303 }
0x21fd   : > { %v4145_v43 = vadd.f32 %v2304_v35, %v2296_v41 }
0x21ff   : > { %3329 = vtanh.f32 %v4145_v43 }
0x2205   : > { %v3330_v3 = vpop.eup %3329 }
0x2206   : > { %2309 = vrot.lane.b32.xlu2 %v3330_v3, %s3474_s12 }
0x225f   : > { %v2374_v5 = vpop.permute.xlu0 %2373 }
0x2260   : > { %v2376_v27 = vmul.f32 %v2374_v5, %v2357_v24  ;;  %v2310_v2 = vpop.permute.xlu2 %2309 }
0x2261   : > { %v4149_v6 = vmul.f32 %v2310_v2, %v2293_v30 }
0x2262   : > { %v2445_v62 = vpack.c.bf16 %v2376_v27, %v2376_v27  ;;  %2378 = vrot.lane.b32.xlu1 %v2376_v27, %s3475_s16 }
0x2263   : > { %2381 = vrot.lane.b32.xlu2 %v4149_v6, %s3474_s12 }
0x2264   : > { %2447 = vrot.lane.b32.xlu0 %v2445_v62, %s3475_s16 }
0x22bd   : > { %v2382_v53 = vpop.permute.xlu2 %2381 }
0x22d4   : > { %v2379_v49 = vpop.permute.xlu1 %2378 }
0x22d5   : > { %v2384_v9 = vsel %vm520_vm2, %v2379_v49, %v2382_v53 }
0x22d6   : > { %v2385_v38 = vpack.c.bf16 %v2384_v9, %v2384_v9  ;;  %v2448_v55 = vpop.permute.xlu0 %2447 }
0x22d7   : > { %2983 = vmatmul.msk.bf16.vlgmr.msrb.gmra.mxu2 %vm520_vm2, %v2448_v55 }
0x22d8   : > { %2981 = vmatmul.msk.bf16.vlgmr.msrb.gmra.mxu3 %vm615_vm7, %v2385_v38 }
0x235a   : > { %v2461_v39 = vpop.f32.mrf.mxu2 }
0x235b   : > { %v2465_v40 = vadd.f32 %v2461_v39, %v2444_v4  ;;  %v2398_v51 = vpop.f32.mrf.mxu3 }
0x235c   : > { %v2399_v46 = vadd.f32 %v4108_v61, %v2398_v51 }
0x235d   : > { %3331 = vtanh.f32 %v2465_v40  ;;  %v2984_v15 = vmul.f32 -1.442695, %v2465_v40 }
0x235e   : > { %3333 = vtanh.f32 %v2399_v46  ;;  %v2982_v19 = vmul.f32 -1.442695, %v2399_v46 }
0x235f   : > { %3335 = vpow2.f32 %v2984_v15 }
0x2362   : > { %v2463_v60 = vpop.f32.mrf.mxu2 }
0x2363   : > { %v3332_v12 = vpop.eup %3331  ;;  %v2400_v54 = vpop.f32.mrf.mxu3 }
0x2364   : > { %v3334_v14 = vpop.eup %3333  ;;  %2488 = vrot.lane.b32.xlu2 %v3332_v12, %s3474_s12 }
0x2365   : > { %2424 = vrot.lane.b32.xlu1 %v3334_v14, %s3474_s12  ;;  %v3336_v63 = vpop.eup %3335 }
0x2366   : > { %v2469_v16 = vadd.f32 1.0, %v3336_v63 }
0x2368   : > { %3337 = vrcp.f32 %v2469_v16  ;;  %v2481_v13 = vand.u32 2147483648, %v2469_v16  ;;  %vm2475_vm9 = vweird.f32 %v2469_v16  ;;  %v2479_v28 = vand.u32 2147483647, %v2469_v16 }
0x2369   : > { %3339 = vpow2.f32 %v2982_v19 }
0x236a   : > { %v2482_v32 = vor.u32 1.1754944e-38, %v2481_v13  ;;  %vm2480_vm11 = vcmp.eq.f32.partialorder %v2479_v28, 8.507059e+37 }
0x236e   : > { %v3338_v18 = vpop.eup %3337 }
0x236f   : > { %v2471_v20 = vmul.f32 %v3338_v18, %v2469_v16  ;;  %v3340_v24 = vpop.eup %3339  ;;  %vm2476_vm8 = vweird.f32 %v3338_v18 }
0x2370   : > { %v2405_v11 = vadd.f32 1.0, %v3340_v24  ;;  %vm2477_vm10 = vmor %vm2475_vm9, %vm2476_vm8 }
0x2371   : > { %v2472_v21 = vsub.f32 1.0, %v2471_v20 }
0x2372   : > { %3341 = vrcp.f32 %v2405_v11  ;;  %v2417_v45 = vand.u32 2147483648, %v2405_v11  ;;  %vm2411_vm13 = vweird.f32 %v2405_v11  ;;  %v2415_v31 = vand.u32 2147483647, %v2405_v11 }
0x2373   : > { %v2473_v23 = vmul.f32 %v3338_v18, %v2472_v21 }
0x2374   : > { %v2418_v41 = vor.u32 1.1754944e-38, %v2417_v45  ;;  %vm2416_vm15 = vcmp.eq.f32.partialorder %v2415_v31, 8.507059e+37 }
0x2375   : > { %v2474_v25 = vadd.f32 %v3338_v18, %v2473_v23 }
0x2377   : > { %v2478_v29 = vsel %vm2477_vm10, %v3338_v18, %v2474_v25 }
0x2378   : > { %v2483_v8 = vsel %vm2480_vm11, %v2482_v32, %v2478_v29  ;;  %v3342_v44 = vpop.eup %3341 }
0x2379   : > { %v2407_v36 = vmul.f32 %v3342_v44, %v2405_v11  ;;  %vm2412_vm12 = vweird.f32 %v3342_v44  ;;  %v2486_v27 = vmul.f32 %v2483_v8, %v4140_v57 }
0x237a   : > { %vm2413_vm14 = vmor %vm2411_vm13, %vm2412_vm12 }
0x237b   : > { %v2408_v37 = vsub.f32 1.0, %v2407_v36 }
0x237d   : > { %v2409_v30 = vmul.f32 %v3342_v44, %v2408_v37 }
0x237f   : > { %v2410_v1 = vadd.f32 %v3342_v44, %v2409_v30 }
0x2381   : > { %v2414_v42 = vsel %vm2413_vm14, %v3342_v44, %v2410_v1 }
0x2382   : > { %v2419_v3 = vsel %vm2416_vm15, %v2418_v41, %v2414_v42 }
0x2383   : > { %v2422_v49 = vmul.f32 %v2419_v3, %v4145_v43 }
0x23be   : > { %v2489_v33 = vpop.permute.xlu2 %2488 }
0x23bf   : > { %v2491_v22 = vmul.f32 %v2489_v33, %v2483_v8 }
0x23c1   : > { %2493 = vrot.lane.b32.xlu1 %v2491_v22, %s3475_s16 }
0x23d7   : > { %v2425_v35 = vpop.permute.xlu1 %2424 }
0x23d8   : > { %v2427_v5 = vmul.f32 %v2425_v35, %v2419_v3  ;;  %v3477_v35 = vmov 32.0  }
0x23da   : > { %2429 = vrot.lane.b32.xlu0 %v2427_v5, %s3475_s16 }
0x2433   : > { %v2494_v2 = vpop.permute.xlu1 %2493 }
0x2434   : > { %v4164_v62 = vadd.f32 %v2494_v2, %v2486_v27 }
0x2436   : > { %3343 = vtanh.f32 %v4164_v62 }
0x243c   : > { %v3344_v53 = vpop.eup %3343 }
0x243d   : > { %2499 = vrot.lane.b32.xlu0 %v3344_v53, %s3474_s12 }
0x244c   : > { %v2430_v9 = vpop.permute.xlu0 %2429 }
0x244d   : > { %v4169_v38 = vadd.f32 %v2430_v9, %v2422_v49 }
0x244f   : > { %3345 = vtanh.f32 %v4169_v38 }
0x2455   : > { %v3346_v55 = vpop.eup %3345 }
0x2456   : > { %2435 = vrot.lane.b32.xlu2 %v3346_v55, %s3474_s12 }
0x24af   : > { %v2500_v4 = vpop.permute.xlu0 %2499 }
0x24b0   : > { %v2502_v57 = vmul.f32 %v2500_v4, %v2483_v8  ;;  %v2436_v39 = vpop.permute.xlu2 %2435 }
0x24b1   : > { %v2438_v40 = vmul.f32 %v2436_v39, %v2419_v3 }
0x24b2   : > { %2504 = vrot.lane.b32.xlu1 %v2502_v57, %s3475_s16 }
0x24b3   : > { %2507 = vrot.lane.b32.xlu2 %v2438_v40, %s3474_s12 }
0x250d   : > { %v2508_v51 = vpop.permute.xlu2 %2507 }
0x2524   : > { %v2505_v46 = vpop.permute.xlu1 %2504 }
0x2525   : > { %v2510_v43 = vsel %vm520_vm2, %v2505_v46, %v2508_v51  ;;  %2570 = vst.msk [vmem:[#allocation2] sm:$0x1] %vm678_vm0, %v2505_v46 }
0x2526   : > { %v2511_v60 = vpack.c.bf16 %v2510_v43, %v2510_v43 }
0x2528   : > { %2985 = vmatmul.msk.bf16.vlgmr.msra.gmra.mxu0 %vm615_vm7, %v2511_v60  ;;  %v2652_v60 = vld [vmem:[%s4326_s8 + $0x18] sm:$0xff] }
0x2529   : > { %3005 = vmatpush.msra.mxu3 %v2652_v60  ;;  %2675 = vmatpush.msra.mxu1 %v2652_v60 }
0x25a5   : > { %v2524_v12 = vpop.f32.mrf.mxu0 }
0x25a6   : > { %v2525_v54 = vadd.f32 %v4108_v61, %v2524_v12  ;;  %v2651_v12 = vld [vmem:[%s4326_s8 + $0x10] sm:$0xff] }
0x25a7   : > { %3006 = vmatpush.msra.mxu3 %v2651_v12  ;;  %2676 = vmatpush.msra.mxu1 %v2651_v12 }
0x25a8   : > { %3347 = vtanh.f32 %v2525_v54  ;;  %v2986_v61 = vmul.f32 -1.442695, %v2525_v54  ;;  %v2650_v54 = vld [vmem:[%s4326_s8 + $0x8] sm:$0xff] }
0x25a9   : > { %3007 = vmatpush.msra.mxu3 %v2650_v54  ;;  %2677 = vmatpush.msra.mxu1 %v2650_v54 }
0x25aa   : > { %3349 = vpow2.f32 %v2986_v61 }
0x25ad   : > { %v2526_v14 = vpop.f32.mrf.mxu0 }
0x25ae   : > { %v3348_v15 = vpop.eup %3347  ;;  %v2649_v14 = vld [vmem:[%s4326_s8] sm:$0xff] }
0x25af   : > { %2550 = vrot.lane.b32.xlu0 %v3348_v15, %s3474_s12  ;;  %3008 = vmatpush.msra.mxu3 %v2649_v14 }
0x25b0   : > { %v3350_v63 = vpop.eup %3349  ;;  %2678 = vmatpush.msra.mxu1 %v2649_v14 }
0x25b1   : > { %v2531_v16 = vadd.f32 1.0, %v3350_v63 }
0x25b3   : > { %3351 = vrcp.f32 %v2531_v16  ;;  %v2543_v21 = vand.u32 2147483648, %v2531_v16  ;;  %vm2537_vm1 = vweird.f32 %v2531_v16 }
0x25b7   : > { %1684 = vrot.lane.b32.xlu0 %v4008_v17, %s3475_s16 }
0x25b9   : > { %v3352_v17 = vpop.eup %3351 }
0x25ba   : > { %v2533_v18 = vmul.f32 %v3352_v17, %v2531_v16  ;;  %vm2538_vm7 = vweird.f32 %v3352_v17 }
0x25bb   : > { %vm2539_vm3 = vmor %vm2537_vm1, %vm2538_vm7 }
0x25bc   : > { %v2534_v19 = vsub.f32 1.0, %v2533_v18 }
0x25bf   : > { %2062 = vrot.lane.b32.xlu0 %v4096_v0, %s3475_s16  ;;  %v2535_v0 = vmul.f32 %v3352_v17, %v2534_v19 }
0x25c1   : > { %v2536_v20 = vadd.f32 %v3352_v17, %v2535_v0 }
0x25c3   : > { %v2540_v23 = vsel %vm2539_vm3, %v3352_v17, %v2536_v20 }
0x25c7   : > { %2440 = vrot.lane.b32.xlu0 %v2438_v40, %s3475_s16 }
0x25cf   : > { %802 = vrot.lane.b32.xlu0 %v3763_v50, %s3475_s16  ;;  %v2541_v50 = vand.u32 2147483647, %v2531_v16 }
0x25d1   : > { %vm2542_vm4 = vcmp.eq.f32.partialorder %v2541_v50, 8.507059e+37 }
0x25d7   : > { %1180 = vrot.lane.b32.xlu0 %v3853_v58, %s3475_s16  ;;  %v2544_v58 = vor.u32 1.1754944e-38, %v2543_v21 }
0x25df   : > { %1558 = vrot.lane.b32.xlu0 %v3978_v10, %s3475_s16  ;;  %v2545_v10 = vsel %vm2542_vm4, %v2544_v58, %v2540_v23 }
0x2621   : > { %v2551_v24 = vpop.permute.xlu0 %2550 }
0x2622   : > { %v2553_v11 = vmul.f32 %v2551_v24, %v2545_v10 }
0x2624   : > { %2555 = vrot.lane.b32.xlu1 %v2553_v11, %s3475_s16  ;;  %v3096_v11 = vld [vmem:[%s4324_s6] ss:$0 sm:$0xff] }
0x2629   : > { %v1685_v25 = vpop.permute.xlu0 %1684 }
0x262a   : > { %1687 = vst.msk [vmem:[#allocation7 + $0x8] sm:$0x1] %vm678_vm0, %v1685_v25 }
0x262c   : > { %1810 = vrot.lane.b32.xlu1 %v4038_v26, %s3475_s16  ;;  %v2548_v26 = vmul.f32 %v2545_v10, %v4169_v38 }
0x2631   : > { %v2063_v13 = vpop.permute.xlu0 %2062 }
0x2632   : > { %2065 = vst.msk [vmem:[#allocation7 + $0xb] sm:$0x1] %vm678_vm0, %v2063_v13 }
0x2634   : > { %2188 = vrot.lane.b32.xlu1 %v4125_v48, %s3475_s16 }
0x2639   : > { %v2441_v28 = vpop.permute.xlu0 %2440 }
0x263a   : > { %2443 = vst.msk [vmem:[#allocation7 + $0xe] sm:$0x1] %vm678_vm0, %v2441_v28 }
0x263c   : > { %928 = vrot.lane.b32.xlu1 %v3793_v52, %s3475_s16 }
0x2641   : > { %v803_v29 = vpop.permute.xlu0 %802 }
0x2642   : > { %805 = vst.msk [vmem:[#allocation7 + $0x1] sm:$0x1] %vm678_vm0, %v803_v29  ;;  %v3097_v29 = vld [vmem:[%s4325_s7] ss:$0 sm:$0xff] }
0x2649   : > { %v1181_v32 = vpop.permute.xlu0 %1180 }
0x264a   : > { %1183 = vst.msk [vmem:[#allocation7 + $0x4] sm:$0x1] %vm678_vm0, %v1181_v32 }
0x2651   : > { %v1559_v8 = vpop.permute.xlu0 %1558 }
0x2652   : > { %1561 = vst.msk [vmem:[#allocation7 + $0x7] sm:$0x1] %vm678_vm0, %v1559_v8 }
0x2696   : > { %v2556_v33 = vpop.permute.xlu1 %2555 }
0x2697   : > { %v4205_v22 = vadd.f32 %v2556_v33, %v2548_v26 }
0x2699   : > { %3353 = vtanh.f32 %v4205_v22 }
0x269a   : > { %3355 = vrcp.f32 %v3477_v35 }
0x269e   : > { %v1811_v48 = vpop.permute.xlu1 %1810 }
0x269f   : > { %v3354_v44 = vpop.eup %3353  ;;  %1813 = vst.msk [vmem:[#allocation7 + $0x9] sm:$0x1] %vm678_vm0, %v1811_v48 }
0x26a0   : > { %2561 = vrot.lane.b32.xlu2 %v3354_v44, %s3474_s12  ;;  %s3476_s12 = smov 96   ;;  %v3356_v3 = vpop.eup %3355 }
0x26a1   : > { %v2591_v5 = vmul.f32 32.0, %v3356_v3  ;;  %vm2595_vm5 = vweird.f32 %v3356_v3 }
0x26a3   : > { %v2592_v27 = vsub.f32 1.0, %v2591_v5 }
0x26a5   : > { %v2593_v2 = vmul.f32 %v3356_v3, %v2592_v27 }
0x26a6   : > { %v2189_v52 = vpop.permute.xlu1 %2188 }
0x26a7   : > { %2191 = vst.msk [vmem:[#allocation7 + $0xc] sm:$0x1] %vm678_vm0, %v2189_v52  ;;  %v2594_v53 = vadd.f32 %v3356_v3, %v2593_v2 }
0x26a8   : > { %1936 = vrot.lane.b32.xlu2 %v4068_v34, %s3475_s16 }
0x26a9   : > { %v2596_v49 = vsel %vm2595_vm5, %v3356_v3, %v2594_v53 }
0x26ae   : > { %v929_v36 = vpop.permute.xlu1 %928 }
0x26af   : > { %931 = vst.msk [vmem:[#allocation7 + $0x2] sm:$0x1] %vm678_vm0, %v929_v36 }
0x26b0   : > { %2314 = vrot.lane.b32.xlu2 %v4149_v6, %s3475_s16 }
0x26b8   : > { %675 = vrot.lane.b32.xlu2 %v3733_v47, %s3475_s16 }
0x26c0   : > { %1054 = vrot.lane.b32.xlu2 %v3823_v56, %s3475_s16 }
0x26c8   : > { %1432 = vrot.lane.b32.xlu2 %v3948_v7, %s3475_s16 }
0x26fa   : > { %v2562_v37 = vpop.permute.xlu2 %2561 }
0x26fb   : > { %v2564_v30 = vmul.f32 %v2562_v37, %v2545_v10 }
0x26fd   : > { %2566 = vrot.lane.b32.xlu1 %v2564_v30, %s3475_s16 }
0x2702   : > { %v1937_v34 = vpop.permute.xlu2 %1936 }
0x2703   : > { %1939 = vst.msk [vmem:[#allocation7 + $0xa] sm:$0x1] %vm678_vm0, %v1937_v34 }
0x2705   : > { %1306 = vrot.lane.b32.xlu1 %v3893_v59, %s3475_s16 }
0x270a   : > { %v2315_v6 = vpop.permute.xlu2 %2314 }
0x270b   : > { %2317 = vst.msk [vmem:[#allocation7 + $0xd] sm:$0x1] %vm678_vm0, %v2315_v6 }
0x2712   : > { %v676_v47 = vpop.permute.xlu2 %675 }
0x2713   : > { %679 = vst.msk [vmem:[#allocation7] sm:$0x1] %vm678_vm0, %v676_v47 }
0x271a   : > { %v1055_v56 = vpop.permute.xlu2 %1054 }
0x271b   : > { %1057 = vst.msk [vmem:[#allocation7 + $0x3] sm:$0x1] %vm678_vm0, %v1055_v56 }
0x2722   : > { %v1433_v7 = vpop.permute.xlu2 %1432 }
0x2723   : > { %1435 = vst.msk [vmem:[#allocation7 + $0x6] sm:$0x1] %vm678_vm0, %v1433_v7 }
0x276f   : > { %v2567_v1 = vpop.permute.xlu1 %2566 }
0x2770   : > { %2569 = vst.msk [vmem:[#allocation7 + $0xf] sm:$0x1] %vm678_vm0, %v2567_v1 }
0x2771   : > { %2576 = vst.msk [vmem:[#allocation4] sm:$0x1] %vm678_vm0, %v2567_v1 }
0x2777   : > { %v1307_v45 = vpop.permute.xlu1 %1306  ;;  %v2583_v31 = vld [vmem:[#allocation7 + $0x8] sm:$0xff] }
0x2778   : > { %1309 = vst.msk [vmem:[#allocation7 + $0x5] sm:$0x1] %vm678_vm0, %v1307_v45  ;;  %v2587_v59 = vsel %vm520_vm2, %v2583_v31, 0.0 }
0x2779   : > { %2588 = vadd.xlane.f32.xlu1 %v2587_v59 }
0x277f   : > { %v2582_v42 = vld [vmem:[#allocation7] sm:$0xff] }
0x2780   : > { %v2584_v41 = vsel %vm520_vm2, %v2582_v42, 0.0 }
0x2781   : > { %2585 = vadd.xlane.f32.xlu2 %v2584_v41 }
0x2792   : > { %2572 = vrot.lane.b32.xlu1 %v4164_v62, %s3476_s12 }
0x27ec   : > { %v2589_v9 = vpop.xlane.xlu1 %2588 }
0x27ed   : > { %v2598_v38 = vmul.f32 %v2596_v49, %v2589_v9 }
0x27ef   : > { %v2600_v55 = vsub.f32 %v2583_v31, %v2598_v38 }
0x27f1   : > { %v2602_v4 = vmul.f32 %v2600_v55, %v2600_v55 }
0x27f3   : > { %v2606_v57 = vsel %vm520_vm2, %v2602_v4, 0.0 }
0x27f4   : > { %2607 = vadd.xlane.f32.xlu0 %v2606_v57  ;;  %v2586_v39 = vpop.xlane.xlu2 %2585 }
0x27f5   : > { %v2597_v40 = vmul.f32 %v2596_v49, %v2586_v39 }
0x27f7   : > { %v2599_v51 = vsub.f32 %v2582_v42, %v2597_v40 }
0x27f9   : > { %v2601_v62 = vmul.f32 %v2599_v51, %v2599_v51 }
0x27fb   : > { %v2603_v46 = vsel %vm520_vm2, %v2601_v62, 0.0 }
0x27fc   : > { %2604 = vadd.xlane.f32.xlu2 %v2603_v46 }
0x2804   : > { %v2573_v43 = vpop.permute.xlu1 %2572 }
0x2805   : > { %2575 = vst.msk [vmem:[#allocation3] sm:$0x1] %vm678_vm0, %v2573_v43 }
0x2814   : > { %2578 = vrot.lane.b32.xlu2 %v4205_v22, %s3476_s12  ;;  %s2993_s12 = sshll.u32 %s3459_s21, 2 }
0x2815   : > { %s2752_s16 = sadd.s32 %s2993_s12, %s3613_s26 }
0x2816   : > { %s2994_s22 = sshll.u32 %s2752_s16, 3 }
0x2817   : > { %s2754_s20 = scalar_lea.hbm %s4329_s11, %s2994_s22 }
0x2818   : > { %s2757_s19 = sshll.u32 %s2754_s20, 4  ;;  %s2758_s19 = int_to_ptr.hbm [resolvable:$true] %s2757_s19 }
0x2819   : > { %s3391_s13 = sshra.s32 %s2758_s19, 4  ;;  %s3392_s13 = int_to_ptr.hbm [resolvable:$true] %s3391_s13 }
0x281a   : > { %s3393_s15 = scalar_lea.hbm %s3392_s13, 16  ;;  %p3398_p5 = scmp.lt.s32.totalorder %s3392_s13, %s4329_s11 }
0x281b   : > { %p3394_p1 = scmp.ne.s32.totalorder %s3392_s13, %s3393_s15  ;;  %p3399_p6 = scmp.lt.s32.totalorder %s3397_s14, %s3393_s15 }
0x281d   : > { %p3395_p2 = pnand %p3394_p1, %p3591_p3  ;;  %p3400_p7 = por %p3399_p6, %p3398_p5 }
0x281f   : > { %p3396_p4 = pneg %p3395_p2 }
0x2821   : > { %p3401_p9 = pnand %p3400_p7, %p3396_p4 }
0x2867   : > { %v2608_v15 = vpop.xlane.xlu0 %2607 }
0x2868   : > { %v2610_v61 = vmul.f32 %v2608_v15, %v2596_v49 }
0x286a   : > { %v2612_v63 = vadd.f32 1e-05, %v2610_v61 }
0x286c   : > { %3357 = vrsqrt.f32 %v2612_v63  ;;  %vm2629_vm8 = vweird.f32 %v2612_v63 }
0x286f   : > { %v2605_v16 = vpop.xlane.xlu2 %2604 }
0x2870   : > { %v2609_v17 = vmul.f32 %v2605_v16, %v2596_v49 }
0x2872   : > { %v3358_v18 = vpop.eup %3357  ;;  %v2611_v19 = vadd.f32 1e-05, %v2609_v17 }
0x2873   : > { %v2624_v0 = vmul.f32 %v3358_v18, %v2612_v63  ;;  %vm2630_vm6 = vweird.f32 %v3358_v18 }
0x2874   : > { %3359 = vrsqrt.f32 %v2611_v19  ;;  %vm2631_vm9 = vmor %vm2629_vm8, %vm2630_vm6  ;;  %vm2619_vm11 = vweird.f32 %v2611_v19 }
0x2875   : > { %v2625_v20 = vmul.f32 %v3358_v18, %v2624_v0 }
0x2877   : > { %v2626_v21 = vmul.f32 0.5, %v2625_v20  ;;  %v2579_v50 = vpop.permute.xlu2 %2578 }
0x2878   : > { %2581 = vst.msk [vmem:[#allocation5] sm:$0x1] %vm678_vm0, %v2579_v50 }
0x2879   : > { %v2627_v23 = vsub.f32 1.5, %v2626_v21 }
0x287a   : > { %v3360_v58 = vpop.eup %3359 }
0x287b   : > { %v2628_v24 = vmul.f32 %v3358_v18, %v2627_v23  ;;  %v2614_v10 = vmul.f32 %v3360_v58, %v2611_v19  ;;  %vm2620_vm10 = vweird.f32 %v3360_v58 }
0x287c   : > { %vm2621_vm12 = vmor %vm2619_vm11, %vm2620_vm10 }
0x287d   : > { %v2632_v25 = vsel %vm2631_vm9, %v3358_v18, %v2628_v24  ;;  %v2615_v13 = vmul.f32 %v3360_v58, %v2614_v10 }
0x287e   : > { %v2634_v28 = vmul.f32 %v2632_v25, %v2600_v55 }
0x287f   : > { %v2616_v32 = vmul.f32 0.5, %v2615_v13 }
0x2880   : > { %v2640_v8 = vmul.f32 %v3096_v11, %v2634_v28 }
0x2881   : > { %v2617_v26 = vsub.f32 1.5, %v2616_v32 }
0x2882   : > { %v2646_v33 = vadd.f32 %v3097_v29, %v2640_v8 }
0x2883   : > { %v2618_v22 = vmul.f32 %v3360_v58, %v2617_v26 }
0x2884   : > { %2988 = vmatmul.msk.f32.vlgmr.msra.gmra.mxu3 %vm520_vm2, %v2646_v33  ;;  %2648 = vst.msk [vmem:[%s3629_s9 + $0x8] sm:$0xff] %vm520_vm2, %v2646_v33 }
0x2885   : > { %v2622_v48 = vsel %vm2621_vm12, %v3360_v58, %v2618_v22 }
0x2886   : > { %v2633_v44 = vmul.f32 %v2622_v48, %v2599_v51 }
0x2888   : > { %v2639_v52 = vmul.f32 %v3096_v11, %v2633_v44 }
0x288a   : > { %v2645_v36 = vadd.f32 %v3097_v29, %v2639_v52 }
0x288c   : > { %2987 = vmatmul.msk.f32.vlgmr.msra.gmra.mxu1 %vm520_vm2, %v2645_v36  ;;  %2647 = vst.msk [vmem:[%s3629_s9] sm:$0xff] %vm520_vm2, %v2645_v36 }
0x288d   : > { %3404 = shalt.err (!%p3401_p9)
}
0x288e   : > { %s3478_s9 = smov 128   ;;  %s3479_s25 = smov 8   ;;  %vm2724_vm14 = vcmask 31744  }
0x288f   : > { %3009 = dma.vmem_to_hbm [thread:$0]  (%p3591_p3), %s2756_s23, 256, %s2758_s19, %s2737_s27, %s3478_s9, %s3478_s9, %s3479_s25  }
0x2890   : > { %s4351_s28 = sld [smem:[#allocation20_spill]] }
0x2896   : > { %v3098_v37 = vld [vmem:[%s4351_s28] ss:$0 sm:$0xff] }
0x2907   : > { %v2683_v30 = vpop.f32.mrf.mxu3 }
0x2908   : > { %v2684_v34 = vadd.f32 %v3098_v37, %v2683_v30 }
0x2909   : > { %v2680_v6 = vpop.f32.mrf.mxu1 }
0x290a   : > { %v2990_v47 = vmul.f32 -1.442695, %v2684_v34  ;;  %v2681_v56 = vadd.f32 %v3098_v37, %v2680_v6 }
0x290c   : > { %3361 = vpow2.f32 %v2990_v47  ;;  %v2989_v7 = vmul.f32 -1.442695, %v2681_v56 }
0x290e   : > { %3363 = vpow2.f32 %v2989_v7 }
0x2912   : > { %v3362_v1 = vpop.eup %3361 }
0x2913   : > { %v2693_v45 = vadd.f32 1.0, %v3362_v1 }
0x2914   : > { %v3364_v31 = vpop.eup %3363 }
0x2915   : > { %3365 = vrcp.f32 %v2693_v45  ;;  %v2692_v59 = vadd.f32 1.0, %v3364_v31  ;;  %v2720_v5 = vand.u32 2147483648, %v2693_v45  ;;  %v2718_v53 = vand.u32 2147483647, %v2693_v45 }
0x2916   : > { %vm2714_vm13 = vweird.f32 %v2693_v45 }
0x2917   : > { %3367 = vrcp.f32 %v2692_v59  ;;  %v2705_v38 = vand.u32 2147483648, %v2692_v59  ;;  %v2721_v55 = vor.u32 1.1754944e-38, %v2720_v5  ;;  %v2703_v57 = vand.u32 2147483647, %v2692_v59 }
0x2918   : > { %vm2719_vm7 = vcmp.eq.f32.partialorder %v2718_v53, 8.507059e+37  ;;  %vm2699_vm1 = vweird.f32 %v2692_v59 }
0x2919   : > { %v2706_v62 = vor.u32 1.1754944e-38, %v2705_v38  ;;  %vm2704_vm4 = vcmp.eq.f32.partialorder %v2703_v57, 8.507059e+37 }
0x291b   : > { %v3366_v42 = vpop.eup %3365 }
0x291c   : > { %v2710_v41 = vmul.f32 %v3366_v42, %v2693_v45  ;;  %vm2715_vm2 = vweird.f32 %v3366_v42 }
0x291d   : > { %v3368_v35 = vpop.eup %3367  ;;  %vm2716_vm15 = vmor %vm2714_vm13, %vm2715_vm2 }
0x291e   : > { %v2711_v3 = vsub.f32 1.0, %v2710_v41  ;;  %v2695_v27 = vmul.f32 %v3368_v35, %v2692_v59  ;;  %vm2700_vm0 = vweird.f32 %v3368_v35 }
0x291f   : > { %vm2701_vm3 = vmor %vm2699_vm1, %vm2700_vm0 }
0x2920   : > { %v2712_v2 = vmul.f32 %v3366_v42, %v2711_v3  ;;  %v2696_v49 = vsub.f32 1.0, %v2695_v27 }
0x2922   : > { %v2713_v9 = vadd.f32 %v3366_v42, %v2712_v2  ;;  %v2697_v4 = vmul.f32 %v3368_v35, %v2696_v49 }
0x2924   : > { %v2717_v39 = vsel %vm2716_vm15, %v3366_v42, %v2713_v9  ;;  %v2698_v51 = vadd.f32 %v3368_v35, %v2697_v4 }
0x2925   : > { %v2722_v40 = vsel %vm2719_vm7, %v2721_v55, %v2717_v39 }
0x2926   : > { %2726 = vst.msk [vmem:[%s3627_s24 + $0x8] sm:$0xff] %vm2724_vm14, %v2722_v40  ;;  %v2702_v46 = vsel %vm2701_vm3, %v3368_v35, %v2698_v51 }
0x2927   : > { %v2707_v43 = vsel %vm2704_vm4, %v2706_v62, %v2702_v46 }
0x2928   : > { %2725 = vst.msk [vmem:[%s3627_s24] sm:$0xff] %vm2724_vm14, %v2707_v43 }
0x2929 PF: > { %s4352_s30 = sld [smem:[#allocation15_spill]] }
0x292a   : > { %s4353_s17 = sld [smem:[#allocation11_spill]] }
0x292f   : > { %p3015_p3 = scmp.ge.s32.totalorder %s4352_s30, 2 }
0x2930   : > { %s2784_s23 = sand.u32 1, %s4353_s17  }
0x2931   : > { %p3012_p10 = pnand %p3015_p3, %p3600_p8  ;;  %s2785_s19 = scalar_lea.sflag [#allocation9], %s2784_s23 }
0x2933   : > { %p3013_p11 = pneg %p3012_p10 }
0x2935   : > { %3438 = dma.done.wait (%p3013_p11), %s2785_s19, 256  }
0x2936   : > { %3440 = vsyncadd (%p3013_p11), %s2785_s19, 4294967040  ;;  %s25_s24 = sadd.s32 1, %s4352_s30   ;;  %s4355_s27 = sld [smem:[#allocation12_spill]] }
0x2937   : > { %p22_p12 = scmp.ge.s32.totalorder %s25_s24, 6   ;;  %s4356_s19 = sld [smem:[#allocation19_spill]] }
0x2938   : > { %s4357_s20 = sld [smem:[#allocation13_spill]]  ;;  %s4361_s17 = smov %s3447_s18 }
0x2939   : > { %s4358_s21 = sld [smem:[#allocation14_spill]]  ;;  %24 = sbr.rel (!%p22_p12) target bundleno = 7 (0x7), region = 111 }
0x293a   : > { %s4359_s22 = sld [smem:[#allocation16_spill]] }
0x293b   : > { %s4360_s23 = sld [smem:[#allocation17_spill]] }
0x293c   : > { %s4362_s18 = smov %s4355_s27 }
0x293e   :  { %2791 = vsyncpa [#allocation9], 1 }
0x293f   :  { %2793 = vsyncpa [#allocation9 + $0x1], 1 }

</bundles_post_ra>
